<compile_context>
chip_gen: v7x
topology: tpu7x:2x2x1
jax: 0.10.0
libtpu: 0.0.40
codegen_flags: <defaults>
</compile_context>

<pallas_src>
import functools

import jax
import jax.numpy as jnp
from jax.experimental import pallas as pl
from jax.experimental.pallas import tpu as pltpu

_PAD = 3   # shared halo = max per-branch padding (the 7-band kernels need 3)
_NACC = 4  # independent partial accumulator chains


def _union_tap_offsets():
    """Static union of the tap offsets of the 4 depthwise branches inside a common
    7x7x7 footprint centered at (3, 3, 3).  135 offsets, sorted (kd, kh, kw) so taps
    sharing a (kd, kh) pair are contiguous rows of the fused weight table."""
    offs = set()
    for kd in range(2, 5):              # 3x3x3 branch (offsets -1..1 -> 2..4)
        for kh in range(2, 5):
            for kw in range(2, 5):
                offs.add((kd, kh, kw))
    for a in range(7):
        for b in range(7):
            offs.add((3, a, b))         # (1,7,7) branch (kd fixed at center)
            offs.add((a, 3, b))         # (7,1,7) branch (kh fixed at center)
            offs.add((a, b, 3))         # (7,7,1) branch (kw fixed at center)
    return tuple(sorted(offs))


def _group_offsets(offsets):
    """Group sorted taps by (kd, kh) -> tuple of (kd, kh, (kw, ...), first_row)."""
    groups = []
    i = 0
    while i < len(offsets):
        kd, kh, _ = offsets[i]
        kws = []
        j = i
        while j < len(offsets) and offsets[j][0] == kd and offsets[j][1] == kh:
            kws.append(offsets[j][2])
            j += 1
        groups.append((kd, kh, tuple(kws), i))
        i = j
    return tuple(groups)


def _build_fused_weights(params, W):
    """Build the fused (T, W*Cc) tap table and (1, W*Cc) bias, lane-folded (each
    per-channel row is tiled W times so it lines up with the folded (W, Cc) lane axis).
    Channel order matches the concat order [htw, wd, hd, hw]."""
    gc = params["gc"]
    offsets = _union_tap_offsets()
    zero = jnp.zeros((gc,), jnp.float32)
    w_htw, w_wd = params["w_htw"], params["w_wd"]
    w_hd, w_hw = params["w_hd"], params["w_hw"]
    rows = []
    for (kd, kh, kw) in offsets:
        cols = [
            w_htw[:, kd - 2, kh - 2, kw - 2]
            if (2 <= kd <= 4 and 2 <= kh <= 4 and 2 <= kw <= 4) else zero,
            w_wd[:, 0, kh, kw] if kd == 3 else zero,
            w_hd[:, kd, 0, kw] if kh == 3 else zero,
            w_hw[:, kd, kh, 0] if kw == 3 else zero,
        ]
        rows.append(jnp.tile(jnp.concatenate(cols), W))           # (W*Cc,)
    w_tab = jnp.stack(rows)                                        # (T, W*Cc)
    bias_cc = jnp.concatenate([params["b_htw"], params["b_wd"],
                               params["b_hd"], params["b_hw"]])
    bias = jnp.tile(bias_cc, W)[None, :]                           # (1, W*Cc)
    return offsets, w_tab, bias


def _fused_dwconv3d_kernel(w_ref, b_ref, x_ref, o_ref, xpad_ref, *,
                           groups, D, H, W, Cc):
    """One grid step = one batch element, all fused conv channels.

    w_ref:    (T, W*Cc)   lane-folded fused tap weights (VMEM, resident across steps)
    b_ref:    (1, W*Cc)   lane-folded fused bias (VMEM)
    x_ref:    (D, H, W*Cc)                    unpadded, lane-folded input tile (VMEM)
    o_ref:    (D, H, W*Cc)                    output tile (VMEM)
    xpad_ref: (D+6, H+6, (W+6)*Cc)            zero-haloed scratch (VMEM)
    """
    L = W * Cc                     # folded lane width of the live data
    Lp = (W + 2 * _PAD) * Cc       # folded lane width of the padded scratch
    lo = _PAD * Cc                 # interior lane offset inside the scratch
    Hp = H + 2 * _PAD
    dt = xpad_ref.dtype

    # ---- halo-only zeroing (interior is fully overwritten below; every-step zeroing
    #      keeps it correct under megacore "parallel" batch sharding) ----------------
    zslab_d = jnp.zeros((_PAD, Hp, Lp), dt)
    xpad_ref[0:_PAD] = zslab_d
    xpad_ref[D + _PAD:D + 2 * _PAD] = zslab_d
    zslab_h = jnp.zeros((D, _PAD, Lp), dt)
    xpad_ref[_PAD:_PAD + D, 0:_PAD, :] = zslab_h
    xpad_ref[_PAD:_PAD + D, H + _PAD:Hp, :] = zslab_h
    zslab_w = jnp.zeros((D, H, lo), dt)
    xpad_ref[_PAD:_PAD + D, _PAD:_PAD + H, 0:lo] = zslab_w
    xpad_ref[_PAD:_PAD + D, _PAD:_PAD + H, lo + L:Lp] = zslab_w

    # ---- interior fill (no padded HBM copy ever exists) ----------------------------
    xpad_ref[_PAD:_PAD + D, _PAD:_PAD + H, lo:lo + L] = x_ref[...]

    # Bias-initialised accumulator template, hoisted out of the depth loop.
    acc_bias = jnp.broadcast_to(b_ref[...], (H, L)).astype(jnp.float32)
    zero_acc = jnp.zeros((H, L), jnp.float32)

    @pl.loop(0, D)
    def _(d):
        # _NACC independent MAC chains fill the 4 VALU slots (no serial 135-add chain).
        accs = [acc_bias] + [zero_acc] * (_NACC - 1)
        t = 0
        for (kd, kh, kws, row0) in groups:
            # One slab load per (kd, kh) group; kw windows are lane slices of it
            # (static in-register slices -> XLU realign, off the vld critical slot).
            slab = xpad_ref[d + kd, kh:kh + H, :]            # (H, Lp)
            wblk = w_ref[row0:row0 + len(kws), :]            # (nk, L) single 2-D load
            for j, kw in enumerate(kws):
                win = slab[:, kw * Cc:kw * Cc + L]           # (H, L) lane slice
                accs[t % _NACC] = accs[t % _NACC] + wblk[j:j + 1, :] * win
                t += 1
        acc = (accs[0] + accs[1]) + (accs[2] + accs[3])
        o_ref[d] = acc.astype(o_ref.dtype)


def fused_dwconv3d(xf, w_tab, bias, groups, Cc):
    """Fused depthwise conv over all four branches.

    xf: (N, D, H, W*Cc) lane-folded conv-branch input (unpadded), Cc = 4*gc.
    Returns (N, D, H, W*Cc).
    """
    N, D, H, L = xf.shape
    W = L // Cc
    T = w_tab.shape[0]
    kernel = functools.partial(_fused_dwconv3d_kernel, groups=groups,
                               D=D, H=H, W=W, Cc=Cc)
    return pl.pallas_call(
        kernel,
        out_shape=jax.ShapeDtypeStruct((N, D, H, L), xf.dtype),
        grid=(N,),
        in_specs=[
            pl.BlockSpec((T, L), lambda n: (0, 0)),              # tap weights (VMEM)
            pl.BlockSpec((1, L), lambda n: (0, 0)),              # bias (VMEM)
            pl.BlockSpec((None, D, H, L), lambda n: (n, 0, 0, 0)),
        ],
        out_specs=pl.BlockSpec((None, D, H, L), lambda n: (n, 0, 0, 0)),
        scratch_shapes=[
            pltpu.VMEM((D + 2 * _PAD, H + 2 * _PAD, (W + 2 * _PAD) * Cc), xf.dtype),
        ],
        compiler_params=pltpu.CompilerParams(
            dimension_semantics=("parallel",)),
    )(w_tab, bias, xf)


def init_params(key, in_channels, square_kernel_size=3, band_kernel_size=7,
                branch_ratio=0.125):
    """Deterministic synthetic parameters matching EfficientDWConv3d.__init__."""
    gc = int(in_channels * branch_ratio)
    assert gc > 0, "in_channels * branch_ratio < 1 gives a zero-width conv block"
    ks = square_kernel_size
    kb = band_kernel_size
    shapes = {
        "htw": (gc, ks, ks, ks),
        "wd": (gc, 1, kb, kb),
        "hd": (gc, kb, 1, kb),
        "hw": (gc, kb, kb, 1),
    }
    params = {"gc": gc, "in_channels": in_channels}
    keys = jax.random.split(key, 2 * len(shapes))
    for i, (name, shp) in enumerate(shapes.items()):
        fan_in = shp[1] * shp[2] * shp[3]  # depthwise: in_ch per group == 1
        scale = 1.0 / jnp.sqrt(jnp.float32(fan_in))
        params[f"w_{name}"] = scale * jax.random.normal(keys[2 * i], shp, jnp.float32)
        params[f"b_{name}"] = scale * jax.random.normal(keys[2 * i + 1], (gc,),
                                                        jnp.float32)
    return params


def efficient_dwconv3d(x, params, conv_dtype=jnp.float32):
    """Forward pass of EfficientDWConv3d.  x: (N, C, D, H, W) float32.

    conv_dtype: storage dtype for the conv branches inside the kernel; use
    jnp.bfloat16 on v6e/v7x (accumulation stays f32), keep f32 on v5e.
    """
    N, C, D, H, W = x.shape
    gc = params["gc"]
    Cc = 4 * gc
    n_id = C - Cc
    offsets, w_tab, bias = _build_fused_weights(params, W)
    groups = _group_offsets(offsets)

    x_id = x[:, :n_id]                                           # identity channels
    # (N, Cc, D, H, W) -> (N, D, H, W, Cc) -> fold (W, Cc) onto the lane axis.
    xc = jnp.transpose(x[:, n_id:], (0, 2, 3, 4, 1)).reshape(N, D, H, W * Cc)
    xc = xc.astype(conv_dtype)
    yf = fused_dwconv3d(xc, w_tab, bias, groups, Cc)             # (N, D, H, W*Cc)
    y = yf.reshape(N, D, H, W, Cc).transpose(0, 4, 1, 2, 3).astype(x.dtype)
    return jnp.concatenate((x_id, y), axis=1)


# ---------------------------------------------------------------------------
# Pure-JAX reference (per-branch lax depthwise conv) for correctness checking.
# ---------------------------------------------------------------------------
def _ref_dwconv3d(x, w, b, ksize):
    C = x.shape[1]
    pad = [(k // 2, k // 2) for k in ksize]
    out = jax.lax.conv_general_dilated(
        x, w[:, None],  # (C, 1, kd, kh, kw) == OIDHW with groups=C
        window_strides=(1, 1, 1), padding=pad,
        dimension_numbers=("NCDHW", "OIDHW", "NCDHW"),
        feature_group_count=C)
    return out + b[None, :, None, None, None]


def _ref_forward(x, params):
    C = x.shape[1]
    gc = params["gc"]
    n_id = C - 4 * gc
    parts = [
        x[:, :n_id],
        _ref_dwconv3d(x[:, n_id:n_id + gc],
                      params["w_htw"], params["b_htw"], (3, 3, 3)),
        _ref_dwconv3d(x[:, n_id + gc:n_id + 2 * gc],
                      params["w_wd"], params["b_wd"], (1, 7, 7)),
        _ref_dwconv3d(x[:, n_id + 2 * gc:n_id + 3 * gc],
                      params["w_hd"], params["b_hd"], (7, 1, 7)),
        _ref_dwconv3d(x[:, n_id + 3 * gc:n_id + 4 * gc],
                      params["w_hw"], params["b_hw"], (7, 7, 1)),
    ]
    return jnp.concatenate(parts, axis=1)


if __name__ == "__main__":
    key = jax.random.PRNGKey(0)
    k_x, k_p = jax.random.split(key)

    # Small NCDHW input: batch=2, channels=16 (gc = 16 * 0.125 = 2), D=H=W=8.
    N, C, D, H, W = 2, 16, 8, 8, 8
    x = jax.random.normal(k_x, (N, C, D, H, W), jnp.float32)
    params = init_params(k_p, in_channels=C)

    fwd = jax.jit(lambda xx: efficient_dwconv3d(xx, params))
    out = jax.block_until_ready(fwd(x))

    ref = jax.block_until_ready(_ref_forward(x, params))
    assert out.shape == (N, C, D, H, W), out.shape
    err = float(jnp.max(jnp.abs(out - ref)))
    assert err < 1e-3, err

    print("KERNEL_OK")
</pallas_src>

<mosaic_0001>
module attributes {stable_mosaic.version = 11 : i64} {
  func.func @_fused_dwconv3d_kernel(%arg0: i32, %arg1: memref<135x64xf32, #tpu.memory_space<vmem>>, %arg2: memref<1x64xf32, #tpu.memory_space<vmem>>, %arg3: memref<1x8x8x64xf32, #tpu.memory_space<vmem>>, %arg4: memref<1x8x8x64xf32, #tpu.memory_space<vmem>>, %arg5: memref<14x14x112xf32, #tpu.memory_space<vmem>>) attributes {dimension_semantics = [#tpu.dimension_semantics<parallel>], iteration_bounds = array<i64: 2>, scalar_prefetch = 0 : i64, scratch_operands = 1 : i64, tpu.core_type = #tpu.core_type<tc>, window_params = [{pipeline_mode = #tpu.pipeline_mode<synchronous>, transform_indices = @transform_0, window_bounds = array<i64: 135, 64>}, {pipeline_mode = #tpu.pipeline_mode<synchronous>, transform_indices = @transform_1, window_bounds = array<i64: 1, 64>}, {transform_indices = @transform_2, window_bounds = array<i64: 1, 8, 8, 64>}, {transform_indices = @transform_3, window_bounds = array<i64: 1, 8, 8, 64>}]} {
    %cst = arith.constant 0.000000e+00 : f32
    %0 = vector.broadcast %cst : f32 to vector<3x14x112xf32>
    %c0 = arith.constant 0 : index
    %c0_0 = arith.constant 0 : index
    %c0_1 = arith.constant 0 : index
    %1 = vector.load %arg5[%c0, %c0_0, %c0_1] : memref<14x14x112xf32, #tpu.memory_space<vmem>>, vector<3x14x112xf32>
    tpu.vector_store %arg5[%c0, %c0_0, %c0_1], %0 {strides = array<i32>} : memref<14x14x112xf32, #tpu.memory_space<vmem>>, vector<3x14x112xf32>,
    %c11 = arith.constant 11 : index
    %c0_2 = arith.constant 0 : index
    %c0_3 = arith.constant 0 : index
    %2 = vector.load %arg5[%c11, %c0_2, %c0_3] : memref<14x14x112xf32, #tpu.memory_space<vmem>>, vector<3x14x112xf32>
    tpu.vector_store %arg5[%c11, %c0_2, %c0_3], %0 {strides = array<i32>} : memref<14x14x112xf32, #tpu.memory_space<vmem>>, vector<3x14x112xf32>,
    %cst_4 = arith.constant 0.000000e+00 : f32
    %3 = vector.broadcast %cst_4 : f32 to vector<8x3x112xf32>
    %c3 = arith.constant 3 : index
    %c0_5 = arith.constant 0 : index
    %c0_6 = arith.constant 0 : index
    %4 = vector.load %arg5[%c3, %c0_5, %c0_6] : memref<14x14x112xf32, #tpu.memory_space<vmem>>, vector<8x3x112xf32>
    tpu.vector_store %arg5[%c3, %c0_5, %c0_6], %3 {strides = array<i32>} : memref<14x14x112xf32, #tpu.memory_space<vmem>>, vector<8x3x112xf32>,
    %c3_7 = arith.constant 3 : index
    %c11_8 = arith.constant 11 : index
    %c0_9 = arith.constant 0 : index
    %5 = vector.load %arg5[%c3_7, %c11_8, %c0_9] : memref<14x14x112xf32, #tpu.memory_space<vmem>>, vector<8x3x112xf32>
    tpu.vector_store %arg5[%c3_7, %c11_8, %c0_9], %3 {strides = array<i32>} : memref<14x14x112xf32, #tpu.memory_space<vmem>>, vector<8x3x112xf32>,
    %cst_10 = arith.constant 0.000000e+00 : f32
    %6 = vector.broadcast %cst_10 : f32 to vector<8x8x24xf32>
    %c3_11 = arith.constant 3 : index
    %c3_12 = arith.constant 3 : index
    %c0_13 = arith.constant 0 : index
    %7 = vector.load %arg5[%c3_11, %c3_12, %c0_13] : memref<14x14x112xf32, #tpu.memory_space<vmem>>, vector<8x8x24xf32>
    tpu.vector_store %arg5[%c3_11, %c3_12, %c0_13], %6 {strides = array<i32>} : memref<14x14x112xf32, #tpu.memory_space<vmem>>, vector<8x8x24xf32>,
    %c3_14 = arith.constant 3 : index
    %c3_15 = arith.constant 3 : index
    %c88 = arith.constant 88 : index
    %8 = vector.load %arg5[%c3_14, %c3_15, %c88] : memref<14x14x112xf32, #tpu.memory_space<vmem>>, vector<8x8x24xf32>
    tpu.vector_store %arg5[%c3_14, %c3_15, %c88], %6 {strides = array<i32>} : memref<14x14x112xf32, #tpu.memory_space<vmem>>, vector<8x8x24xf32>,
    %c0_16 = arith.constant 0 : index
    %c0_17 = arith.constant 0 : index
    %c0_18 = arith.constant 0 : index
    %c0_19 = arith.constant 0 : index
    %9 = vector.load %arg3[%c0_16, %c0_17, %c0_18, %c0_19] : memref<1x8x8x64xf32, #tpu.memory_space<vmem>>, vector<1x8x8x64xf32>
    %10 = vector.shape_cast %9 : vector<1x8x8x64xf32> to vector<8x8x64xf32>
    %c3_20 = arith.constant 3 : index
    %c3_21 = arith.constant 3 : index
    %c24 = arith.constant 24 : index
    %11 = vector.load %arg5[%c3_20, %c3_21, %c24] : memref<14x14x112xf32, #tpu.memory_space<vmem>>, vector<8x8x64xf32>
    tpu.vector_store %arg5[%c3_20, %c3_21, %c24], %10 {strides = array<i32>} : memref<14x14x112xf32, #tpu.memory_space<vmem>>, vector<8x8x64xf32>,
    %c0_22 = arith.constant 0 : index
    %c0_23 = arith.constant 0 : index
    %12 = vector.load %arg2[%c0_22, %c0_23] : memref<1x64xf32, #tpu.memory_space<vmem>>, vector<1x64xf32>
    %13 = vector.shape_cast %12 : vector<1x64xf32> to vector<1x64xf32>
    %14 = vector.broadcast %13 : vector<1x64xf32> to vector<8x64xf32>
    %cst_24 = arith.constant 0.000000e+00 : f32
    %15 = vector.broadcast %cst_24 : f32 to vector<8x64xf32>
    %c0_i32 = arith.constant 0 : i32
    %c8_i32 = arith.constant 8 : i32
    %16 = arith.addi %c0_i32, %c8_i32 : i32
    %c1_i32 = arith.constant 1 : i32
    scf.for %arg6 = %c0_i32 to %16 step %c1_i32  : i32 {
      %c1_i32_26 = arith.constant 1 : i32
      %17 = arith.muli %arg6, %c1_i32_26 : i32
      %c0_i32_27 = arith.constant 0 : i32
      %18 = arith.addi %c0_i32_27, %17 : i32
      %c0_i32_28 = arith.constant 0 : i32
      %19 = arith.addi %18, %c0_i32_28 : i32
      %20 = arith.index_cast %19 : i32 to index
      %c0_29 = arith.constant 0 : index
      %c0_30 = arith.constant 0 : index
      %21 = vector.load %arg5[%20, %c0_29, %c0_30] : memref<14x14x112xf32, #tpu.memory_space<vmem>>, vector<1x8x112xf32>
      %22 = vector.shape_cast %21 : vector<1x8x112xf32> to vector<8x112xf32>
      %c0_31 = arith.constant 0 : index
      %c0_32 = arith.constant 0 : index
      %23 = vector.load %arg1[%c0_31, %c0_32] : memref<135x64xf32, #tpu.memory_space<vmem>>, vector<1x64xf32>
      %24 = vector.extract_strided_slice %22 {offsets = [0, 24], sizes = [8, 64], strides = [1, 1]} : vector<8x112xf32> to vector<8x64xf32>
      %25 = vector.broadcast %23 : vector<1x64xf32> to vector<8x64xf32>
      %26 = arith.mulf %25, %24 : vector<8x64xf32>
      %27 = arith.addf %14, %26 : vector<8x64xf32>
      %c0_i32_33 = arith.constant 0 : i32
      %28 = arith.addi %18, %c0_i32_33 : i32
      %29 = arith.index_cast %28 : i32 to index
      %c1 = arith.constant 1 : index
      %c0_34 = arith.constant 0 : index
      %30 = vector.load %arg5[%29, %c1, %c0_34] : memref<14x14x112xf32, #tpu.memory_space<vmem>>, vector<1x8x112xf32>
      %31 = vector.shape_cast %30 : vector<1x8x112xf32> to vector<8x112xf32>
      %c1_35 = arith.constant 1 : index
      %c0_36 = arith.constant 0 : index
      %32 = vector.load %arg1[%c1_35, %c0_36] : memref<135x64xf32, #tpu.memory_space<vmem>>, vector<1x64xf32>
      %33 = vector.extract_strided_slice %31 {offsets = [0, 24], sizes = [8, 64], strides = [1, 1]} : vector<8x112xf32> to vector<8x64xf32>
      %34 = vector.broadcast %32 : vector<1x64xf32> to vector<8x64xf32>
      %35 = arith.mulf %34, %33 : vector<8x64xf32>
      %36 = arith.addf %15, %35 : vector<8x64xf32>
      %c0_i32_37 = arith.constant 0 : i32
      %37 = arith.addi %18, %c0_i32_37 : i32
      %38 = arith.index_cast %37 : i32 to index
      %c2 = arith.constant 2 : index
      %c0_38 = arith.constant 0 : index
      %39 = vector.load %arg5[%38, %c2, %c0_38] : memref<14x14x112xf32, #tpu.memory_space<vmem>>, vector<1x8x112xf32>
      %40 = vector.shape_cast %39 : vector<1x8x112xf32> to vector<8x112xf32>
      %c2_39 = arith.constant 2 : index
      %c0_40 = arith.constant 0 : index
      %41 = vector.load %arg1[%c2_39, %c0_40] : memref<135x64xf32, #tpu.memory_space<vmem>>, vector<1x64xf32>
      %42 = vector.extract_strided_slice %40 {offsets = [0, 24], sizes = [8, 64], strides = [1, 1]} : vector<8x112xf32> to vector<8x64xf32>
      %43 = vector.broadcast %41 : vector<1x64xf32> to vector<8x64xf32>
      %44 = arith.mulf %43, %42 : vector<8x64xf32>
      %45 = arith.addf %15, %44 : vector<8x64xf32>
      %c0_i32_41 = arith.constant 0 : i32
      %46 = arith.addi %18, %c0_i32_41 : i32
      %47 = arith.index_cast %46 : i32 to index
      %c3_42 = arith.constant 3 : index
      %c0_43 = arith.constant 0 : index
      %48 = vector.load %arg5[%47, %c3_42, %c0_43] : memref<14x14x112xf32, #tpu.memory_space<vmem>>, vector<1x8x112xf32>
      %49 = vector.shape_cast %48 : vector<1x8x112xf32> to vector<8x112xf32>
      %c3_44 = arith.constant 3 : index
      %c0_45 = arith.constant 0 : index
      %50 = vector.load %arg1[%c3_44, %c0_45] : memref<135x64xf32, #tpu.memory_space<vmem>>, vector<7x64xf32>
      %51 = vector.extract_strided_slice %49 {offsets = [0, 0], sizes = [8, 64], strides = [1, 1]} : vector<8x112xf32> to vector<8x64xf32>
      %52 = vector.extract_strided_slice %50 {offsets = [0, 0], sizes = [1, 64], strides = [1, 1]} : vector<7x64xf32> to vector<1x64xf32>
      %53 = vector.broadcast %52 : vector<1x64xf32> to vector<8x64xf32>
      %54 = arith.mulf %53, %51 : vector<8x64xf32>
      %55 = arith.addf %15, %54 : vector<8x64xf32>
      %56 = vector.extract_strided_slice %49 {offsets = [0, 8], sizes = [8, 64], strides = [1, 1]} : vector<8x112xf32> to vector<8x64xf32>
      %57 = vector.extract_strided_slice %50 {offsets = [1, 0], sizes = [1, 64], strides = [1, 1]} : vector<7x64xf32> to vector<1x64xf32>
      %58 = vector.broadcast %57 : vector<1x64xf32> to vector<8x64xf32>
      %59 = arith.mulf %58, %56 : vector<8x64xf32>
      %60 = arith.addf %27, %59 : vector<8x64xf32>
      %61 = vector.extract_strided_slice %49 {offsets = [0, 16], sizes = [8, 64], strides = [1, 1]} : vector<8x112xf32> to vector<8x64xf32>
      %62 = vector.extract_strided_slice %50 {offsets = [2, 0], sizes = [1, 64], strides = [1, 1]} : vector<7x64xf32> to vector<1x64xf32>
      %63 = vector.broadcast %62 : vector<1x64xf32> to vector<8x64xf32>
      %64 = arith.mulf %63, %61 : vector<8x64xf32>
      %65 = arith.addf %36, %64 : vector<8x64xf32>
      %66 = vector.extract_strided_slice %49 {offsets = [0, 24], sizes = [8, 64], strides = [1, 1]} : vector<8x112xf32> to vector<8x64xf32>
      %67 = vector.extract_strided_slice %50 {offsets = [3, 0], sizes = [1, 64], strides = [1, 1]} : vector<7x64xf32> to vector<1x64xf32>
      %68 = vector.broadcast %67 : vector<1x64xf32> to vector<8x64xf32>
      %69 = arith.mulf %68, %66 : vector<8x64xf32>
      %70 = arith.addf %45, %69 : vector<8x64xf32>
      %71 = vector.extract_strided_slice %49 {offsets = [0, 32], sizes = [8, 64], strides = [1, 1]} : vector<8x112xf32> to vector<8x64xf32>
      %72 = vector.extract_strided_slice %50 {offsets = [4, 0], sizes = [1, 64], strides = [1, 1]} : vector<7x64xf32> to vector<1x64xf32>
      %73 = vector.broadcast %72 : vector<1x64xf32> to vector<8x64xf32>
      %74 = arith.mulf %73, %71 : vector<8x64xf32>
      %75 = arith.addf %55, %74 : vector<8x64xf32>
      %76 = vector.extract_strided_slice %49 {offsets = [0, 40], sizes = [8, 64], strides = [1, 1]} : vector<8x112xf32> to vector<8x64xf32>
      %77 = vector.extract_strided_slice %50 {offsets = [5, 0], sizes = [1, 64], strides = [1, 1]} : vector<7x64xf32> to vector<1x64xf32>
      %78 = vector.broadcast %77 : vector<1x64xf32> to vector<8x64xf32>
      %79 = arith.mulf %78, %76 : vector<8x64xf32>
      %80 = arith.addf %60, %79 : vector<8x64xf32>
      %81 = vector.extract_strided_slice %49 {offsets = [0, 48], sizes = [8, 64], strides = [1, 1]} : vector<8x112xf32> to vector<8x64xf32>
      %82 = vector.extract_strided_slice %50 {offsets = [6, 0], sizes = [1, 64], strides = [1, 1]} : vector<7x64xf32> to vector<1x64xf32>
      %83 = vector.broadcast %82 : vector<1x64xf32> to vector<8x64xf32>
      %84 = arith.mulf %83, %81 : vector<8x64xf32>
      %85 = arith.addf %65, %84 : vector<8x64xf32>
      %c0_i32_46 = arith.constant 0 : i32
      %86 = arith.addi %18, %c0_i32_46 : i32
      %87 = arith.index_cast %86 : i32 to index
      %c4 = arith.constant 4 : index
      %c0_47 = arith.constant 0 : index
      %88 = vector.load %arg5[%87, %c4, %c0_47] : memref<14x14x112xf32, #tpu.memory_space<vmem>>, vector<1x8x112xf32>
      %89 = vector.shape_cast %88 : vector<1x8x112xf32> to vector<8x112xf32>
      %c10 = arith.constant 10 : index
      %c0_48 = arith.constant 0 : index
      %90 = vector.load %arg1[%c10, %c0_48] : memref<135x64xf32, #tpu.memory_space<vmem>>, vector<1x64xf32>
      %91 = vector.extract_strided_slice %89 {offsets = [0, 24], sizes = [8, 64], strides = [1, 1]} : vector<8x112xf32> to vector<8x64xf32>
      %92 = vector.broadcast %90 : vector<1x64xf32> to vector<8x64xf32>
      %93 = arith.mulf %92, %91 : vector<8x64xf32>
      %94 = arith.addf %70, %93 : vector<8x64xf32>
      %c0_i32_49 = arith.constant 0 : i32
      %95 = arith.addi %18, %c0_i32_49 : i32
      %96 = arith.index_cast %95 : i32 to index
      %c5 = arith.constant 5 : index
      %c0_50 = arith.constant 0 : index
      %97 = vector.load %arg5[%96, %c5, %c0_50] : memref<14x14x112xf32, #tpu.memory_space<vmem>>, vector<1x8x112xf32>
      %98 = vector.shape_cast %97 : vector<1x8x112xf32> to vector<8x112xf32>
      %c11_51 = arith.constant 11 : index
      %c0_52 = arith.constant 0 : index
      %99 = vector.load %arg1[%c11_51, %c0_52] : memref<135x64xf32, #tpu.memory_space<vmem>>, vector<1x64xf32>
      %100 = vector.extract_strided_slice %98 {offsets = [0, 24], sizes = [8, 64], strides = [1, 1]} : vector<8x112xf32> to vector<8x64xf32>
      %101 = vector.broadcast %99 : vector<1x64xf32> to vector<8x64xf32>
      %102 = arith.mulf %101, %100 : vector<8x64xf32>
      %103 = arith.addf %75, %102 : vector<8x64xf32>
      %c0_i32_53 = arith.constant 0 : i32
      %104 = arith.addi %18, %c0_i32_53 : i32
      %105 = arith.index_cast %104 : i32 to index
      %c6 = arith.constant 6 : index
      %c0_54 = arith.constant 0 : index
      %106 = vector.load %arg5[%105, %c6, %c0_54] : memref<14x14x112xf32, #tpu.memory_space<vmem>>, vector<1x8x112xf32>
      %107 = vector.shape_cast %106 : vector<1x8x112xf32> to vector<8x112xf32>
      %c12 = arith.constant 12 : index
      %c0_55 = arith.constant 0 : index
      %108 = vector.load %arg1[%c12, %c0_55] : memref<135x64xf32, #tpu.memory_space<vmem>>, vector<1x64xf32>
      %109 = vector.extract_strided_slice %107 {offsets = [0, 24], sizes = [8, 64], strides = [1, 1]} : vector<8x112xf32> to vector<8x64xf32>
      %110 = vector.broadcast %108 : vector<1x64xf32> to vector<8x64xf32>
      %111 = arith.mulf %110, %109 : vector<8x64xf32>
      %112 = arith.addf %80, %111 : vector<8x64xf32>
      %c1_i32_56 = arith.constant 1 : i32
      %113 = arith.addi %18, %c1_i32_56 : i32
      %114 = arith.index_cast %113 : i32 to index
      %c0_57 = arith.constant 0 : index
      %c0_58 = arith.constant 0 : index
      %115 = vector.load %arg5[%114, %c0_57, %c0_58] : memref<14x14x112xf32, #tpu.memory_space<vmem>>, vector<1x8x112xf32>
      %116 = vector.shape_cast %115 : vector<1x8x112xf32> to vector<8x112xf32>
      %c13 = arith.constant 13 : index
      %c0_59 = arith.constant 0 : index
      %117 = vector.load %arg1[%c13, %c0_59] : memref<135x64xf32, #tpu.memory_space<vmem>>, vector<1x64xf32>
      %118 = vector.extract_strided_slice %116 {offsets = [0, 24], sizes = [8, 64], strides = [1, 1]} : vector<8x112xf32> to vector<8x64xf32>
      %119 = vector.broadcast %117 : vector<1x64xf32> to vector<8x64xf32>
      %120 = arith.mulf %119, %118 : vector<8x64xf32>
      %121 = arith.addf %85, %120 : vector<8x64xf32>
      %c1_i32_60 = arith.constant 1 : i32
      %122 = arith.addi %18, %c1_i32_60 : i32
      %123 = arith.index_cast %122 : i32 to index
      %c1_61 = arith.constant 1 : index
      %c0_62 = arith.constant 0 : index
      %124 = vector.load %arg5[%123, %c1_61, %c0_62] : memref<14x14x112xf32, #tpu.memory_space<vmem>>, vector<1x8x112xf32>
      %125 = vector.shape_cast %124 : vector<1x8x112xf32> to vector<8x112xf32>
      %c14 = arith.constant 14 : index
      %c0_63 = arith.constant 0 : index
      %126 = vector.load %arg1[%c14, %c0_63] : memref<135x64xf32, #tpu.memory_space<vmem>>, vector<1x64xf32>
      %127 = vector.extract_strided_slice %125 {offsets = [0, 24], sizes = [8, 64], strides = [1, 1]} : vector<8x112xf32> to vector<8x64xf32>
      %128 = vector.broadcast %126 : vector<1x64xf32> to vector<8x64xf32>
      %129 = arith.mulf %128, %127 : vector<8x64xf32>
      %130 = arith.addf %94, %129 : vector<8x64xf32>
      %c1_i32_64 = arith.constant 1 : i32
      %131 = arith.addi %18, %c1_i32_64 : i32
      %132 = arith.index_cast %131 : i32 to index
      %c2_65 = arith.constant 2 : index
      %c0_66 = arith.constant 0 : index
      %133 = vector.load %arg5[%132, %c2_65, %c0_66] : memref<14x14x112xf32, #tpu.memory_space<vmem>>, vector<1x8x112xf32>
      %134 = vector.shape_cast %133 : vector<1x8x112xf32> to vector<8x112xf32>
      %c15 = arith.constant 15 : index
      %c0_67 = arith.constant 0 : index
      %135 = vector.load %arg1[%c15, %c0_67] : memref<135x64xf32, #tpu.memory_space<vmem>>, vector<1x64xf32>
      %136 = vector.extract_strided_slice %134 {offsets = [0, 24], sizes = [8, 64], strides = [1, 1]} : vector<8x112xf32> to vector<8x64xf32>
      %137 = vector.broadcast %135 : vector<1x64xf32> to vector<8x64xf32>
      %138 = arith.mulf %137, %136 : vector<8x64xf32>
      %139 = arith.addf %103, %138 : vector<8x64xf32>
      %c1_i32_68 = arith.constant 1 : i32
      %140 = arith.addi %18, %c1_i32_68 : i32
      %141 = arith.index_cast %140 : i32 to index
      %c3_69 = arith.constant 3 : index
      %c0_70 = arith.constant 0 : index
      %142 = vector.load %arg5[%141, %c3_69, %c0_70] : memref<14x14x112xf32, #tpu.memory_space<vmem>>, vector<1x8x112xf32>
      %143 = vector.shape_cast %142 : vector<1x8x112xf32> to vector<8x112xf32>
      %c16 = arith.constant 16 : index
      %c0_71 = arith.constant 0 : index
      %144 = vector.load %arg1[%c16, %c0_71] : memref<135x64xf32, #tpu.memory_space<vmem>>, vector<7x64xf32>
      %145 = vector.extract_strided_slice %143 {offsets = [0, 0], sizes = [8, 64], strides = [1, 1]} : vector<8x112xf32> to vector<8x64xf32>
      %146 = vector.extract_strided_slice %144 {offsets = [0, 0], sizes = [1, 64], strides = [1, 1]} : vector<7x64xf32> to vector<1x64xf32>
      %147 = vector.broadcast %146 : vector<1x64xf32> to vector<8x64xf32>
      %148 = arith.mulf %147, %145 : vector<8x64xf32>
      %149 = arith.addf %112, %148 : vector<8x64xf32>
      %150 = vector.extract_strided_slice %143 {offsets = [0, 8], sizes = [8, 64], strides = [1, 1]} : vector<8x112xf32> to vector<8x64xf32>
      %151 = vector.extract_strided_slice %144 {offsets = [1, 0], sizes = [1, 64], strides = [1, 1]} : vector<7x64xf32> to vector<1x64xf32>
      %152 = vector.broadcast %151 : vector<1x64xf32> to vector<8x64xf32>
      %153 = arith.mulf %152, %150 : vector<8x64xf32>
      %154 = arith.addf %121, %153 : vector<8x64xf32>
      %155 = vector.extract_strided_slice %143 {offsets = [0, 16], sizes = [8, 64], strides = [1, 1]} : vector<8x112xf32> to vector<8x64xf32>
      %156 = vector.extract_strided_slice %144 {offsets = [2, 0], sizes = [1, 64], strides = [1, 1]} : vector<7x64xf32> to vector<1x64xf32>
      %157 = vector.broadcast %156 : vector<1x64xf32> to vector<8x64xf32>
      %158 = arith.mulf %157, %155 : vector<8x64xf32>
      %159 = arith.addf %130, %158 : vector<8x64xf32>
      %160 = vector.extract_strided_slice %143 {offsets = [0, 24], sizes = [8, 64], strides = [1, 1]} : vector<8x112xf32> to vector<8x64xf32>
      %161 = vector.extract_strided_slice %144 {offsets = [3, 0], sizes = [1, 64], strides = [1, 1]} : vector<7x64xf32> to vector<1x64xf32>
      %162 = vector.broadcast %161 : vector<1x64xf32> to vector<8x64xf32>
      %163 = arith.mulf %162, %160 : vector<8x64xf32>
      %164 = arith.addf %139, %163 : vector<8x64xf32>
      %165 = vector.extract_strided_slice %143 {offsets = [0, 32], sizes = [8, 64], strides = [1, 1]} : vector<8x112xf32> to vector<8x64xf32>
      %166 = vector.extract_strided_slice %144 {offsets = [4, 0], sizes = [1, 64], strides = [1, 1]} : vector<7x64xf32> to vector<1x64xf32>
      %167 = vector.broadcast %166 : vector<1x64xf32> to vector<8x64xf32>
      %168 = arith.mulf %167, %165 : vector<8x64xf32>
      %169 = arith.addf %149, %168 : vector<8x64xf32>
      %170 = vector.extract_strided_slice %143 {offsets = [0, 40], sizes = [8, 64], strides = [1, 1]} : vector<8x112xf32> to vector<8x64xf32>
      %171 = vector.extract_strided_slice %144 {offsets = [5, 0], sizes = [1, 64], strides = [1, 1]} : vector<7x64xf32> to vector<1x64xf32>
      %172 = vector.broadcast %171 : vector<1x64xf32> to vector<8x64xf32>
      %173 = arith.mulf %172, %170 : vector<8x64xf32>
      %174 = arith.addf %154, %173 : vector<8x64xf32>
      %175 = vector.extract_strided_slice %143 {offsets = [0, 48], sizes = [8, 64], strides = [1, 1]} : vector<8x112xf32> to vector<8x64xf32>
      %176 = vector.extract_strided_slice %144 {offsets = [6, 0], sizes = [1, 64], strides = [1, 1]} : vector<7x64xf32> to vector<1x64xf32>
      %177 = vector.broadcast %176 : vector<1x64xf32> to vector<8x64xf32>
      %178 = arith.mulf %177, %175 : vector<8x64xf32>
      %179 = arith.addf %159, %178 : vector<8x64xf32>
      %c1_i32_72 = arith.constant 1 : i32
      %180 = arith.addi %18, %c1_i32_72 : i32
      %181 = arith.index_cast %180 : i32 to index
      %c4_73 = arith.constant 4 : index
      %c0_74 = arith.constant 0 : index
      %182 = vector.load %arg5[%181, %c4_73, %c0_74] : memref<14x14x112xf32, #tpu.memory_space<vmem>>, vector<1x8x112xf32>
      %183 = vector.shape_cast %182 : vector<1x8x112xf32> to vector<8x112xf32>
      %c23 = arith.constant 23 : index
      %c0_75 = arith.constant 0 : index
      %184 = vector.load %arg1[%c23, %c0_75] : memref<135x64xf32, #tpu.memory_space<vmem>>, vector<1x64xf32>
      %185 = vector.extract_strided_slice %183 {offsets = [0, 24], sizes = [8, 64], strides = [1, 1]} : vector<8x112xf32> to vector<8x64xf32>
      %186 = vector.broadcast %184 : vector<1x64xf32> to vector<8x64xf32>
      %187 = arith.mulf %186, %185 : vector<8x64xf32>
      %188 = arith.addf %164, %187 : vector<8x64xf32>
      %c1_i32_76 = arith.constant 1 : i32
      %189 = arith.addi %18, %c1_i32_76 : i32
      %190 = arith.index_cast %189 : i32 to index
      %c5_77 = arith.constant 5 : index
      %c0_78 = arith.constant 0 : index
      %191 = vector.load %arg5[%190, %c5_77, %c0_78] : memref<14x14x112xf32, #tpu.memory_space<vmem>>, vector<1x8x112xf32>
      %192 = vector.shape_cast %191 : vector<1x8x112xf32> to vector<8x112xf32>
      %c24_79 = arith.constant 24 : index
      %c0_80 = arith.constant 0 : index
      %193 = vector.load %arg1[%c24_79, %c0_80] : memref<135x64xf32, #tpu.memory_space<vmem>>, vector<1x64xf32>
      %194 = vector.extract_strided_slice %192 {offsets = [0, 24], sizes = [8, 64], strides = [1, 1]} : vector<8x112xf32> to vector<8x64xf32>
      %195 = vector.broadcast %193 : vector<1x64xf32> to vector<8x64xf32>
      %196 = arith.mulf %195, %194 : vector<8x64xf32>
      %197 = arith.addf %169, %196 : vector<8x64xf32>
      %c1_i32_81 = arith.constant 1 : i32
      %198 = arith.addi %18, %c1_i32_81 : i32
      %199 = arith.index_cast %198 : i32 to index
      %c6_82 = arith.constant 6 : index
      %c0_83 = arith.constant 0 : index
      %200 = vector.load %arg5[%199, %c6_82, %c0_83] : memref<14x14x112xf32, #tpu.memory_space<vmem>>, vector<1x8x112xf32>
      %201 = vector.shape_cast %200 : vector<1x8x112xf32> to vector<8x112xf32>
      %c25 = arith.constant 25 : index
      %c0_84 = arith.constant 0 : index
      %202 = vector.load %arg1[%c25, %c0_84] : memref<135x64xf32, #tpu.memory_space<vmem>>, vector<1x64xf32>
      %203 = vector.extract_strided_slice %201 {offsets = [0, 24], sizes = [8, 64], strides = [1, 1]} : vector<8x112xf32> to vector<8x64xf32>
      %204 = vector.broadcast %202 : vector<1x64xf32> to vector<8x64xf32>
      %205 = arith.mulf %204, %203 : vector<8x64xf32>
      %206 = arith.addf %174, %205 : vector<8x64xf32>
      %c2_i32 = arith.constant 2 : i32
      %207 = arith.addi %18, %c2_i32 : i32
      %208 = arith.index_cast %207 : i32 to index
      %c0_85 = arith.constant 0 : index
      %c0_86 = arith.constant 0 : index
      %209 = vector.load %arg5[%208, %c0_85, %c0_86] : memref<14x14x112xf32, #tpu.memory_space<vmem>>, vector<1x8x112xf32>
      %210 = vector.shape_cast %209 : vector<1x8x112xf32> to vector<8x112xf32>
      %c26 = arith.constant 26 : index
      %c0_87 = arith.constant 0 : index
      %211 = vector.load %arg1[%c26, %c0_87] : memref<135x64xf32, #tpu.memory_space<vmem>>, vector<1x64xf32>
      %212 = vector.extract_strided_slice %210 {offsets = [0, 24], sizes = [8, 64], strides = [1, 1]} : vector<8x112xf32> to vector<8x64xf32>
      %213 = vector.broadcast %211 : vector<1x64xf32> to vector<8x64xf32>
      %214 = arith.mulf %213, %212 : vector<8x64xf32>
      %215 = arith.addf %179, %214 : vector<8x64xf32>
      %c2_i32_88 = arith.constant 2 : i32
      %216 = arith.addi %18, %c2_i32_88 : i32
      %217 = arith.index_cast %216 : i32 to index
      %c1_89 = arith.constant 1 : index
      %c0_90 = arith.constant 0 : index
      %218 = vector.load %arg5[%217, %c1_89, %c0_90] : memref<14x14x112xf32, #tpu.memory_space<vmem>>, vector<1x8x112xf32>
      %219 = vector.shape_cast %218 : vector<1x8x112xf32> to vector<8x112xf32>
      %c27 = arith.constant 27 : index
      %c0_91 = arith.constant 0 : index
      %220 = vector.load %arg1[%c27, %c0_91] : memref<135x64xf32, #tpu.memory_space<vmem>>, vector<1x64xf32>
      %221 = vector.extract_strided_slice %219 {offsets = [0, 24], sizes = [8, 64], strides = [1, 1]} : vector<8x112xf32> to vector<8x64xf32>
      %222 = vector.broadcast %220 : vector<1x64xf32> to vector<8x64xf32>
      %223 = arith.mulf %222, %221 : vector<8x64xf32>
      %224 = arith.addf %188, %223 : vector<8x64xf32>
      %c2_i32_92 = arith.constant 2 : i32
      %225 = arith.addi %18, %c2_i32_92 : i32
      %226 = arith.index_cast %225 : i32 to index
      %c2_93 = arith.constant 2 : index
      %c0_94 = arith.constant 0 : index
      %227 = vector.load %arg5[%226, %c2_93, %c0_94] : memref<14x14x112xf32, #tpu.memory_space<vmem>>, vector<1x8x112xf32>
      %228 = vector.shape_cast %227 : vector<1x8x112xf32> to vector<8x112xf32>
      %c28 = arith.constant 28 : index
      %c0_95 = arith.constant 0 : index
      %229 = vector.load %arg1[%c28, %c0_95] : memref<135x64xf32, #tpu.memory_space<vmem>>, vector<3x64xf32>
      %230 = vector.extract_strided_slice %228 {offsets = [0, 16], sizes = [8, 64], strides = [1, 1]} : vector<8x112xf32> to vector<8x64xf32>
      %231 = vector.extract_strided_slice %229 {offsets = [0, 0], sizes = [1, 64], strides = [1, 1]} : vector<3x64xf32> to vector<1x64xf32>
      %232 = vector.broadcast %231 : vector<1x64xf32> to vector<8x64xf32>
      %233 = arith.mulf %232, %230 : vector<8x64xf32>
      %234 = arith.addf %197, %233 : vector<8x64xf32>
      %235 = vector.extract_strided_slice %228 {offsets = [0, 24], sizes = [8, 64], strides = [1, 1]} : vector<8x112xf32> to vector<8x64xf32>
      %236 = vector.extract_strided_slice %229 {offsets = [1, 0], sizes = [1, 64], strides = [1, 1]} : vector<3x64xf32> to vector<1x64xf32>
      %237 = vector.broadcast %236 : vector<1x64xf32> to vector<8x64xf32>
      %238 = arith.mulf %237, %235 : vector<8x64xf32>
      %239 = arith.addf %206, %238 : vector<8x64xf32>
      %240 = vector.extract_strided_slice %228 {offsets = [0, 32], sizes = [8, 64], strides = [1, 1]} : vector<8x112xf32> to vector<8x64xf32>
      %241 = vector.extract_strided_slice %229 {offsets = [2, 0], sizes = [1, 64], strides = [1, 1]} : vector<3x64xf32> to vector<1x64xf32>
      %242 = vector.broadcast %241 : vector<1x64xf32> to vector<8x64xf32>
      %243 = arith.mulf %242, %240 : vector<8x64xf32>
      %244 = arith.addf %215, %243 : vector<8x64xf32>
      %c2_i32_96 = arith.constant 2 : i32
      %245 = arith.addi %18, %c2_i32_96 : i32
      %246 = arith.index_cast %245 : i32 to index
      %c3_97 = arith.constant 3 : index
      %c0_98 = arith.constant 0 : index
      %247 = vector.load %arg5[%246, %c3_97, %c0_98] : memref<14x14x112xf32, #tpu.memory_space<vmem>>, vector<1x8x112xf32>
      %248 = vector.shape_cast %247 : vector<1x8x112xf32> to vector<8x112xf32>
      %c31 = arith.constant 31 : index
      %c0_99 = arith.constant 0 : index
      %249 = vector.load %arg1[%c31, %c0_99] : memref<135x64xf32, #tpu.memory_space<vmem>>, vector<7x64xf32>
      %250 = vector.extract_strided_slice %248 {offsets = [0, 0], sizes = [8, 64], strides = [1, 1]} : vector<8x112xf32> to vector<8x64xf32>
      %251 = vector.extract_strided_slice %249 {offsets = [0, 0], sizes = [1, 64], strides = [1, 1]} : vector<7x64xf32> to vector<1x64xf32>
      %252 = vector.broadcast %251 : vector<1x64xf32> to vector<8x64xf32>
      %253 = arith.mulf %252, %250 : vector<8x64xf32>
      %254 = arith.addf %224, %253 : vector<8x64xf32>
      %255 = vector.extract_strided_slice %248 {offsets = [0, 8], sizes = [8, 64], strides = [1, 1]} : vector<8x112xf32> to vector<8x64xf32>
      %256 = vector.extract_strided_slice %249 {offsets = [1, 0], sizes = [1, 64], strides = [1, 1]} : vector<7x64xf32> to vector<1x64xf32>
      %257 = vector.broadcast %256 : vector<1x64xf32> to vector<8x64xf32>
      %258 = arith.mulf %257, %255 : vector<8x64xf32>
      %259 = arith.addf %234, %258 : vector<8x64xf32>
      %260 = vector.extract_strided_slice %248 {offsets = [0, 16], sizes = [8, 64], strides = [1, 1]} : vector<8x112xf32> to vector<8x64xf32>
      %261 = vector.extract_strided_slice %249 {offsets = [2, 0], sizes = [1, 64], strides = [1, 1]} : vector<7x64xf32> to vector<1x64xf32>
      %262 = vector.broadcast %261 : vector<1x64xf32> to vector<8x64xf32>
      %263 = arith.mulf %262, %260 : vector<8x64xf32>
      %264 = arith.addf %239, %263 : vector<8x64xf32>
      %265 = vector.extract_strided_slice %248 {offsets = [0, 24], sizes = [8, 64], strides = [1, 1]} : vector<8x112xf32> to vector<8x64xf32>
      %266 = vector.extract_strided_slice %249 {offsets = [3, 0], sizes = [1, 64], strides = [1, 1]} : vector<7x64xf32> to vector<1x64xf32>
      %267 = vector.broadcast %266 : vector<1x64xf32> to vector<8x64xf32>
      %268 = arith.mulf %267, %265 : vector<8x64xf32>
      %269 = arith.addf %244, %268 : vector<8x64xf32>
      %270 = vector.extract_strided_slice %248 {offsets = [0, 32], sizes = [8, 64], strides = [1, 1]} : vector<8x112xf32> to vector<8x64xf32>
      %271 = vector.extract_strided_slice %249 {offsets = [4, 0], sizes = [1, 64], strides = [1, 1]} : vector<7x64xf32> to vector<1x64xf32>
      %272 = vector.broadcast %271 : vector<1x64xf32> to vector<8x64xf32>
      %273 = arith.mulf %272, %270 : vector<8x64xf32>
      %274 = arith.addf %254, %273 : vector<8x64xf32>
      %275 = vector.extract_strided_slice %248 {offsets = [0, 40], sizes = [8, 64], strides = [1, 1]} : vector<8x112xf32> to vector<8x64xf32>
      %276 = vector.extract_strided_slice %249 {offsets = [5, 0], sizes = [1, 64], strides = [1, 1]} : vector<7x64xf32> to vector<1x64xf32>
      %277 = vector.broadcast %276 : vector<1x64xf32> to vector<8x64xf32>
      %278 = arith.mulf %277, %275 : vector<8x64xf32>
      %279 = arith.addf %259, %278 : vector<8x64xf32>
      %280 = vector.extract_strided_slice %248 {offsets = [0, 48], sizes = [8, 64], strides = [1, 1]} : vector<8x112xf32> to vector<8x64xf32>
      %281 = vector.extract_strided_slice %249 {offsets = [6, 0], sizes = [1, 64], strides = [1, 1]} : vector<7x64xf32> to vector<1x64xf32>
      %282 = vector.broadcast %281 : vector<1x64xf32> to vector<8x64xf32>
      %283 = arith.mulf %282, %280 : vector<8x64xf32>
      %284 = arith.addf %264, %283 : vector<8x64xf32>
      %c2_i32_100 = arith.constant 2 : i32
      %285 = arith.addi %18, %c2_i32_100 : i32
      %286 = arith.index_cast %285 : i32 to index
      %c4_101 = arith.constant 4 : index
      %c0_102 = arith.constant 0 : index
      %287 = vector.load %arg5[%286, %c4_101, %c0_102] : memref<14x14x112xf32, #tpu.memory_space<vmem>>, vector<1x8x112xf32>
      %288 = vector.shape_cast %287 : vector<1x8x112xf32> to vector<8x112xf32>
      %c38 = arith.constant 38 : index
      %c0_103 = arith.constant 0 : index
      %289 = vector.load %arg1[%c38, %c0_103] : memref<135x64xf32, #tpu.memory_space<vmem>>, vector<3x64xf32>
      %290 = vector.extract_strided_slice %288 {offsets = [0, 16], sizes = [8, 64], strides = [1, 1]} : vector<8x112xf32> to vector<8x64xf32>
      %291 = vector.extract_strided_slice %289 {offsets = [0, 0], sizes = [1, 64], strides = [1, 1]} : vector<3x64xf32> to vector<1x64xf32>
      %292 = vector.broadcast %291 : vector<1x64xf32> to vector<8x64xf32>
      %293 = arith.mulf %292, %290 : vector<8x64xf32>
      %294 = arith.addf %269, %293 : vector<8x64xf32>
      %295 = vector.extract_strided_slice %288 {offsets = [0, 24], sizes = [8, 64], strides = [1, 1]} : vector<8x112xf32> to vector<8x64xf32>
      %296 = vector.extract_strided_slice %289 {offsets = [1, 0], sizes = [1, 64], strides = [1, 1]} : vector<3x64xf32> to vector<1x64xf32>
      %297 = vector.broadcast %296 : vector<1x64xf32> to vector<8x64xf32>
      %298 = arith.mulf %297, %295 : vector<8x64xf32>
      %299 = arith.addf %274, %298 : vector<8x64xf32>
      %300 = vector.extract_strided_slice %288 {offsets = [0, 32], sizes = [8, 64], strides = [1, 1]} : vector<8x112xf32> to vector<8x64xf32>
      %301 = vector.extract_strided_slice %289 {offsets = [2, 0], sizes = [1, 64], strides = [1, 1]} : vector<3x64xf32> to vector<1x64xf32>
      %302 = vector.broadcast %301 : vector<1x64xf32> to vector<8x64xf32>
      %303 = arith.mulf %302, %300 : vector<8x64xf32>
      %304 = arith.addf %279, %303 : vector<8x64xf32>
      %c2_i32_104 = arith.constant 2 : i32
      %305 = arith.addi %18, %c2_i32_104 : i32
      %306 = arith.index_cast %305 : i32 to index
      %c5_105 = arith.constant 5 : index
      %c0_106 = arith.constant 0 : index
      %307 = vector.load %arg5[%306, %c5_105, %c0_106] : memref<14x14x112xf32, #tpu.memory_space<vmem>>, vector<1x8x112xf32>
      %308 = vector.shape_cast %307 : vector<1x8x112xf32> to vector<8x112xf32>
      %c41 = arith.constant 41 : index
      %c0_107 = arith.constant 0 : index
      %309 = vector.load %arg1[%c41, %c0_107] : memref<135x64xf32, #tpu.memory_space<vmem>>, vector<1x64xf32>
      %310 = vector.extract_strided_slice %308 {offsets = [0, 24], sizes = [8, 64], strides = [1, 1]} : vector<8x112xf32> to vector<8x64xf32>
      %311 = vector.broadcast %309 : vector<1x64xf32> to vector<8x64xf32>
      %312 = arith.mulf %311, %310 : vector<8x64xf32>
      %313 = arith.addf %284, %312 : vector<8x64xf32>
      %c2_i32_108 = arith.constant 2 : i32
      %314 = arith.addi %18, %c2_i32_108 : i32
      %315 = arith.index_cast %314 : i32 to index
      %c6_109 = arith.constant 6 : index
      %c0_110 = arith.constant 0 : index
      %316 = vector.load %arg5[%315, %c6_109, %c0_110] : memref<14x14x112xf32, #tpu.memory_space<vmem>>, vector<1x8x112xf32>
      %317 = vector.shape_cast %316 : vector<1x8x112xf32> to vector<8x112xf32>
      %c42 = arith.constant 42 : index
      %c0_111 = arith.constant 0 : index
      %318 = vector.load %arg1[%c42, %c0_111] : memref<135x64xf32, #tpu.memory_space<vmem>>, vector<1x64xf32>
      %319 = vector.extract_strided_slice %317 {offsets = [0, 24], sizes = [8, 64], strides = [1, 1]} : vector<8x112xf32> to vector<8x64xf32>
      %320 = vector.broadcast %318 : vector<1x64xf32> to vector<8x64xf32>
      %321 = arith.mulf %320, %319 : vector<8x64xf32>
      %322 = arith.addf %294, %321 : vector<8x64xf32>
      %c3_i32 = arith.constant 3 : i32
      %323 = arith.addi %18, %c3_i32 : i32
      %324 = arith.index_cast %323 : i32 to index
      %c0_112 = arith.constant 0 : index
      %c0_113 = arith.constant 0 : index
      %325 = vector.load %arg5[%324, %c0_112, %c0_113] : memref<14x14x112xf32, #tpu.memory_space<vmem>>, vector<1x8x112xf32>
      %326 = vector.shape_cast %325 : vector<1x8x112xf32> to vector<8x112xf32>
      %c43 = arith.constant 43 : index
      %c0_114 = arith.constant 0 : index
      %327 = vector.load %arg1[%c43, %c0_114] : memref<135x64xf32, #tpu.memory_space<vmem>>, vector<7x64xf32>
      %328 = vector.extract_strided_slice %326 {offsets = [0, 0], sizes = [8, 64], strides = [1, 1]} : vector<8x112xf32> to vector<8x64xf32>
      %329 = vector.extract_strided_slice %327 {offsets = [0, 0], sizes = [1, 64], strides = [1, 1]} : vector<7x64xf32> to vector<1x64xf32>
      %330 = vector.broadcast %329 : vector<1x64xf32> to vector<8x64xf32>
      %331 = arith.mulf %330, %328 : vector<8x64xf32>
      %332 = arith.addf %299, %331 : vector<8x64xf32>
      %333 = vector.extract_strided_slice %326 {offsets = [0, 8], sizes = [8, 64], strides = [1, 1]} : vector<8x112xf32> to vector<8x64xf32>
      %334 = vector.extract_strided_slice %327 {offsets = [1, 0], sizes = [1, 64], strides = [1, 1]} : vector<7x64xf32> to vector<1x64xf32>
      %335 = vector.broadcast %334 : vector<1x64xf32> to vector<8x64xf32>
      %336 = arith.mulf %335, %333 : vector<8x64xf32>
      %337 = arith.addf %304, %336 : vector<8x64xf32>
      %338 = vector.extract_strided_slice %326 {offsets = [0, 16], sizes = [8, 64], strides = [1, 1]} : vector<8x112xf32> to vector<8x64xf32>
      %339 = vector.extract_strided_slice %327 {offsets = [2, 0], sizes = [1, 64], strides = [1, 1]} : vector<7x64xf32> to vector<1x64xf32>
      %340 = vector.broadcast %339 : vector<1x64xf32> to vector<8x64xf32>
      %341 = arith.mulf %340, %338 : vector<8x64xf32>
      %342 = arith.addf %313, %341 : vector<8x64xf32>
      %343 = vector.extract_strided_slice %326 {offsets = [0, 24], sizes = [8, 64], strides = [1, 1]} : vector<8x112xf32> to vector<8x64xf32>
      %344 = vector.extract_strided_slice %327 {offsets = [3, 0], sizes = [1, 64], strides = [1, 1]} : vector<7x64xf32> to vector<1x64xf32>
      %345 = vector.broadcast %344 : vector<1x64xf32> to vector<8x64xf32>
      %346 = arith.mulf %345, %343 : vector<8x64xf32>
      %347 = arith.addf %322, %346 : vector<8x64xf32>
      %348 = vector.extract_strided_slice %326 {offsets = [0, 32], sizes = [8, 64], strides = [1, 1]} : vector<8x112xf32> to vector<8x64xf32>
      %349 = vector.extract_strided_slice %327 {offsets = [4, 0], sizes = [1, 64], strides = [1, 1]} : vector<7x64xf32> to vector<1x64xf32>
      %350 = vector.broadcast %349 : vector<1x64xf32> to vector<8x64xf32>
      %351 = arith.mulf %350, %348 : vector<8x64xf32>
      %352 = arith.addf %332, %351 : vector<8x64xf32>
      %353 = vector.extract_strided_slice %326 {offsets = [0, 40], sizes = [8, 64], strides = [1, 1]} : vector<8x112xf32> to vector<8x64xf32>
      %354 = vector.extract_strided_slice %327 {offsets = [5, 0], sizes = [1, 64], strides = [1, 1]} : vector<7x64xf32> to vector<1x64xf32>
      %355 = vector.broadcast %354 : vector<1x64xf32> to vector<8x64xf32>
      %356 = arith.mulf %355, %353 : vector<8x64xf32>
      %357 = arith.addf %337, %356 : vector<8x64xf32>
      %358 = vector.extract_strided_slice %326 {offsets = [0, 48], sizes = [8, 64], strides = [1, 1]} : vector<8x112xf32> to vector<8x64xf32>
      %359 = vector.extract_strided_slice %327 {offsets = [6, 0], sizes = [1, 64], strides = [1, 1]} : vector<7x64xf32> to vector<1x64xf32>
      %360 = vector.broadcast %359 : vector<1x64xf32> to vector<8x64xf32>
      %361 = arith.mulf %360, %358 : vector<8x64xf32>
      %362 = arith.addf %342, %361 : vector<8x64xf32>
      %c3_i32_115 = arith.constant 3 : i32
      %363 = arith.addi %18, %c3_i32_115 : i32
      %364 = arith.index_cast %363 : i32 to index
      %c1_116 = arith.constant 1 : index
      %c0_117 = arith.constant 0 : index
      %365 = vector.load %arg5[%364, %c1_116, %c0_117] : memref<14x14x112xf32, #tpu.memory_space<vmem>>, vector<1x8x112xf32>
      %366 = vector.shape_cast %365 : vector<1x8x112xf32> to vector<8x112xf32>
      %c50 = arith.constant 50 : index
      %c0_118 = arith.constant 0 : index
      %367 = vector.load %arg1[%c50, %c0_118] : memref<135x64xf32, #tpu.memory_space<vmem>>, vector<7x64xf32>
      %368 = vector.extract_strided_slice %366 {offsets = [0, 0], sizes = [8, 64], strides = [1, 1]} : vector<8x112xf32> to vector<8x64xf32>
      %369 = vector.extract_strided_slice %367 {offsets = [0, 0], sizes = [1, 64], strides = [1, 1]} : vector<7x64xf32> to vector<1x64xf32>
      %370 = vector.broadcast %369 : vector<1x64xf32> to vector<8x64xf32>
      %371 = arith.mulf %370, %368 : vector<8x64xf32>
      %372 = arith.addf %347, %371 : vector<8x64xf32>
      %373 = vector.extract_strided_slice %366 {offsets = [0, 8], sizes = [8, 64], strides = [1, 1]} : vector<8x112xf32> to vector<8x64xf32>
      %374 = vector.extract_strided_slice %367 {offsets = [1, 0], sizes = [1, 64], strides = [1, 1]} : vector<7x64xf32> to vector<1x64xf32>
      %375 = vector.broadcast %374 : vector<1x64xf32> to vector<8x64xf32>
      %376 = arith.mulf %375, %373 : vector<8x64xf32>
      %377 = arith.addf %352, %376 : vector<8x64xf32>
      %378 = vector.extract_strided_slice %366 {offsets = [0, 16], sizes = [8, 64], strides = [1, 1]} : vector<8x112xf32> to vector<8x64xf32>
      %379 = vector.extract_strided_slice %367 {offsets = [2, 0], sizes = [1, 64], strides = [1, 1]} : vector<7x64xf32> to vector<1x64xf32>
      %380 = vector.broadcast %379 : vector<1x64xf32> to vector<8x64xf32>
      %381 = arith.mulf %380, %378 : vector<8x64xf32>
      %382 = arith.addf %357, %381 : vector<8x64xf32>
      %383 = vector.extract_strided_slice %366 {offsets = [0, 24], sizes = [8, 64], strides = [1, 1]} : vector<8x112xf32> to vector<8x64xf32>
      %384 = vector.extract_strided_slice %367 {offsets = [3, 0], sizes = [1, 64], strides = [1, 1]} : vector<7x64xf32> to vector<1x64xf32>
      %385 = vector.broadcast %384 : vector<1x64xf32> to vector<8x64xf32>
      %386 = arith.mulf %385, %383 : vector<8x64xf32>
      %387 = arith.addf %362, %386 : vector<8x64xf32>
      %388 = vector.extract_strided_slice %366 {offsets = [0, 32], sizes = [8, 64], strides = [1, 1]} : vector<8x112xf32> to vector<8x64xf32>
      %389 = vector.extract_strided_slice %367 {offsets = [4, 0], sizes = [1, 64], strides = [1, 1]} : vector<7x64xf32> to vector<1x64xf32>
      %390 = vector.broadcast %389 : vector<1x64xf32> to vector<8x64xf32>
      %391 = arith.mulf %390, %388 : vector<8x64xf32>
      %392 = arith.addf %372, %391 : vector<8x64xf32>
      %393 = vector.extract_strided_slice %366 {offsets = [0, 40], sizes = [8, 64], strides = [1, 1]} : vector<8x112xf32> to vector<8x64xf32>
      %394 = vector.extract_strided_slice %367 {offsets = [5, 0], sizes = [1, 64], strides = [1, 1]} : vector<7x64xf32> to vector<1x64xf32>
      %395 = vector.broadcast %394 : vector<1x64xf32> to vector<8x64xf32>
      %396 = arith.mulf %395, %393 : vector<8x64xf32>
      %397 = arith.addf %377, %396 : vector<8x64xf32>
      %398 = vector.extract_strided_slice %366 {offsets = [0, 48], sizes = [8, 64], strides = [1, 1]} : vector<8x112xf32> to vector<8x64xf32>
      %399 = vector.extract_strided_slice %367 {offsets = [6, 0], sizes = [1, 64], strides = [1, 1]} : vector<7x64xf32> to vector<1x64xf32>
      %400 = vector.broadcast %399 : vector<1x64xf32> to vector<8x64xf32>
      %401 = arith.mulf %400, %398 : vector<8x64xf32>
      %402 = arith.addf %382, %401 : vector<8x64xf32>
      %c3_i32_119 = arith.constant 3 : i32
      %403 = arith.addi %18, %c3_i32_119 : i32
      %404 = arith.index_cast %403 : i32 to index
      %c2_120 = arith.constant 2 : index
      %c0_121 = arith.constant 0 : index
      %405 = vector.load %arg5[%404, %c2_120, %c0_121] : memref<14x14x112xf32, #tpu.memory_space<vmem>>, vector<1x8x112xf32>
      %406 = vector.shape_cast %405 : vector<1x8x112xf32> to vector<8x112xf32>
      %c57 = arith.constant 57 : index
      %c0_122 = arith.constant 0 : index
      %407 = vector.load %arg1[%c57, %c0_122] : memref<135x64xf32, #tpu.memory_space<vmem>>, vector<7x64xf32>
      %408 = vector.extract_strided_slice %406 {offsets = [0, 0], sizes = [8, 64], strides = [1, 1]} : vector<8x112xf32> to vector<8x64xf32>
      %409 = vector.extract_strided_slice %407 {offsets = [0, 0], sizes = [1, 64], strides = [1, 1]} : vector<7x64xf32> to vector<1x64xf32>
      %410 = vector.broadcast %409 : vector<1x64xf32> to vector<8x64xf32>
      %411 = arith.mulf %410, %408 : vector<8x64xf32>
      %412 = arith.addf %387, %411 : vector<8x64xf32>
      %413 = vector.extract_strided_slice %406 {offsets = [0, 8], sizes = [8, 64], strides = [1, 1]} : vector<8x112xf32> to vector<8x64xf32>
      %414 = vector.extract_strided_slice %407 {offsets = [1, 0], sizes = [1, 64], strides = [1, 1]} : vector<7x64xf32> to vector<1x64xf32>
      %415 = vector.broadcast %414 : vector<1x64xf32> to vector<8x64xf32>
      %416 = arith.mulf %415, %413 : vector<8x64xf32>
      %417 = arith.addf %392, %416 : vector<8x64xf32>
      %418 = vector.extract_strided_slice %406 {offsets = [0, 16], sizes = [8, 64], strides = [1, 1]} : vector<8x112xf32> to vector<8x64xf32>
      %419 = vector.extract_strided_slice %407 {offsets = [2, 0], sizes = [1, 64], strides = [1, 1]} : vector<7x64xf32> to vector<1x64xf32>
      %420 = vector.broadcast %419 : vector<1x64xf32> to vector<8x64xf32>
      %421 = arith.mulf %420, %418 : vector<8x64xf32>
      %422 = arith.addf %397, %421 : vector<8x64xf32>
      %423 = vector.extract_strided_slice %406 {offsets = [0, 24], sizes = [8, 64], strides = [1, 1]} : vector<8x112xf32> to vector<8x64xf32>
      %424 = vector.extract_strided_slice %407 {offsets = [3, 0], sizes = [1, 64], strides = [1, 1]} : vector<7x64xf32> to vector<1x64xf32>
      %425 = vector.broadcast %424 : vector<1x64xf32> to vector<8x64xf32>
      %426 = arith.mulf %425, %423 : vector<8x64xf32>
      %427 = arith.addf %402, %426 : vector<8x64xf32>
      %428 = vector.extract_strided_slice %406 {offsets = [0, 32], sizes = [8, 64], strides = [1, 1]} : vector<8x112xf32> to vector<8x64xf32>
      %429 = vector.extract_strided_slice %407 {offsets = [4, 0], sizes = [1, 64], strides = [1, 1]} : vector<7x64xf32> to vector<1x64xf32>
      %430 = vector.broadcast %429 : vector<1x64xf32> to vector<8x64xf32>
      %431 = arith.mulf %430, %428 : vector<8x64xf32>
      %432 = arith.addf %412, %431 : vector<8x64xf32>
      %433 = vector.extract_strided_slice %406 {offsets = [0, 40], sizes = [8, 64], strides = [1, 1]} : vector<8x112xf32> to vector<8x64xf32>
      %434 = vector.extract_strided_slice %407 {offsets = [5, 0], sizes = [1, 64], strides = [1, 1]} : vector<7x64xf32> to vector<1x64xf32>
      %435 = vector.broadcast %434 : vector<1x64xf32> to vector<8x64xf32>
      %436 = arith.mulf %435, %433 : vector<8x64xf32>
      %437 = arith.addf %417, %436 : vector<8x64xf32>
      %438 = vector.extract_strided_slice %406 {offsets = [0, 48], sizes = [8, 64], strides = [1, 1]} : vector<8x112xf32> to vector<8x64xf32>
      %439 = vector.extract_strided_slice %407 {offsets = [6, 0], sizes = [1, 64], strides = [1, 1]} : vector<7x64xf32> to vector<1x64xf32>
      %440 = vector.broadcast %439 : vector<1x64xf32> to vector<8x64xf32>
      %441 = arith.mulf %440, %438 : vector<8x64xf32>
      %442 = arith.addf %422, %441 : vector<8x64xf32>
      %c3_i32_123 = arith.constant 3 : i32
      %443 = arith.addi %18, %c3_i32_123 : i32
      %444 = arith.index_cast %443 : i32 to index
      %c3_124 = arith.constant 3 : index
      %c0_125 = arith.constant 0 : index
      %445 = vector.load %arg5[%444, %c3_124, %c0_125] : memref<14x14x112xf32, #tpu.memory_space<vmem>>, vector<1x8x112xf32>
      %446 = vector.shape_cast %445 : vector<1x8x112xf32> to vector<8x112xf32>
      %c64 = arith.constant 64 : index
      %c0_126 = arith.constant 0 : index
      %447 = vector.load %arg1[%c64, %c0_126] : memref<135x64xf32, #tpu.memory_space<vmem>>, vector<7x64xf32>
      %448 = vector.extract_strided_slice %446 {offsets = [0, 0], sizes = [8, 64], strides = [1, 1]} : vector<8x112xf32> to vector<8x64xf32>
      %449 = vector.extract_strided_slice %447 {offsets = [0, 0], sizes = [1, 64], strides = [1, 1]} : vector<7x64xf32> to vector<1x64xf32>
      %450 = vector.broadcast %449 : vector<1x64xf32> to vector<8x64xf32>
      %451 = arith.mulf %450, %448 : vector<8x64xf32>
      %452 = arith.addf %427, %451 : vector<8x64xf32>
      %453 = vector.extract_strided_slice %446 {offsets = [0, 8], sizes = [8, 64], strides = [1, 1]} : vector<8x112xf32> to vector<8x64xf32>
      %454 = vector.extract_strided_slice %447 {offsets = [1, 0], sizes = [1, 64], strides = [1, 1]} : vector<7x64xf32> to vector<1x64xf32>
      %455 = vector.broadcast %454 : vector<1x64xf32> to vector<8x64xf32>
      %456 = arith.mulf %455, %453 : vector<8x64xf32>
      %457 = arith.addf %432, %456 : vector<8x64xf32>
      %458 = vector.extract_strided_slice %446 {offsets = [0, 16], sizes = [8, 64], strides = [1, 1]} : vector<8x112xf32> to vector<8x64xf32>
      %459 = vector.extract_strided_slice %447 {offsets = [2, 0], sizes = [1, 64], strides = [1, 1]} : vector<7x64xf32> to vector<1x64xf32>
      %460 = vector.broadcast %459 : vector<1x64xf32> to vector<8x64xf32>
      %461 = arith.mulf %460, %458 : vector<8x64xf32>
      %462 = arith.addf %437, %461 : vector<8x64xf32>
      %463 = vector.extract_strided_slice %446 {offsets = [0, 24], sizes = [8, 64], strides = [1, 1]} : vector<8x112xf32> to vector<8x64xf32>
      %464 = vector.extract_strided_slice %447 {offsets = [3, 0], sizes = [1, 64], strides = [1, 1]} : vector<7x64xf32> to vector<1x64xf32>
      %465 = vector.broadcast %464 : vector<1x64xf32> to vector<8x64xf32>
      %466 = arith.mulf %465, %463 : vector<8x64xf32>
      %467 = arith.addf %442, %466 : vector<8x64xf32>
      %468 = vector.extract_strided_slice %446 {offsets = [0, 32], sizes = [8, 64], strides = [1, 1]} : vector<8x112xf32> to vector<8x64xf32>
      %469 = vector.extract_strided_slice %447 {offsets = [4, 0], sizes = [1, 64], strides = [1, 1]} : vector<7x64xf32> to vector<1x64xf32>
      %470 = vector.broadcast %469 : vector<1x64xf32> to vector<8x64xf32>
      %471 = arith.mulf %470, %468 : vector<8x64xf32>
      %472 = arith.addf %452, %471 : vector<8x64xf32>
      %473 = vector.extract_strided_slice %446 {offsets = [0, 40], sizes = [8, 64], strides = [1, 1]} : vector<8x112xf32> to vector<8x64xf32>
      %474 = vector.extract_strided_slice %447 {offsets = [5, 0], sizes = [1, 64], strides = [1, 1]} : vector<7x64xf32> to vector<1x64xf32>
      %475 = vector.broadcast %474 : vector<1x64xf32> to vector<8x64xf32>
      %476 = arith.mulf %475, %473 : vector<8x64xf32>
      %477 = arith.addf %457, %476 : vector<8x64xf32>
      %478 = vector.extract_strided_slice %446 {offsets = [0, 48], sizes = [8, 64], strides = [1, 1]} : vector<8x112xf32> to vector<8x64xf32>
      %479 = vector.extract_strided_slice %447 {offsets = [6, 0], sizes = [1, 64], strides = [1, 1]} : vector<7x64xf32> to vector<1x64xf32>
      %480 = vector.broadcast %479 : vector<1x64xf32> to vector<8x64xf32>
      %481 = arith.mulf %480, %478 : vector<8x64xf32>
      %482 = arith.addf %462, %481 : vector<8x64xf32>
      %c3_i32_127 = arith.constant 3 : i32
      %483 = arith.addi %18, %c3_i32_127 : i32
      %484 = arith.index_cast %483 : i32 to index
      %c4_128 = arith.constant 4 : index
      %c0_129 = arith.constant 0 : index
      %485 = vector.load %arg5[%484, %c4_128, %c0_129] : memref<14x14x112xf32, #tpu.memory_space<vmem>>, vector<1x8x112xf32>
      %486 = vector.shape_cast %485 : vector<1x8x112xf32> to vector<8x112xf32>
      %c71 = arith.constant 71 : index
      %c0_130 = arith.constant 0 : index
      %487 = vector.load %arg1[%c71, %c0_130] : memref<135x64xf32, #tpu.memory_space<vmem>>, vector<7x64xf32>
      %488 = vector.extract_strided_slice %486 {offsets = [0, 0], sizes = [8, 64], strides = [1, 1]} : vector<8x112xf32> to vector<8x64xf32>
      %489 = vector.extract_strided_slice %487 {offsets = [0, 0], sizes = [1, 64], strides = [1, 1]} : vector<7x64xf32> to vector<1x64xf32>
      %490 = vector.broadcast %489 : vector<1x64xf32> to vector<8x64xf32>
      %491 = arith.mulf %490, %488 : vector<8x64xf32>
      %492 = arith.addf %467, %491 : vector<8x64xf32>
      %493 = vector.extract_strided_slice %486 {offsets = [0, 8], sizes = [8, 64], strides = [1, 1]} : vector<8x112xf32> to vector<8x64xf32>
      %494 = vector.extract_strided_slice %487 {offsets = [1, 0], sizes = [1, 64], strides = [1, 1]} : vector<7x64xf32> to vector<1x64xf32>
      %495 = vector.broadcast %494 : vector<1x64xf32> to vector<8x64xf32>
      %496 = arith.mulf %495, %493 : vector<8x64xf32>
      %497 = arith.addf %472, %496 : vector<8x64xf32>
      %498 = vector.extract_strided_slice %486 {offsets = [0, 16], sizes = [8, 64], strides = [1, 1]} : vector<8x112xf32> to vector<8x64xf32>
      %499 = vector.extract_strided_slice %487 {offsets = [2, 0], sizes = [1, 64], strides = [1, 1]} : vector<7x64xf32> to vector<1x64xf32>
      %500 = vector.broadcast %499 : vector<1x64xf32> to vector<8x64xf32>
      %501 = arith.mulf %500, %498 : vector<8x64xf32>
      %502 = arith.addf %477, %501 : vector<8x64xf32>
      %503 = vector.extract_strided_slice %486 {offsets = [0, 24], sizes = [8, 64], strides = [1, 1]} : vector<8x112xf32> to vector<8x64xf32>
      %504 = vector.extract_strided_slice %487 {offsets = [3, 0], sizes = [1, 64], strides = [1, 1]} : vector<7x64xf32> to vector<1x64xf32>
      %505 = vector.broadcast %504 : vector<1x64xf32> to vector<8x64xf32>
      %506 = arith.mulf %505, %503 : vector<8x64xf32>
      %507 = arith.addf %482, %506 : vector<8x64xf32>
      %508 = vector.extract_strided_slice %486 {offsets = [0, 32], sizes = [8, 64], strides = [1, 1]} : vector<8x112xf32> to vector<8x64xf32>
      %509 = vector.extract_strided_slice %487 {offsets = [4, 0], sizes = [1, 64], strides = [1, 1]} : vector<7x64xf32> to vector<1x64xf32>
      %510 = vector.broadcast %509 : vector<1x64xf32> to vector<8x64xf32>
      %511 = arith.mulf %510, %508 : vector<8x64xf32>
      %512 = arith.addf %492, %511 : vector<8x64xf32>
      %513 = vector.extract_strided_slice %486 {offsets = [0, 40], sizes = [8, 64], strides = [1, 1]} : vector<8x112xf32> to vector<8x64xf32>
      %514 = vector.extract_strided_slice %487 {offsets = [5, 0], sizes = [1, 64], strides = [1, 1]} : vector<7x64xf32> to vector<1x64xf32>
      %515 = vector.broadcast %514 : vector<1x64xf32> to vector<8x64xf32>
      %516 = arith.mulf %515, %513 : vector<8x64xf32>
      %517 = arith.addf %497, %516 : vector<8x64xf32>
      %518 = vector.extract_strided_slice %486 {offsets = [0, 48], sizes = [8, 64], strides = [1, 1]} : vector<8x112xf32> to vector<8x64xf32>
      %519 = vector.extract_strided_slice %487 {offsets = [6, 0], sizes = [1, 64], strides = [1, 1]} : vector<7x64xf32> to vector<1x64xf32>
      %520 = vector.broadcast %519 : vector<1x64xf32> to vector<8x64xf32>
      %521 = arith.mulf %520, %518 : vector<8x64xf32>
      %522 = arith.addf %502, %521 : vector<8x64xf32>
      %c3_i32_131 = arith.constant 3 : i32
      %523 = arith.addi %18, %c3_i32_131 : i32
      %524 = arith.index_cast %523 : i32 to index
      %c5_132 = arith.constant 5 : index
      %c0_133 = arith.constant 0 : index
      %525 = vector.load %arg5[%524, %c5_132, %c0_133] : memref<14x14x112xf32, #tpu.memory_space<vmem>>, vector<1x8x112xf32>
      %526 = vector.shape_cast %525 : vector<1x8x112xf32> to vector<8x112xf32>
      %c78 = arith.constant 78 : index
      %c0_134 = arith.constant 0 : index
      %527 = vector.load %arg1[%c78, %c0_134] : memref<135x64xf32, #tpu.memory_space<vmem>>, vector<7x64xf32>
      %528 = vector.extract_strided_slice %526 {offsets = [0, 0], sizes = [8, 64], strides = [1, 1]} : vector<8x112xf32> to vector<8x64xf32>
      %529 = vector.extract_strided_slice %527 {offsets = [0, 0], sizes = [1, 64], strides = [1, 1]} : vector<7x64xf32> to vector<1x64xf32>
      %530 = vector.broadcast %529 : vector<1x64xf32> to vector<8x64xf32>
      %531 = arith.mulf %530, %528 : vector<8x64xf32>
      %532 = arith.addf %507, %531 : vector<8x64xf32>
      %533 = vector.extract_strided_slice %526 {offsets = [0, 8], sizes = [8, 64], strides = [1, 1]} : vector<8x112xf32> to vector<8x64xf32>
      %534 = vector.extract_strided_slice %527 {offsets = [1, 0], sizes = [1, 64], strides = [1, 1]} : vector<7x64xf32> to vector<1x64xf32>
      %535 = vector.broadcast %534 : vector<1x64xf32> to vector<8x64xf32>
      %536 = arith.mulf %535, %533 : vector<8x64xf32>
      %537 = arith.addf %512, %536 : vector<8x64xf32>
      %538 = vector.extract_strided_slice %526 {offsets = [0, 16], sizes = [8, 64], strides = [1, 1]} : vector<8x112xf32> to vector<8x64xf32>
      %539 = vector.extract_strided_slice %527 {offsets = [2, 0], sizes = [1, 64], strides = [1, 1]} : vector<7x64xf32> to vector<1x64xf32>
      %540 = vector.broadcast %539 : vector<1x64xf32> to vector<8x64xf32>
      %541 = arith.mulf %540, %538 : vector<8x64xf32>
      %542 = arith.addf %517, %541 : vector<8x64xf32>
      %543 = vector.extract_strided_slice %526 {offsets = [0, 24], sizes = [8, 64], strides = [1, 1]} : vector<8x112xf32> to vector<8x64xf32>
      %544 = vector.extract_strided_slice %527 {offsets = [3, 0], sizes = [1, 64], strides = [1, 1]} : vector<7x64xf32> to vector<1x64xf32>
      %545 = vector.broadcast %544 : vector<1x64xf32> to vector<8x64xf32>
      %546 = arith.mulf %545, %543 : vector<8x64xf32>
      %547 = arith.addf %522, %546 : vector<8x64xf32>
      %548 = vector.extract_strided_slice %526 {offsets = [0, 32], sizes = [8, 64], strides = [1, 1]} : vector<8x112xf32> to vector<8x64xf32>
      %549 = vector.extract_strided_slice %527 {offsets = [4, 0], sizes = [1, 64], strides = [1, 1]} : vector<7x64xf32> to vector<1x64xf32>
      %550 = vector.broadcast %549 : vector<1x64xf32> to vector<8x64xf32>
      %551 = arith.mulf %550, %548 : vector<8x64xf32>
      %552 = arith.addf %532, %551 : vector<8x64xf32>
      %553 = vector.extract_strided_slice %526 {offsets = [0, 40], sizes = [8, 64], strides = [1, 1]} : vector<8x112xf32> to vector<8x64xf32>
      %554 = vector.extract_strided_slice %527 {offsets = [5, 0], sizes = [1, 64], strides = [1, 1]} : vector<7x64xf32> to vector<1x64xf32>
      %555 = vector.broadcast %554 : vector<1x64xf32> to vector<8x64xf32>
      %556 = arith.mulf %555, %553 : vector<8x64xf32>
      %557 = arith.addf %537, %556 : vector<8x64xf32>
      %558 = vector.extract_strided_slice %526 {offsets = [0, 48], sizes = [8, 64], strides = [1, 1]} : vector<8x112xf32> to vector<8x64xf32>
      %559 = vector.extract_strided_slice %527 {offsets = [6, 0], sizes = [1, 64], strides = [1, 1]} : vector<7x64xf32> to vector<1x64xf32>
      %560 = vector.broadcast %559 : vector<1x64xf32> to vector<8x64xf32>
      %561 = arith.mulf %560, %558 : vector<8x64xf32>
      %562 = arith.addf %542, %561 : vector<8x64xf32>
      %c3_i32_135 = arith.constant 3 : i32
      %563 = arith.addi %18, %c3_i32_135 : i32
      %564 = arith.index_cast %563 : i32 to index
      %c6_136 = arith.constant 6 : index
      %c0_137 = arith.constant 0 : index
      %565 = vector.load %arg5[%564, %c6_136, %c0_137] : memref<14x14x112xf32, #tpu.memory_space<vmem>>, vector<1x8x112xf32>
      %566 = vector.shape_cast %565 : vector<1x8x112xf32> to vector<8x112xf32>
      %c85 = arith.constant 85 : index
      %c0_138 = arith.constant 0 : index
      %567 = vector.load %arg1[%c85, %c0_138] : memref<135x64xf32, #tpu.memory_space<vmem>>, vector<7x64xf32>
      %568 = vector.extract_strided_slice %566 {offsets = [0, 0], sizes = [8, 64], strides = [1, 1]} : vector<8x112xf32> to vector<8x64xf32>
      %569 = vector.extract_strided_slice %567 {offsets = [0, 0], sizes = [1, 64], strides = [1, 1]} : vector<7x64xf32> to vector<1x64xf32>
      %570 = vector.broadcast %569 : vector<1x64xf32> to vector<8x64xf32>
      %571 = arith.mulf %570, %568 : vector<8x64xf32>
      %572 = arith.addf %547, %571 : vector<8x64xf32>
      %573 = vector.extract_strided_slice %566 {offsets = [0, 8], sizes = [8, 64], strides = [1, 1]} : vector<8x112xf32> to vector<8x64xf32>
      %574 = vector.extract_strided_slice %567 {offsets = [1, 0], sizes = [1, 64], strides = [1, 1]} : vector<7x64xf32> to vector<1x64xf32>
      %575 = vector.broadcast %574 : vector<1x64xf32> to vector<8x64xf32>
      %576 = arith.mulf %575, %573 : vector<8x64xf32>
      %577 = arith.addf %552, %576 : vector<8x64xf32>
      %578 = vector.extract_strided_slice %566 {offsets = [0, 16], sizes = [8, 64], strides = [1, 1]} : vector<8x112xf32> to vector<8x64xf32>
      %579 = vector.extract_strided_slice %567 {offsets = [2, 0], sizes = [1, 64], strides = [1, 1]} : vector<7x64xf32> to vector<1x64xf32>
      %580 = vector.broadcast %579 : vector<1x64xf32> to vector<8x64xf32>
      %581 = arith.mulf %580, %578 : vector<8x64xf32>
      %582 = arith.addf %557, %581 : vector<8x64xf32>
      %583 = vector.extract_strided_slice %566 {offsets = [0, 24], sizes = [8, 64], strides = [1, 1]} : vector<8x112xf32> to vector<8x64xf32>
      %584 = vector.extract_strided_slice %567 {offsets = [3, 0], sizes = [1, 64], strides = [1, 1]} : vector<7x64xf32> to vector<1x64xf32>
      %585 = vector.broadcast %584 : vector<1x64xf32> to vector<8x64xf32>
      %586 = arith.mulf %585, %583 : vector<8x64xf32>
      %587 = arith.addf %562, %586 : vector<8x64xf32>
      %588 = vector.extract_strided_slice %566 {offsets = [0, 32], sizes = [8, 64], strides = [1, 1]} : vector<8x112xf32> to vector<8x64xf32>
      %589 = vector.extract_strided_slice %567 {offsets = [4, 0], sizes = [1, 64], strides = [1, 1]} : vector<7x64xf32> to vector<1x64xf32>
      %590 = vector.broadcast %589 : vector<1x64xf32> to vector<8x64xf32>
      %591 = arith.mulf %590, %588 : vector<8x64xf32>
      %592 = arith.addf %572, %591 : vector<8x64xf32>
      %593 = vector.extract_strided_slice %566 {offsets = [0, 40], sizes = [8, 64], strides = [1, 1]} : vector<8x112xf32> to vector<8x64xf32>
      %594 = vector.extract_strided_slice %567 {offsets = [5, 0], sizes = [1, 64], strides = [1, 1]} : vector<7x64xf32> to vector<1x64xf32>
      %595 = vector.broadcast %594 : vector<1x64xf32> to vector<8x64xf32>
      %596 = arith.mulf %595, %593 : vector<8x64xf32>
      %597 = arith.addf %577, %596 : vector<8x64xf32>
      %598 = vector.extract_strided_slice %566 {offsets = [0, 48], sizes = [8, 64], strides = [1, 1]} : vector<8x112xf32> to vector<8x64xf32>
      %599 = vector.extract_strided_slice %567 {offsets = [6, 0], sizes = [1, 64], strides = [1, 1]} : vector<7x64xf32> to vector<1x64xf32>
      %600 = vector.broadcast %599 : vector<1x64xf32> to vector<8x64xf32>
      %601 = arith.mulf %600, %598 : vector<8x64xf32>
      %602 = arith.addf %582, %601 : vector<8x64xf32>
      %c4_i32 = arith.constant 4 : i32
      %603 = arith.addi %18, %c4_i32 : i32
      %604 = arith.index_cast %603 : i32 to index
      %c0_139 = arith.constant 0 : index
      %c0_140 = arith.constant 0 : index
      %605 = vector.load %arg5[%604, %c0_139, %c0_140] : memref<14x14x112xf32, #tpu.memory_space<vmem>>, vector<1x8x112xf32>
      %606 = vector.shape_cast %605 : vector<1x8x112xf32> to vector<8x112xf32>
      %c92 = arith.constant 92 : index
      %c0_141 = arith.constant 0 : index
      %607 = vector.load %arg1[%c92, %c0_141] : memref<135x64xf32, #tpu.memory_space<vmem>>, vector<1x64xf32>
      %608 = vector.extract_strided_slice %606 {offsets = [0, 24], sizes = [8, 64], strides = [1, 1]} : vector<8x112xf32> to vector<8x64xf32>
      %609 = vector.broadcast %607 : vector<1x64xf32> to vector<8x64xf32>
      %610 = arith.mulf %609, %608 : vector<8x64xf32>
      %611 = arith.addf %587, %610 : vector<8x64xf32>
      %c4_i32_142 = arith.constant 4 : i32
      %612 = arith.addi %18, %c4_i32_142 : i32
      %613 = arith.index_cast %612 : i32 to index
      %c1_143 = arith.constant 1 : index
      %c0_144 = arith.constant 0 : index
      %614 = vector.load %arg5[%613, %c1_143, %c0_144] : memref<14x14x112xf32, #tpu.memory_space<vmem>>, vector<1x8x112xf32>
      %615 = vector.shape_cast %614 : vector<1x8x112xf32> to vector<8x112xf32>
      %c93 = arith.constant 93 : index
      %c0_145 = arith.constant 0 : index
      %616 = vector.load %arg1[%c93, %c0_145] : memref<135x64xf32, #tpu.memory_space<vmem>>, vector<1x64xf32>
      %617 = vector.extract_strided_slice %615 {offsets = [0, 24], sizes = [8, 64], strides = [1, 1]} : vector<8x112xf32> to vector<8x64xf32>
      %618 = vector.broadcast %616 : vector<1x64xf32> to vector<8x64xf32>
      %619 = arith.mulf %618, %617 : vector<8x64xf32>
      %620 = arith.addf %592, %619 : vector<8x64xf32>
      %c4_i32_146 = arith.constant 4 : i32
      %621 = arith.addi %18, %c4_i32_146 : i32
      %622 = arith.index_cast %621 : i32 to index
      %c2_147 = arith.constant 2 : index
      %c0_148 = arith.constant 0 : index
      %623 = vector.load %arg5[%622, %c2_147, %c0_148] : memref<14x14x112xf32, #tpu.memory_space<vmem>>, vector<1x8x112xf32>
      %624 = vector.shape_cast %623 : vector<1x8x112xf32> to vector<8x112xf32>
      %c94 = arith.constant 94 : index
      %c0_149 = arith.constant 0 : index
      %625 = vector.load %arg1[%c94, %c0_149] : memref<135x64xf32, #tpu.memory_space<vmem>>, vector<3x64xf32>
      %626 = vector.extract_strided_slice %624 {offsets = [0, 16], sizes = [8, 64], strides = [1, 1]} : vector<8x112xf32> to vector<8x64xf32>
      %627 = vector.extract_strided_slice %625 {offsets = [0, 0], sizes = [1, 64], strides = [1, 1]} : vector<3x64xf32> to vector<1x64xf32>
      %628 = vector.broadcast %627 : vector<1x64xf32> to vector<8x64xf32>
      %629 = arith.mulf %628, %626 : vector<8x64xf32>
      %630 = arith.addf %597, %629 : vector<8x64xf32>
      %631 = vector.extract_strided_slice %624 {offsets = [0, 24], sizes = [8, 64], strides = [1, 1]} : vector<8x112xf32> to vector<8x64xf32>
      %632 = vector.extract_strided_slice %625 {offsets = [1, 0], sizes = [1, 64], strides = [1, 1]} : vector<3x64xf32> to vector<1x64xf32>
      %633 = vector.broadcast %632 : vector<1x64xf32> to vector<8x64xf32>
      %634 = arith.mulf %633, %631 : vector<8x64xf32>
      %635 = arith.addf %602, %634 : vector<8x64xf32>
      %636 = vector.extract_strided_slice %624 {offsets = [0, 32], sizes = [8, 64], strides = [1, 1]} : vector<8x112xf32> to vector<8x64xf32>
      %637 = vector.extract_strided_slice %625 {offsets = [2, 0], sizes = [1, 64], strides = [1, 1]} : vector<3x64xf32> to vector<1x64xf32>
      %638 = vector.broadcast %637 : vector<1x64xf32> to vector<8x64xf32>
      %639 = arith.mulf %638, %636 : vector<8x64xf32>
      %640 = arith.addf %611, %639 : vector<8x64xf32>
      %c4_i32_150 = arith.constant 4 : i32
      %641 = arith.addi %18, %c4_i32_150 : i32
      %642 = arith.index_cast %641 : i32 to index
      %c3_151 = arith.constant 3 : index
      %c0_152 = arith.constant 0 : index
      %643 = vector.load %arg5[%642, %c3_151, %c0_152] : memref<14x14x112xf32, #tpu.memory_space<vmem>>, vector<1x8x112xf32>
      %644 = vector.shape_cast %643 : vector<1x8x112xf32> to vector<8x112xf32>
      %c97 = arith.constant 97 : index
      %c0_153 = arith.constant 0 : index
      %645 = vector.load %arg1[%c97, %c0_153] : memref<135x64xf32, #tpu.memory_space<vmem>>, vector<7x64xf32>
      %646 = vector.extract_strided_slice %644 {offsets = [0, 0], sizes = [8, 64], strides = [1, 1]} : vector<8x112xf32> to vector<8x64xf32>
      %647 = vector.extract_strided_slice %645 {offsets = [0, 0], sizes = [1, 64], strides = [1, 1]} : vector<7x64xf32> to vector<1x64xf32>
      %648 = vector.broadcast %647 : vector<1x64xf32> to vector<8x64xf32>
      %649 = arith.mulf %648, %646 : vector<8x64xf32>
      %650 = arith.addf %620, %649 : vector<8x64xf32>
      %651 = vector.extract_strided_slice %644 {offsets = [0, 8], sizes = [8, 64], strides = [1, 1]} : vector<8x112xf32> to vector<8x64xf32>
      %652 = vector.extract_strided_slice %645 {offsets = [1, 0], sizes = [1, 64], strides = [1, 1]} : vector<7x64xf32> to vector<1x64xf32>
      %653 = vector.broadcast %652 : vector<1x64xf32> to vector<8x64xf32>
      %654 = arith.mulf %653, %651 : vector<8x64xf32>
      %655 = arith.addf %630, %654 : vector<8x64xf32>
      %656 = vector.extract_strided_slice %644 {offsets = [0, 16], sizes = [8, 64], strides = [1, 1]} : vector<8x112xf32> to vector<8x64xf32>
      %657 = vector.extract_strided_slice %645 {offsets = [2, 0], sizes = [1, 64], strides = [1, 1]} : vector<7x64xf32> to vector<1x64xf32>
      %658 = vector.broadcast %657 : vector<1x64xf32> to vector<8x64xf32>
      %659 = arith.mulf %658, %656 : vector<8x64xf32>
      %660 = arith.addf %635, %659 : vector<8x64xf32>
      %661 = vector.extract_strided_slice %644 {offsets = [0, 24], sizes = [8, 64], strides = [1, 1]} : vector<8x112xf32> to vector<8x64xf32>
      %662 = vector.extract_strided_slice %645 {offsets = [3, 0], sizes = [1, 64], strides = [1, 1]} : vector<7x64xf32> to vector<1x64xf32>
      %663 = vector.broadcast %662 : vector<1x64xf32> to vector<8x64xf32>
      %664 = arith.mulf %663, %661 : vector<8x64xf32>
      %665 = arith.addf %640, %664 : vector<8x64xf32>
      %666 = vector.extract_strided_slice %644 {offsets = [0, 32], sizes = [8, 64], strides = [1, 1]} : vector<8x112xf32> to vector<8x64xf32>
      %667 = vector.extract_strided_slice %645 {offsets = [4, 0], sizes = [1, 64], strides = [1, 1]} : vector<7x64xf32> to vector<1x64xf32>
      %668 = vector.broadcast %667 : vector<1x64xf32> to vector<8x64xf32>
      %669 = arith.mulf %668, %666 : vector<8x64xf32>
      %670 = arith.addf %650, %669 : vector<8x64xf32>
      %671 = vector.extract_strided_slice %644 {offsets = [0, 40], sizes = [8, 64], strides = [1, 1]} : vector<8x112xf32> to vector<8x64xf32>
      %672 = vector.extract_strided_slice %645 {offsets = [5, 0], sizes = [1, 64], strides = [1, 1]} : vector<7x64xf32> to vector<1x64xf32>
      %673 = vector.broadcast %672 : vector<1x64xf32> to vector<8x64xf32>
      %674 = arith.mulf %673, %671 : vector<8x64xf32>
      %675 = arith.addf %655, %674 : vector<8x64xf32>
      %676 = vector.extract_strided_slice %644 {offsets = [0, 48], sizes = [8, 64], strides = [1, 1]} : vector<8x112xf32> to vector<8x64xf32>
      %677 = vector.extract_strided_slice %645 {offsets = [6, 0], sizes = [1, 64], strides = [1, 1]} : vector<7x64xf32> to vector<1x64xf32>
      %678 = vector.broadcast %677 : vector<1x64xf32> to vector<8x64xf32>
      %679 = arith.mulf %678, %676 : vector<8x64xf32>
      %680 = arith.addf %660, %679 : vector<8x64xf32>
      %c4_i32_154 = arith.constant 4 : i32
      %681 = arith.addi %18, %c4_i32_154 : i32
      %682 = arith.index_cast %681 : i32 to index
      %c4_155 = arith.constant 4 : index
      %c0_156 = arith.constant 0 : index
      %683 = vector.load %arg5[%682, %c4_155, %c0_156] : memref<14x14x112xf32, #tpu.memory_space<vmem>>, vector<1x8x112xf32>
      %684 = vector.shape_cast %683 : vector<1x8x112xf32> to vector<8x112xf32>
      %c104 = arith.constant 104 : index
      %c0_157 = arith.constant 0 : index
      %685 = vector.load %arg1[%c104, %c0_157] : memref<135x64xf32, #tpu.memory_space<vmem>>, vector<3x64xf32>
      %686 = vector.extract_strided_slice %684 {offsets = [0, 16], sizes = [8, 64], strides = [1, 1]} : vector<8x112xf32> to vector<8x64xf32>
      %687 = vector.extract_strided_slice %685 {offsets = [0, 0], sizes = [1, 64], strides = [1, 1]} : vector<3x64xf32> to vector<1x64xf32>
      %688 = vector.broadcast %687 : vector<1x64xf32> to vector<8x64xf32>
      %689 = arith.mulf %688, %686 : vector<8x64xf32>
      %690 = arith.addf %665, %689 : vector<8x64xf32>
      %691 = vector.extract_strided_slice %684 {offsets = [0, 24], sizes = [8, 64], strides = [1, 1]} : vector<8x112xf32> to vector<8x64xf32>
      %692 = vector.extract_strided_slice %685 {offsets = [1, 0], sizes = [1, 64], strides = [1, 1]} : vector<3x64xf32> to vector<1x64xf32>
      %693 = vector.broadcast %692 : vector<1x64xf32> to vector<8x64xf32>
      %694 = arith.mulf %693, %691 : vector<8x64xf32>
      %695 = arith.addf %670, %694 : vector<8x64xf32>
      %696 = vector.extract_strided_slice %684 {offsets = [0, 32], sizes = [8, 64], strides = [1, 1]} : vector<8x112xf32> to vector<8x64xf32>
      %697 = vector.extract_strided_slice %685 {offsets = [2, 0], sizes = [1, 64], strides = [1, 1]} : vector<3x64xf32> to vector<1x64xf32>
      %698 = vector.broadcast %697 : vector<1x64xf32> to vector<8x64xf32>
      %699 = arith.mulf %698, %696 : vector<8x64xf32>
      %700 = arith.addf %675, %699 : vector<8x64xf32>
      %c4_i32_158 = arith.constant 4 : i32
      %701 = arith.addi %18, %c4_i32_158 : i32
      %702 = arith.index_cast %701 : i32 to index
      %c5_159 = arith.constant 5 : index
      %c0_160 = arith.constant 0 : index
      %703 = vector.load %arg5[%702, %c5_159, %c0_160] : memref<14x14x112xf32, #tpu.memory_space<vmem>>, vector<1x8x112xf32>
      %704 = vector.shape_cast %703 : vector<1x8x112xf32> to vector<8x112xf32>
      %c107 = arith.constant 107 : index
      %c0_161 = arith.constant 0 : index
      %705 = vector.load %arg1[%c107, %c0_161] : memref<135x64xf32, #tpu.memory_space<vmem>>, vector<1x64xf32>
      %706 = vector.extract_strided_slice %704 {offsets = [0, 24], sizes = [8, 64], strides = [1, 1]} : vector<8x112xf32> to vector<8x64xf32>
      %707 = vector.broadcast %705 : vector<1x64xf32> to vector<8x64xf32>
      %708 = arith.mulf %707, %706 : vector<8x64xf32>
      %709 = arith.addf %680, %708 : vector<8x64xf32>
      %c4_i32_162 = arith.constant 4 : i32
      %710 = arith.addi %18, %c4_i32_162 : i32
      %711 = arith.index_cast %710 : i32 to index
      %c6_163 = arith.constant 6 : index
      %c0_164 = arith.constant 0 : index
      %712 = vector.load %arg5[%711, %c6_163, %c0_164] : memref<14x14x112xf32, #tpu.memory_space<vmem>>, vector<1x8x112xf32>
      %713 = vector.shape_cast %712 : vector<1x8x112xf32> to vector<8x112xf32>
      %c108 = arith.constant 108 : index
      %c0_165 = arith.constant 0 : index
      %714 = vector.load %arg1[%c108, %c0_165] : memref<135x64xf32, #tpu.memory_space<vmem>>, vector<1x64xf32>
      %715 = vector.extract_strided_slice %713 {offsets = [0, 24], sizes = [8, 64], strides = [1, 1]} : vector<8x112xf32> to vector<8x64xf32>
      %716 = vector.broadcast %714 : vector<1x64xf32> to vector<8x64xf32>
      %717 = arith.mulf %716, %715 : vector<8x64xf32>
      %718 = arith.addf %690, %717 : vector<8x64xf32>
      %c5_i32 = arith.constant 5 : i32
      %719 = arith.addi %18, %c5_i32 : i32
      %720 = arith.index_cast %719 : i32 to index
      %c0_166 = arith.constant 0 : index
      %c0_167 = arith.constant 0 : index
      %721 = vector.load %arg5[%720, %c0_166, %c0_167] : memref<14x14x112xf32, #tpu.memory_space<vmem>>, vector<1x8x112xf32>
      %722 = vector.shape_cast %721 : vector<1x8x112xf32> to vector<8x112xf32>
      %c109 = arith.constant 109 : index
      %c0_168 = arith.constant 0 : index
      %723 = vector.load %arg1[%c109, %c0_168] : memref<135x64xf32, #tpu.memory_space<vmem>>, vector<1x64xf32>
      %724 = vector.extract_strided_slice %722 {offsets = [0, 24], sizes = [8, 64], strides = [1, 1]} : vector<8x112xf32> to vector<8x64xf32>
      %725 = vector.broadcast %723 : vector<1x64xf32> to vector<8x64xf32>
      %726 = arith.mulf %725, %724 : vector<8x64xf32>
      %727 = arith.addf %695, %726 : vector<8x64xf32>
      %c5_i32_169 = arith.constant 5 : i32
      %728 = arith.addi %18, %c5_i32_169 : i32
      %729 = arith.index_cast %728 : i32 to index
      %c1_170 = arith.constant 1 : index
      %c0_171 = arith.constant 0 : index
      %730 = vector.load %arg5[%729, %c1_170, %c0_171] : memref<14x14x112xf32, #tpu.memory_space<vmem>>, vector<1x8x112xf32>
      %731 = vector.shape_cast %730 : vector<1x8x112xf32> to vector<8x112xf32>
      %c110 = arith.constant 110 : index
      %c0_172 = arith.constant 0 : index
      %732 = vector.load %arg1[%c110, %c0_172] : memref<135x64xf32, #tpu.memory_space<vmem>>, vector<1x64xf32>
      %733 = vector.extract_strided_slice %731 {offsets = [0, 24], sizes = [8, 64], strides = [1, 1]} : vector<8x112xf32> to vector<8x64xf32>
      %734 = vector.broadcast %732 : vector<1x64xf32> to vector<8x64xf32>
      %735 = arith.mulf %734, %733 : vector<8x64xf32>
      %736 = arith.addf %700, %735 : vector<8x64xf32>
      %c5_i32_173 = arith.constant 5 : i32
      %737 = arith.addi %18, %c5_i32_173 : i32
      %738 = arith.index_cast %737 : i32 to index
      %c2_174 = arith.constant 2 : index
      %c0_175 = arith.constant 0 : index
      %739 = vector.load %arg5[%738, %c2_174, %c0_175] : memref<14x14x112xf32, #tpu.memory_space<vmem>>, vector<1x8x112xf32>
      %740 = vector.shape_cast %739 : vector<1x8x112xf32> to vector<8x112xf32>
      %c111 = arith.constant 111 : index
      %c0_176 = arith.constant 0 : index
      %741 = vector.load %arg1[%c111, %c0_176] : memref<135x64xf32, #tpu.memory_space<vmem>>, vector<1x64xf32>
      %742 = vector.extract_strided_slice %740 {offsets = [0, 24], sizes = [8, 64], strides = [1, 1]} : vector<8x112xf32> to vector<8x64xf32>
      %743 = vector.broadcast %741 : vector<1x64xf32> to vector<8x64xf32>
      %744 = arith.mulf %743, %742 : vector<8x64xf32>
      %745 = arith.addf %709, %744 : vector<8x64xf32>
      %c5_i32_177 = arith.constant 5 : i32
      %746 = arith.addi %18, %c5_i32_177 : i32
      %747 = arith.index_cast %746 : i32 to index
      %c3_178 = arith.constant 3 : index
      %c0_179 = arith.constant 0 : index
      %748 = vector.load %arg5[%747, %c3_178, %c0_179] : memref<14x14x112xf32, #tpu.memory_space<vmem>>, vector<1x8x112xf32>
      %749 = vector.shape_cast %748 : vector<1x8x112xf32> to vector<8x112xf32>
      %c112 = arith.constant 112 : index
      %c0_180 = arith.constant 0 : index
      %750 = vector.load %arg1[%c112, %c0_180] : memref<135x64xf32, #tpu.memory_space<vmem>>, vector<7x64xf32>
      %751 = vector.extract_strided_slice %749 {offsets = [0, 0], sizes = [8, 64], strides = [1, 1]} : vector<8x112xf32> to vector<8x64xf32>
      %752 = vector.extract_strided_slice %750 {offsets = [0, 0], sizes = [1, 64], strides = [1, 1]} : vector<7x64xf32> to vector<1x64xf32>
      %753 = vector.broadcast %752 : vector<1x64xf32> to vector<8x64xf32>
      %754 = arith.mulf %753, %751 : vector<8x64xf32>
      %755 = arith.addf %718, %754 : vector<8x64xf32>
      %756 = vector.extract_strided_slice %749 {offsets = [0, 8], sizes = [8, 64], strides = [1, 1]} : vector<8x112xf32> to vector<8x64xf32>
      %757 = vector.extract_strided_slice %750 {offsets = [1, 0], sizes = [1, 64], strides = [1, 1]} : vector<7x64xf32> to vector<1x64xf32>
      %758 = vector.broadcast %757 : vector<1x64xf32> to vector<8x64xf32>
      %759 = arith.mulf %758, %756 : vector<8x64xf32>
      %760 = arith.addf %727, %759 : vector<8x64xf32>
      %761 = vector.extract_strided_slice %749 {offsets = [0, 16], sizes = [8, 64], strides = [1, 1]} : vector<8x112xf32> to vector<8x64xf32>
      %762 = vector.extract_strided_slice %750 {offsets = [2, 0], sizes = [1, 64], strides = [1, 1]} : vector<7x64xf32> to vector<1x64xf32>
      %763 = vector.broadcast %762 : vector<1x64xf32> to vector<8x64xf32>
      %764 = arith.mulf %763, %761 : vector<8x64xf32>
      %765 = arith.addf %736, %764 : vector<8x64xf32>
      %766 = vector.extract_strided_slice %749 {offsets = [0, 24], sizes = [8, 64], strides = [1, 1]} : vector<8x112xf32> to vector<8x64xf32>
      %767 = vector.extract_strided_slice %750 {offsets = [3, 0], sizes = [1, 64], strides = [1, 1]} : vector<7x64xf32> to vector<1x64xf32>
      %768 = vector.broadcast %767 : vector<1x64xf32> to vector<8x64xf32>
      %769 = arith.mulf %768, %766 : vector<8x64xf32>
      %770 = arith.addf %745, %769 : vector<8x64xf32>
      %771 = vector.extract_strided_slice %749 {offsets = [0, 32], sizes = [8, 64], strides = [1, 1]} : vector<8x112xf32> to vector<8x64xf32>
      %772 = vector.extract_strided_slice %750 {offsets = [4, 0], sizes = [1, 64], strides = [1, 1]} : vector<7x64xf32> to vector<1x64xf32>
      %773 = vector.broadcast %772 : vector<1x64xf32> to vector<8x64xf32>
      %774 = arith.mulf %773, %771 : vector<8x64xf32>
      %775 = arith.addf %755, %774 : vector<8x64xf32>
      %776 = vector.extract_strided_slice %749 {offsets = [0, 40], sizes = [8, 64], strides = [1, 1]} : vector<8x112xf32> to vector<8x64xf32>
      %777 = vector.extract_strided_slice %750 {offsets = [5, 0], sizes = [1, 64], strides = [1, 1]} : vector<7x64xf32> to vector<1x64xf32>
      %778 = vector.broadcast %777 : vector<1x64xf32> to vector<8x64xf32>
      %779 = arith.mulf %778, %776 : vector<8x64xf32>
      %780 = arith.addf %760, %779 : vector<8x64xf32>
      %781 = vector.extract_strided_slice %749 {offsets = [0, 48], sizes = [8, 64], strides = [1, 1]} : vector<8x112xf32> to vector<8x64xf32>
      %782 = vector.extract_strided_slice %750 {offsets = [6, 0], sizes = [1, 64], strides = [1, 1]} : vector<7x64xf32> to vector<1x64xf32>
      %783 = vector.broadcast %782 : vector<1x64xf32> to vector<8x64xf32>
      %784 = arith.mulf %783, %781 : vector<8x64xf32>
      %785 = arith.addf %765, %784 : vector<8x64xf32>
      %c5_i32_181 = arith.constant 5 : i32
      %786 = arith.addi %18, %c5_i32_181 : i32
      %787 = arith.index_cast %786 : i32 to index
      %c4_182 = arith.constant 4 : index
      %c0_183 = arith.constant 0 : index
      %788 = vector.load %arg5[%787, %c4_182, %c0_183] : memref<14x14x112xf32, #tpu.memory_space<vmem>>, vector<1x8x112xf32>
      %789 = vector.shape_cast %788 : vector<1x8x112xf32> to vector<8x112xf32>
      %c119 = arith.constant 119 : index
      %c0_184 = arith.constant 0 : index
      %790 = vector.load %arg1[%c119, %c0_184] : memref<135x64xf32, #tpu.memory_space<vmem>>, vector<1x64xf32>
      %791 = vector.extract_strided_slice %789 {offsets = [0, 24], sizes = [8, 64], strides = [1, 1]} : vector<8x112xf32> to vector<8x64xf32>
      %792 = vector.broadcast %790 : vector<1x64xf32> to vector<8x64xf32>
      %793 = arith.mulf %792, %791 : vector<8x64xf32>
      %794 = arith.addf %770, %793 : vector<8x64xf32>
      %c5_i32_185 = arith.constant 5 : i32
      %795 = arith.addi %18, %c5_i32_185 : i32
      %796 = arith.index_cast %795 : i32 to index
      %c5_186 = arith.constant 5 : index
      %c0_187 = arith.constant 0 : index
      %797 = vector.load %arg5[%796, %c5_186, %c0_187] : memref<14x14x112xf32, #tpu.memory_space<vmem>>, vector<1x8x112xf32>
      %798 = vector.shape_cast %797 : vector<1x8x112xf32> to vector<8x112xf32>
      %c120 = arith.constant 120 : index
      %c0_188 = arith.constant 0 : index
      %799 = vector.load %arg1[%c120, %c0_188] : memref<135x64xf32, #tpu.memory_space<vmem>>, vector<1x64xf32>
      %800 = vector.extract_strided_slice %798 {offsets = [0, 24], sizes = [8, 64], strides = [1, 1]} : vector<8x112xf32> to vector<8x64xf32>
      %801 = vector.broadcast %799 : vector<1x64xf32> to vector<8x64xf32>
      %802 = arith.mulf %801, %800 : vector<8x64xf32>
      %803 = arith.addf %775, %802 : vector<8x64xf32>
      %c5_i32_189 = arith.constant 5 : i32
      %804 = arith.addi %18, %c5_i32_189 : i32
      %805 = arith.index_cast %804 : i32 to index
      %c6_190 = arith.constant 6 : index
      %c0_191 = arith.constant 0 : index
      %806 = vector.load %arg5[%805, %c6_190, %c0_191] : memref<14x14x112xf32, #tpu.memory_space<vmem>>, vector<1x8x112xf32>
      %807 = vector.shape_cast %806 : vector<1x8x112xf32> to vector<8x112xf32>
      %c121 = arith.constant 121 : index
      %c0_192 = arith.constant 0 : index
      %808 = vector.load %arg1[%c121, %c0_192] : memref<135x64xf32, #tpu.memory_space<vmem>>, vector<1x64xf32>
      %809 = vector.extract_strided_slice %807 {offsets = [0, 24], sizes = [8, 64], strides = [1, 1]} : vector<8x112xf32> to vector<8x64xf32>
      %810 = vector.broadcast %808 : vector<1x64xf32> to vector<8x64xf32>
      %811 = arith.mulf %810, %809 : vector<8x64xf32>
      %812 = arith.addf %780, %811 : vector<8x64xf32>
      %c6_i32 = arith.constant 6 : i32
      %813 = arith.addi %18, %c6_i32 : i32
      %814 = arith.index_cast %813 : i32 to index
      %c0_193 = arith.constant 0 : index
      %c0_194 = arith.constant 0 : index
      %815 = vector.load %arg5[%814, %c0_193, %c0_194] : memref<14x14x112xf32, #tpu.memory_space<vmem>>, vector<1x8x112xf32>
      %816 = vector.shape_cast %815 : vector<1x8x112xf32> to vector<8x112xf32>
      %c122 = arith.constant 122 : index
      %c0_195 = arith.constant 0 : index
      %817 = vector.load %arg1[%c122, %c0_195] : memref<135x64xf32, #tpu.memory_space<vmem>>, vector<1x64xf32>
      %818 = vector.extract_strided_slice %816 {offsets = [0, 24], sizes = [8, 64], strides = [1, 1]} : vector<8x112xf32> to vector<8x64xf32>
      %819 = vector.broadcast %817 : vector<1x64xf32> to vector<8x64xf32>
      %820 = arith.mulf %819, %818 : vector<8x64xf32>
      %821 = arith.addf %785, %820 : vector<8x64xf32>
      %c6_i32_196 = arith.constant 6 : i32
      %822 = arith.addi %18, %c6_i32_196 : i32
      %823 = arith.index_cast %822 : i32 to index
      %c1_197 = arith.constant 1 : index
      %c0_198 = arith.constant 0 : index
      %824 = vector.load %arg5[%823, %c1_197, %c0_198] : memref<14x14x112xf32, #tpu.memory_space<vmem>>, vector<1x8x112xf32>
      %825 = vector.shape_cast %824 : vector<1x8x112xf32> to vector<8x112xf32>
      %c123 = arith.constant 123 : index
      %c0_199 = arith.constant 0 : index
      %826 = vector.load %arg1[%c123, %c0_199] : memref<135x64xf32, #tpu.memory_space<vmem>>, vector<1x64xf32>
      %827 = vector.extract_strided_slice %825 {offsets = [0, 24], sizes = [8, 64], strides = [1, 1]} : vector<8x112xf32> to vector<8x64xf32>
      %828 = vector.broadcast %826 : vector<1x64xf32> to vector<8x64xf32>
      %829 = arith.mulf %828, %827 : vector<8x64xf32>
      %830 = arith.addf %794, %829 : vector<8x64xf32>
      %c6_i32_200 = arith.constant 6 : i32
      %831 = arith.addi %18, %c6_i32_200 : i32
      %832 = arith.index_cast %831 : i32 to index
      %c2_201 = arith.constant 2 : index
      %c0_202 = arith.constant 0 : index
      %833 = vector.load %arg5[%832, %c2_201, %c0_202] : memref<14x14x112xf32, #tpu.memory_space<vmem>>, vector<1x8x112xf32>
      %834 = vector.shape_cast %833 : vector<1x8x112xf32> to vector<8x112xf32>
      %c124 = arith.constant 124 : index
      %c0_203 = arith.constant 0 : index
      %835 = vector.load %arg1[%c124, %c0_203] : memref<135x64xf32, #tpu.memory_space<vmem>>, vector<1x64xf32>
      %836 = vector.extract_strided_slice %834 {offsets = [0, 24], sizes = [8, 64], strides = [1, 1]} : vector<8x112xf32> to vector<8x64xf32>
      %837 = vector.broadcast %835 : vector<1x64xf32> to vector<8x64xf32>
      %838 = arith.mulf %837, %836 : vector<8x64xf32>
      %839 = arith.addf %803, %838 : vector<8x64xf32>
      %c6_i32_204 = arith.constant 6 : i32
      %840 = arith.addi %18, %c6_i32_204 : i32
      %841 = arith.index_cast %840 : i32 to index
      %c3_205 = arith.constant 3 : index
      %c0_206 = arith.constant 0 : index
      %842 = vector.load %arg5[%841, %c3_205, %c0_206] : memref<14x14x112xf32, #tpu.memory_space<vmem>>, vector<1x8x112xf32>
      %843 = vector.shape_cast %842 : vector<1x8x112xf32> to vector<8x112xf32>
      %c125 = arith.constant 125 : index
      %c0_207 = arith.constant 0 : index
      %844 = vector.load %arg1[%c125, %c0_207] : memref<135x64xf32, #tpu.memory_space<vmem>>, vector<7x64xf32>
      %845 = vector.extract_strided_slice %843 {offsets = [0, 0], sizes = [8, 64], strides = [1, 1]} : vector<8x112xf32> to vector<8x64xf32>
      %846 = vector.extract_strided_slice %844 {offsets = [0, 0], sizes = [1, 64], strides = [1, 1]} : vector<7x64xf32> to vector<1x64xf32>
      %847 = vector.broadcast %846 : vector<1x64xf32> to vector<8x64xf32>
      %848 = arith.mulf %847, %845 : vector<8x64xf32>
      %849 = arith.addf %812, %848 : vector<8x64xf32>
      %850 = vector.extract_strided_slice %843 {offsets = [0, 8], sizes = [8, 64], strides = [1, 1]} : vector<8x112xf32> to vector<8x64xf32>
      %851 = vector.extract_strided_slice %844 {offsets = [1, 0], sizes = [1, 64], strides = [1, 1]} : vector<7x64xf32> to vector<1x64xf32>
      %852 = vector.broadcast %851 : vector<1x64xf32> to vector<8x64xf32>
      %853 = arith.mulf %852, %850 : vector<8x64xf32>
      %854 = arith.addf %821, %853 : vector<8x64xf32>
      %855 = vector.extract_strided_slice %843 {offsets = [0, 16], sizes = [8, 64], strides = [1, 1]} : vector<8x112xf32> to vector<8x64xf32>
      %856 = vector.extract_strided_slice %844 {offsets = [2, 0], sizes = [1, 64], strides = [1, 1]} : vector<7x64xf32> to vector<1x64xf32>
      %857 = vector.broadcast %856 : vector<1x64xf32> to vector<8x64xf32>
      %858 = arith.mulf %857, %855 : vector<8x64xf32>
      %859 = arith.addf %830, %858 : vector<8x64xf32>
      %860 = vector.extract_strided_slice %843 {offsets = [0, 24], sizes = [8, 64], strides = [1, 1]} : vector<8x112xf32> to vector<8x64xf32>
      %861 = vector.extract_strided_slice %844 {offsets = [3, 0], sizes = [1, 64], strides = [1, 1]} : vector<7x64xf32> to vector<1x64xf32>
      %862 = vector.broadcast %861 : vector<1x64xf32> to vector<8x64xf32>
      %863 = arith.mulf %862, %860 : vector<8x64xf32>
      %864 = arith.addf %839, %863 : vector<8x64xf32>
      %865 = vector.extract_strided_slice %843 {offsets = [0, 32], sizes = [8, 64], strides = [1, 1]} : vector<8x112xf32> to vector<8x64xf32>
      %866 = vector.extract_strided_slice %844 {offsets = [4, 0], sizes = [1, 64], strides = [1, 1]} : vector<7x64xf32> to vector<1x64xf32>
      %867 = vector.broadcast %866 : vector<1x64xf32> to vector<8x64xf32>
      %868 = arith.mulf %867, %865 : vector<8x64xf32>
      %869 = arith.addf %849, %868 : vector<8x64xf32>
      %870 = vector.extract_strided_slice %843 {offsets = [0, 40], sizes = [8, 64], strides = [1, 1]} : vector<8x112xf32> to vector<8x64xf32>
      %871 = vector.extract_strided_slice %844 {offsets = [5, 0], sizes = [1, 64], strides = [1, 1]} : vector<7x64xf32> to vector<1x64xf32>
      %872 = vector.broadcast %871 : vector<1x64xf32> to vector<8x64xf32>
      %873 = arith.mulf %872, %870 : vector<8x64xf32>
      %874 = arith.addf %854, %873 : vector<8x64xf32>
      %875 = vector.extract_strided_slice %843 {offsets = [0, 48], sizes = [8, 64], strides = [1, 1]} : vector<8x112xf32> to vector<8x64xf32>
      %876 = vector.extract_strided_slice %844 {offsets = [6, 0], sizes = [1, 64], strides = [1, 1]} : vector<7x64xf32> to vector<1x64xf32>
      %877 = vector.broadcast %876 : vector<1x64xf32> to vector<8x64xf32>
      %878 = arith.mulf %877, %875 : vector<8x64xf32>
      %879 = arith.addf %859, %878 : vector<8x64xf32>
      %c6_i32_208 = arith.constant 6 : i32
      %880 = arith.addi %18, %c6_i32_208 : i32
      %881 = arith.index_cast %880 : i32 to index
      %c4_209 = arith.constant 4 : index
      %c0_210 = arith.constant 0 : index
      %882 = vector.load %arg5[%881, %c4_209, %c0_210] : memref<14x14x112xf32, #tpu.memory_space<vmem>>, vector<1x8x112xf32>
      %883 = vector.shape_cast %882 : vector<1x8x112xf32> to vector<8x112xf32>
      %c132 = arith.constant 132 : index
      %c0_211 = arith.constant 0 : index
      %884 = vector.load %arg1[%c132, %c0_211] : memref<135x64xf32, #tpu.memory_space<vmem>>, vector<1x64xf32>
      %885 = vector.extract_strided_slice %883 {offsets = [0, 24], sizes = [8, 64], strides = [1, 1]} : vector<8x112xf32> to vector<8x64xf32>
      %886 = vector.broadcast %884 : vector<1x64xf32> to vector<8x64xf32>
      %887 = arith.mulf %886, %885 : vector<8x64xf32>
      %888 = arith.addf %864, %887 : vector<8x64xf32>
      %c6_i32_212 = arith.constant 6 : i32
      %889 = arith.addi %18, %c6_i32_212 : i32
      %890 = arith.index_cast %889 : i32 to index
      %c5_213 = arith.constant 5 : index
      %c0_214 = arith.constant 0 : index
      %891 = vector.load %arg5[%890, %c5_213, %c0_214] : memref<14x14x112xf32, #tpu.memory_space<vmem>>, vector<1x8x112xf32>
      %892 = vector.shape_cast %891 : vector<1x8x112xf32> to vector<8x112xf32>
      %c133 = arith.constant 133 : index
      %c0_215 = arith.constant 0 : index
      %893 = vector.load %arg1[%c133, %c0_215] : memref<135x64xf32, #tpu.memory_space<vmem>>, vector<1x64xf32>
      %894 = vector.extract_strided_slice %892 {offsets = [0, 24], sizes = [8, 64], strides = [1, 1]} : vector<8x112xf32> to vector<8x64xf32>
      %895 = vector.broadcast %893 : vector<1x64xf32> to vector<8x64xf32>
      %896 = arith.mulf %895, %894 : vector<8x64xf32>
      %897 = arith.addf %869, %896 : vector<8x64xf32>
      %c6_i32_216 = arith.constant 6 : i32
      %898 = arith.addi %18, %c6_i32_216 : i32
      %899 = arith.index_cast %898 : i32 to index
      %c6_217 = arith.constant 6 : index
      %c0_218 = arith.constant 0 : index
      %900 = vector.load %arg5[%899, %c6_217, %c0_218] : memref<14x14x112xf32, #tpu.memory_space<vmem>>, vector<1x8x112xf32>
      %901 = vector.shape_cast %900 : vector<1x8x112xf32> to vector<8x112xf32>
      %c134 = arith.constant 134 : index
      %c0_219 = arith.constant 0 : index
      %902 = vector.load %arg1[%c134, %c0_219] : memref<135x64xf32, #tpu.memory_space<vmem>>, vector<1x64xf32>
      %903 = vector.extract_strided_slice %901 {offsets = [0, 24], sizes = [8, 64], strides = [1, 1]} : vector<8x112xf32> to vector<8x64xf32>
      %904 = vector.broadcast %902 : vector<1x64xf32> to vector<8x64xf32>
      %905 = arith.mulf %904, %903 : vector<8x64xf32>
      %906 = arith.addf %874, %905 : vector<8x64xf32>
      %907 = arith.addf %888, %897 : vector<8x64xf32>
      %908 = arith.addf %906, %879 : vector<8x64xf32>
      %909 = arith.addf %907, %908 : vector<8x64xf32>
      %c0_220 = arith.constant 0 : index
      %910 = arith.index_cast %18 : i32 to index
      %c0_221 = arith.constant 0 : index
      %c0_222 = arith.constant 0 : index
      %911 = vector.load %arg4[%c0_220, %910, %c0_221, %c0_222] : memref<1x8x8x64xf32, #tpu.memory_space<vmem>>, vector<1x1x8x64xf32>
      %912 = vector.shape_cast %911 : vector<1x1x8x64xf32> to vector<8x64xf32>
      %913 = vector.shape_cast %909 : vector<8x64xf32> to vector<1x1x8x64xf32>
      tpu.vector_store %arg4[%c0_220, %910, %c0_221, %c0_222], %913 {strides = array<i32>} : memref<1x8x8x64xf32, #tpu.memory_space<vmem>>, vector<1x1x8x64xf32>,
    }
    %c8_i32_25 = arith.constant 8 : i32
    return
  }
  func.func @transform_0(%arg0: i32) -> (i32, i32) {
    %c0_i32 = arith.constant 0 : i32
    %c0_i32_0 = arith.constant 0 : i32
    %c0_i32_1 = arith.constant 0 : i32
    return %c0_i32, %c0_i32_0 : i32, i32
  }
  func.func @transform_1(%arg0: i32) -> (i32, i32) {
    %c0_i32 = arith.constant 0 : i32
    %c0_i32_0 = arith.constant 0 : i32
    %c0_i32_1 = arith.constant 0 : i32
    return %c0_i32, %c0_i32_0 : i32, i32
  }
  func.func @transform_2(%arg0: i32) -> (i32, i32, i32, i32) {
    %c0_i32 = arith.constant 0 : i32
    %c0_i32_0 = arith.constant 0 : i32
    %c0_i32_1 = arith.constant 0 : i32
    %c0_i32_2 = arith.constant 0 : i32
    return %arg0, %c0_i32, %c0_i32_0, %c0_i32_1 : i32, i32, i32, i32
  }
  func.func @transform_3(%arg0: i32) -> (i32, i32, i32, i32) {
    %c0_i32 = arith.constant 0 : i32
    %c0_i32_0 = arith.constant 0 : i32
    %c0_i32_1 = arith.constant 0 : i32
    %c0_i32_2 = arith.constant 0 : i32
    return %arg0, %c0_i32, %c0_i32_0, %c0_i32_1 : i32, i32, i32, i32
  }
}

</mosaic_0001>

<bundles_post_ra>
// kernel: tile.949
= control target key start
LH: loop header
LB: loop body
LE: loop exit
PB: predicated region body
PF: predicated region fallthrough
CT: control target
= control target key end

     0   :  { %s67_s10 = smov 56   ;;  %s68_s11 = smov 40   ;;  %vm3_vm0 = vcmask 64512   ;;  %vm9_vm1 = vcmask 523712   ;;  %vm15_vm2 = vcmask 458112   ;;  %vm21_vm3 = vcmask 392512   ;;  %s111_s0 = inlined_call_operand.vmem [shape: f32[8,8], index: 0, kind: input, shape index: {}]   ;;  %s112_s1 = inlined_call_operand.vmem [shape: f32[1,64], index: 1, kind: output, shape index: {}]  }
   0x1   :  { %v53_v0 = vld [vmem:[%s111_s0 + $0x7] sm:$0x1]   ;;  %v55_v1 = vld [vmem:[%s111_s0 + $0x5] sm:$0x1]   ;;  %v54_v2 = vld [vmem:[%s111_s0 + $0x6] sm:$0x1]  }
   0x2   :  { %7 = vrot.lane.b32.xlu0 %v53_v0, %s67_s10  ;;  %19 = vrot.lane.b32.xlu1 %v55_v1, %s68_s11  ;;  %v56_v3 = vld [vmem:[%s111_s0 + $0x4] sm:$0x1]   ;;  %v2_v4 = vld [vmem:[%s111_s0] sm:$0x1]   ;;  %s69_s18 = smov 48   ;;  %s70_s19 = smov 32  }
   0x3   :  { %4 = vst.msk [vmem:[#allocation0] sm:$0x1] %vm3_vm0, %v2_v4   ;;  %v57_v5 = vld [vmem:[%s111_s0 + $0x3] sm:$0x1]   ;;  %v58_v6 = vld [vmem:[%s111_s0 + $0x2] sm:$0x1]  }
   0x4   :  { %s71_s24 = smov 24   ;;  %s72_s25 = smov 16   ;;  %v59_v7 = vld [vmem:[%s111_s0 + $0x1] sm:$0x1]   ;;  %vm27_vm4 = vcmask 326912   ;;  %vm33_vm5 = vcmask 261312  }
   0x5   :  { %s73_s0 = smov 8   ;;  %vm39_vm6 = vcmask 195712   ;;  %vm45_vm7 = vcmask 130112  }
   0x6   :  { %13 = vrot.lane.b32.xlu0 %v54_v2, %s69_s18  ;;  %25 = vrot.lane.b32.xlu1 %v56_v3, %s70_s19 }
   0xa   :  { %31 = vrot.lane.b32.xlu0 %v57_v5, %s71_s24  ;;  %37 = vrot.lane.b32.xlu1 %v58_v6, %s72_s25 }
   0xe   :  { %43 = vrot.lane.b32.xlu0 %v59_v7, %s73_s0 }
  0x74   :  { %v8_v8 = vpop.permute.xlu0 %7   ;;  %v20_v9 = vpop.permute.xlu1 %19  }
  0x75   :  { %10 = vst.msk [vmem:[#allocation0] sm:$0x1] %vm9_vm1, %v8_v8  }
  0x78   :  { %v14_v10 = vpop.permute.xlu0 %13   ;;  %v26_v11 = vpop.permute.xlu1 %25  }
  0x79   :  { %16 = vst.msk [vmem:[#allocation0] sm:$0x1] %vm15_vm2, %v14_v10  }
  0x7a   :  { %22 = vst.msk [vmem:[#allocation0] sm:$0x1] %vm21_vm3, %v20_v9  }
  0x7b   :  { %28 = vst.msk [vmem:[#allocation0] sm:$0x1] %vm27_vm4, %v26_v11  }
  0x7c   :  { %v32_v12 = vpop.permute.xlu0 %31   ;;  %v38_v13 = vpop.permute.xlu1 %37  }
  0x7d   :  { %34 = vst.msk [vmem:[#allocation0] sm:$0x1] %vm33_vm5, %v32_v12  }
  0x7e   :  { %40 = vst.msk [vmem:[#allocation0] sm:$0x1] %vm39_vm6, %v38_v13  }
  0x80   :  { %v44_v14 = vpop.permute.xlu0 %43  }
  0x81   :  { %46 = vst.msk [vmem:[#allocation0] sm:$0x1] %vm45_vm7, %v44_v14  }
  0x88   :  { %v50_v15 = vld [vmem:[#allocation0] sm:$0x1] }
  0x89   :  { %52 = vst [vmem:[%s112_s1] sm:$0x1] %v50_v15 }

// kernel: tile.546
= control target key start
LH: loop header
LB: loop body
LE: loop exit
PB: predicated region body
PF: predicated region fallthrough
CT: control target
= control target key end

     0   :  { %s22_s0 = inlined_call_operand.vmem [shape: f32[8], index: 0, kind: input, shape index: {}]   ;;  %s23_s1 = inlined_call_operand.vmem [shape: f32[8,8], index: 1, kind: output, shape index: {}]  }
   0x1   :  { %v4_v0 = vld [vmem:[%s22_s0] ss:$0 sm:$0xff] }
   0x2   :  { %5 = vst [vmem:[%s23_s1] sm:$0xff] %v4_v0 }

// kernel: tile.660
= control target key start
LH: loop header
LB: loop body
LE: loop exit
PB: predicated region body
PF: predicated region fallthrough
CT: control target
= control target key end

     0   :  { %2 = vsyncpa [#allocation1], 0  ;;  %s44_s6 = smov [#allocation0]   ;;  %s70_s0 = inlined_call_operand.hbm [shape: f32[8], index: 0, kind: input, shape index: {}]   ;;  %s71_s1 = inlined_call_operand.vmem [shape: f32[8,8], index: 1, kind: output, shape index: {}]  }
   0x1   :  { %s9_s7 = sshll.u32 %s44_s6, 4  ;;  %s20_s10 = scalar_lea.hbm %s70_s0, 16  ;;  %s10_s7 = int_to_ptr.vmem [resolvable:$true] %s9_s7 }
   0x2   :  { %p21_p0 = scmp.ne.s32.totalorder %s70_s0, %s20_s10  ;;  %p24_p1 = scmp.lt.u32.totalorder %s20_s10, %s70_s0 }
   0x4   :  { %p26_p2 = pnand %p24_p1, %p21_p0 }
   0x6   :  { %29 = shalt.err (!%p26_p2)
}
   0x7   :  { %s30_s15 = scalar_lea.vmem %s10_s7, 16  ;;  %s34_s16 = scalar_lea.vmem %s10_s7, 32 }
   0x8   :  { %p31_p3 = scmp.ne.s32.totalorder %s10_s7, %s30_s15  ;;  %p35_p4 = scmp.lt.s32.totalorder %s10_s7, %s10_s7 }
   0x9   :  { %p36_p5 = scmp.lt.s32.totalorder %s34_s16, %s30_s15 }
   0xb   :  { %p37_p6 = por %p36_p5, %p35_p4 }
   0xd   :  { %p38_p7 = pnand %p37_p6, %p31_p3 }
   0xf   :  { %41 = shalt.err (!%p38_p7)
}
  0x10   :  { %12 = dma.hbm_to_vmem [thread:$0]  %s70_s0, 16, %s10_s7, [#allocation1]  }
  0x11   :  { %42 = dma.done.wait [#allocation1], 16  }
  0x12   :  { %43 = vsyncadd [#allocation1], 4294967280  ;;  %v16_v0 = vld [vmem:[#allocation0] ss:$0 sm:$0xff] }
  0x13   :  { %17 = vst [vmem:[%s71_s1] sm:$0xff] %v16_v0 }
  0x14   :  { %18 = vsyncpa [#allocation1], 1 }

// kernel: _lambda_.1
= control target key start
LH: loop header
LB: loop body
LE: loop exit
PB: predicated region body
PF: predicated region fallthrough
CT: control target
= control target key end

     0   :  { %s1880_s12 = smov 0   ;;  %s2740_s0 = inlined_call_operand.vmem [shape: f32[135,64], index: 0, kind: input, shape index: {}]   ;;  %s2741_s1 = inlined_call_operand.vmem [shape: f32[1,64], index: 1, kind: input, shape index: {}]   ;;  %s2742_s2 = inlined_call_operand.vmem [shape: f32[2,8,8,64], index: 2, kind: input, shape index: {}]   ;;  %s2743_s3 = inlined_call_operand.vmem [shape: f32[2,8,8,64], index: 3, kind: output, shape index: {}]  }
   0x1 LB: > { %s1716_s13 = sadd.s32 4294967295, %s1846_s12   ;;  %p1720_p0 = scmp.ge.s32.totalorder %s1846_s12, 1  ;;  %s1846_s12 = sphi %s1880_s12, %s13_s12  }
   0x2   : > { %p137_p1 = scmp.lt.s32.totalorder %s1846_s12, 3 }
   0x4   : > { %p138_p2 = pnand %p1720_p0, %p137_p1 }
   0x5   : > { %p1890_p3 = scmp.lt.s32.totalorder (!%p138_p2), %s1716_s13, 1  ;;  %vm171_vm0 = vcmask (!%p138_p2), 916480   ;;  %vm173_vm1 = vcmask (!%p138_p2), 914432   ;;  %vm187_vm2 = vcmask (!%p138_p2), 911360   ;;  %v1852_v0 = vmov (!%p138_p2), 0.0   ;;  %s1853_s22 = smov (!%p138_p2), 24  }
   0x6   : > { %141 = sbr.rel (%p138_p2) target bundleno = 517 (0x205), region = 32  ;;  %172 = vst.msk [vmem:[#allocation2] sm:$0xff] (!%p138_p2), %vm171_vm0, %v1852_v0  ;;  %175 = vst.msk [vmem:[#allocation2 + $0x10] sm:$0xff] (!%p138_p2), %vm171_vm0, %v1852_v0  ;;  %vm204_vm3 = vcmask (!%p138_p2), 195584   ;;  %vm213_vm4 = vcmask (!%p138_p2), 917184   ;;  %vm262_vm5 = vcmask (!%p138_p2), 720064  }
   0x7   : > { %174 = vst.msk [vmem:[#allocation2 + $0x8] sm:$0x3f] (!%p138_p2), %vm173_vm1, %v1852_v0  ;;  %176 = vst.msk [vmem:[#allocation2 + $0x18] sm:$0x3f] (!%p138_p2), %vm173_vm1, %v1852_v0  ;;  %v1933_v5 = vld [vmem:[%s2741_s1] ss:$0 sm:$0xff] (!%p138_p2) }
   0x8   : > { %177 = vst.msk [vmem:[#allocation2 + $0x20] sm:$0xff] (!%p138_p2), %vm171_vm0, %v1852_v0  ;;  %180 = vst.msk [vmem:[#allocation2 + $0xb0] sm:$0xff] (!%p138_p2), %vm171_vm0, %v1852_v0  ;;  %s1943_s25 = smov (!%p138_p2), 0  }
   0x9   : > { %178 = vst.msk [vmem:[#allocation2 + $0x28] sm:$0x3f] (!%p138_p2), %vm173_vm1, %v1852_v0  ;;  %181 = vst.msk [vmem:[#allocation2 + $0xb8] sm:$0x3f] (!%p138_p2), %vm173_vm1, %v1852_v0 }
   0xa   : > { %182 = vst.msk [vmem:[#allocation2 + $0xc0] sm:$0xff] (!%p138_p2), %vm171_vm0, %v1852_v0  ;;  %184 = vst.msk [vmem:[#allocation2 + $0xd0] sm:$0xff] (!%p138_p2), %vm171_vm0, %v1852_v0 }
   0xb   : > { %183 = vst.msk [vmem:[#allocation2 + $0xc8] sm:$0x3f] (!%p138_p2), %vm173_vm1, %v1852_v0  ;;  %185 = vst.msk [vmem:[#allocation2 + $0xd8] sm:$0x3f] (!%p138_p2), %vm173_vm1, %v1852_v0 }
   0xc   : > { %188 = vst.msk [vmem:[#allocation2 + $0x30] sm:$0x7] (!%p138_p2), %vm187_vm2, %v1852_v0  ;;  %189 = vst.msk [vmem:[#allocation2 + $0x40] sm:$0x7] (!%p138_p2), %vm187_vm2, %v1852_v0 }
   0xd   : > { %190 = vst.msk [vmem:[#allocation2 + $0x50] sm:$0x7] %vm187_vm2, %v1852_v0  ;;  %191 = vst.msk [vmem:[#allocation2 + $0x60] sm:$0x7] %vm187_vm2, %v1852_v0  ;;  %s2746_s13 = smov (!%p1890_p3, %s1716_s13), 1 }
   0xe   : > { %192 = vst.msk [vmem:[#allocation2 + $0x70] sm:$0x7] %vm187_vm2, %v1852_v0  ;;  %193 = vst.msk [vmem:[#allocation2 + $0x80] sm:$0x7] %vm187_vm2, %v1852_v0  ;;  %s1810_s15 = sshll.u32 %s2746_s13, 6 }
   0xf   : > { %194 = vst.msk [vmem:[#allocation2 + $0x90] sm:$0x7] %vm187_vm2, %v1852_v0  ;;  %195 = vst.msk [vmem:[#allocation2 + $0xa0] sm:$0x7] %vm187_vm2, %v1852_v0  ;;  %s165_s18 = scalar_lea.vmem %s2742_s2, %s1810_s15  ;;  %s1928_s21 = scalar_lea.vmem %s2743_s3, %s1810_s15 }
  0x10   : > { %196 = vst.msk [vmem:[#allocation2 + $0x3b] sm:$0x7] %vm187_vm2, %v1852_v0  ;;  %197 = vst.msk [vmem:[#allocation2 + $0x4b] sm:$0x7] %vm187_vm2, %v1852_v0  ;;  %v224_v1 = vld [vmem:[%s165_s18 + $0x10] sm:$0xff]  ;;  %v222_v2 = vld [vmem:[%s165_s18] sm:$0xff] }
  0x11   : > { %198 = vst.msk [vmem:[#allocation2 + $0x5b] sm:$0x7] %vm187_vm2, %v1852_v0  ;;  %199 = vst.msk [vmem:[#allocation2 + $0x6b] sm:$0x7] %vm187_vm2, %v1852_v0  ;;  %242 = vrot.lane.b32.xlu1 %v224_v1, %s1853_s22  ;;  %238 = vrot.lane.b32.xlu0 %v222_v2, %s1853_s22  ;;  %v225_v3 = vld [vmem:[%s165_s18 + $0x18] sm:$0xff]  ;;  %v223_v4 = vld [vmem:[%s165_s18 + $0x8] sm:$0xff] }
  0x12   : > { %200 = vst.msk [vmem:[#allocation2 + $0x7b] sm:$0x7] %vm187_vm2, %v1852_v0  ;;  %201 = vst.msk [vmem:[#allocation2 + $0x8b] sm:$0x7] %vm187_vm2, %v1852_v0  ;;  %v227_v6 = vld [vmem:[%s165_s18 + $0x28] sm:$0xff]  ;;  %v226_v7 = vld [vmem:[%s165_s18 + $0x20] sm:$0xff] }
  0x13   : > { %202 = vst.msk [vmem:[#allocation2 + $0x9b] sm:$0x7] %vm187_vm2, %v1852_v0  ;;  %203 = vst.msk [vmem:[#allocation2 + $0xab] sm:$0x7] %vm187_vm2, %v1852_v0  ;;  %v229_v8 = vld [vmem:[%s165_s18 + $0x38] sm:$0xff]  ;;  %v228_v9 = vld [vmem:[%s165_s18 + $0x30] sm:$0xff] }
  0x14   : > { %207 = vst.msk [vmem:[#allocation2 + $0x53] sm:$0xff] %vm204_vm3, %v1852_v0  ;;  %205 = vst.msk [vmem:[#allocation2 + $0x33] sm:$0xff] %vm204_vm3, %v1852_v0 }
  0x15   : > { %206 = vst.msk [vmem:[#allocation2 + $0x43] sm:$0xff] %vm204_vm3, %v1852_v0  ;;  %208 = vst.msk [vmem:[#allocation2 + $0x63] sm:$0xff] %vm204_vm3, %v1852_v0  ;;  %244 = vrot.lane.b32.xlu1 %v225_v3, %s1853_s22  ;;  %240 = vrot.lane.b32.xlu0 %v223_v4, %s1853_s22 }
  0x16   : > { %209 = vst.msk [vmem:[#allocation2 + $0x73] sm:$0xff] %vm204_vm3, %v1852_v0  ;;  %210 = vst.msk [vmem:[#allocation2 + $0x83] sm:$0xff] %vm204_vm3, %v1852_v0 }
  0x17   : > { %211 = vst.msk [vmem:[#allocation2 + $0x93] sm:$0xff] %vm204_vm3, %v1852_v0  ;;  %212 = vst.msk [vmem:[#allocation2 + $0xa3] sm:$0xff] %vm204_vm3, %v1852_v0 }
  0x18   : > { %216 = vst.msk [vmem:[#allocation2 + $0x53] sm:$0xff] %vm213_vm4, %v1852_v0  ;;  %214 = vst.msk [vmem:[#allocation2 + $0x33] sm:$0xff] %vm213_vm4, %v1852_v0 }
  0x19   : > { %215 = vst.msk [vmem:[#allocation2 + $0x43] sm:$0xff] %vm213_vm4, %v1852_v0  ;;  %217 = vst.msk [vmem:[#allocation2 + $0x63] sm:$0xff] %vm213_vm4, %v1852_v0  ;;  %248 = vrot.lane.b32.xlu1 %v227_v6, %s1853_s22  ;;  %246 = vrot.lane.b32.xlu0 %v226_v7, %s1853_s22 }
  0x1a   : > { %218 = vst.msk [vmem:[#allocation2 + $0x73] sm:$0xff] %vm213_vm4, %v1852_v0  ;;  %219 = vst.msk [vmem:[#allocation2 + $0x83] sm:$0xff] %vm213_vm4, %v1852_v0 }
  0x1b   : > { %220 = vst.msk [vmem:[#allocation2 + $0x93] sm:$0xff] %vm213_vm4, %v1852_v0  ;;  %221 = vst.msk [vmem:[#allocation2 + $0xa3] sm:$0xff] %vm213_vm4, %v1852_v0 }
  0x1d   : > { %252 = vrot.lane.b32.xlu1 %v229_v8, %s1853_s22  ;;  %250 = vrot.lane.b32.xlu0 %v228_v9, %s1853_s22 }
  0x83   : > { %v243_v10 = vpop.permute.xlu1 %242  ;;  %v239_v11 = vpop.permute.xlu0 %238 }
  0x84   : > { %265 = vst.msk [vmem:[#allocation2 + $0x53] sm:$0xff] %vm262_vm5, %v243_v10  ;;  %263 = vst.msk [vmem:[#allocation2 + $0x33] sm:$0xff] %vm262_vm5, %v239_v11 }
  0x87   : > { %v245_v12 = vpop.permute.xlu1 %244  ;;  %v241_v13 = vpop.permute.xlu0 %240 }
  0x88   : > { %266 = vst.msk [vmem:[#allocation2 + $0x63] sm:$0xff] %vm262_vm5, %v245_v12  ;;  %264 = vst.msk [vmem:[#allocation2 + $0x43] sm:$0xff] %vm262_vm5, %v241_v13 }
  0x8b   : > { %v249_v14 = vpop.permute.xlu1 %248  ;;  %v247_v15 = vpop.permute.xlu0 %246 }
  0x8c   : > { %268 = vst.msk [vmem:[#allocation2 + $0x83] sm:$0xff] %vm262_vm5, %v249_v14  ;;  %267 = vst.msk [vmem:[#allocation2 + $0x73] sm:$0xff] %vm262_vm5, %v247_v15 }
  0x8f   : > { %v253_v16 = vpop.permute.xlu1 %252  ;;  %v251_v17 = vpop.permute.xlu0 %250 }
  0x90   : > { %270 = vst.msk [vmem:[#allocation2 + $0xa3] sm:$0xff] %vm262_vm5, %v253_v16  ;;  %269 = vst.msk [vmem:[#allocation2 + $0x93] sm:$0xff] %vm262_vm5, %v251_v17 }
  0x91 LB: >> { %s1726_s26 = sshll.u32 %s1850_s25, 4  ;;  %s1854_s28 = smov 104   ;;  %v324_v56 = vlaneseq  ;;  %v2147_v2 = vld [vmem:[%s2740_s0 + $0x3] sm:$0x7f]  ;;  %v1727_v4 = vld [vmem:[%s2740_s0] ss:$0 sm:$0xff]  ;;  %s1850_s25 = sphi %s1943_s25, %s283_s25  }
  0x92   : >> { %s1949_s27 = scalar_lea.vmem [#allocation2], %s1726_s26  ;;  %s1855_s29 = smov 120   ;;  %v2169_v11 = vld [vmem:[%s2740_s0 + $0x10] sm:$0x7f]  ;;  %vm1632_vm6 = vcmask 523264  }
  0x93   : >> { %s1856_s30 = smov 112   ;;  %s1857_s4 = smov 88   ;;  %v325_v60 = vshrl.u32 %v324_v56, 7 }
  0x94   : >> { %s1858_s5 = smov 96   ;;  %s1859_s6 = smov 80  }
  0x95   : >> { %v2138_v63 = vsub.s32 1, %v325_v60  ;;  %v2140_v0 = vsub.s32 0, %v325_v60  ;;  %v2142_v1 = vsub.s32 4, %v325_v60  ;;  %v2153_v3 = vsub.s32 5, %v325_v60 }
  0x96   : >> { %v2171_v12 = vsub.s32 3, %v325_v60  ;;  %v2173_v13 = vsub.s32 2, %v325_v60  ;;  %v2175_v14 = vsub.s32 6, %v325_v60 }
  0x97   : >> { %v310_v18 = vld [vmem:[%s1949_s27 + $0x2] sm:$0xff]  ;;  %v1736_v25 = vld [vmem:[%s1949_s27 + $0x11] sm:$0xff]  ;;  %v333_v8 = vrot.slane %v2147_v2, %v2138_v63  ;;  %v327_v9 = vrot.slane %v2147_v2, %v2140_v0  ;;  %v361_v10 = vrot.slane %v2147_v2, %v2142_v1  ;;  %v370_v16 = vrot.slane %v2147_v2, %v2153_v3 }
  0x98   : >> { %v286_v19 = vld [vmem:[%s1949_s27] sm:$0xff]  ;;  %317 = vrot.lane.b32.xlu1 %v310_v18, %s1854_s28  ;;  %v1734_v26 = vld [vmem:[%s1949_s27 + $0x10] sm:$0xff]  ;;  %v1731_v18 = vld [vmem:[%s2740_s0 + $0xb] ss:$0 sm:$0xff] }
  0x99   : >> { %293 = vrot.lane.b32.xlu0 %v286_v19, %s1854_s28  ;;  %v1956_v20 = vld [vmem:[%s1949_s27 + $0x3] sm:$0xff]  ;;  %v1983_v27 = vld [vmem:[%s1949_s27 + $0x13] sm:$0xff] }
  0x9a   : >> { %v298_v21 = vld [vmem:[%s1949_s27 + $0x1] sm:$0xff]  ;;  %v1738_v28 = vld [vmem:[%s1949_s27 + $0x12] sm:$0xff] }
  0x9b   : >> { %v385_v22 = vld [vmem:[%s1949_s27 + $0x4] sm:$0xff]  ;;  %v1741_v29 = vld [vmem:[%s1949_s27 + $0x14] sm:$0xff] }
  0x9c   : >> { %335 = vrot.lane.b32.xlu1 %v1956_v20, %s1855_s29  ;;  %v409_v23 = vld [vmem:[%s1949_s27 + $0x6] sm:$0xff]  ;;  %v1745_v30 = vld [vmem:[%s1949_s27 + $0x16] sm:$0xff] }
  0x9d   : >> { %305 = vrot.lane.b32.xlu0 %v298_v21, %s1854_s28  ;;  %v397_v24 = vld [vmem:[%s1949_s27 + $0x5] sm:$0xff]  ;;  %v1743_v31 = vld [vmem:[%s1949_s27 + $0x15] sm:$0xff]  ;;  %v465_v21 = vrot.slane %v2169_v11, %v2140_v0 }
  0x9e   : >> { %v1750_v32 = vld [vmem:[%s1949_s27 + $0x21] sm:$0xff]  ;;  %v2037_v39 = vld [vmem:[%s1949_s27 + $0x30] sm:$0xff] }
  0x9f   : >> { %v1748_v33 = vld [vmem:[%s1949_s27 + $0x20] sm:$0xff]  ;;  %v2052_v40 = vld [vmem:[%s1949_s27 + $0x31] sm:$0xff] }
  0xa0   : >> { %353 = vrot.lane.b32.xlu1 %v1956_v20, %s1854_s28  ;;  %v1752_v34 = vld [vmem:[%s1949_s27 + $0x22] sm:$0xff]  ;;  %v2067_v41 = vld [vmem:[%s1949_s27 + $0x32] sm:$0xff] }
  0xa1   : >> { %344 = vrot.lane.b32.xlu0 %v1956_v20, %s1856_s30  ;;  %v2013_v35 = vld [vmem:[%s1949_s27 + $0x23] sm:$0xff]  ;;  %v2082_v42 = vld [vmem:[%s1949_s27 + $0x33] sm:$0xff] }
  0xa2   : >> { %v1754_v36 = vld [vmem:[%s1949_s27 + $0x24] sm:$0xff]  ;;  %v2105_v49 = vld [vmem:[%s1949_s27 + $0x34] sm:$0xff] }
  0xa3   : >> { %v1757_v37 = vld [vmem:[%s1949_s27 + $0x26] sm:$0xff]  ;;  %v2126_v57 = vld [vmem:[%s1949_s27 + $0x35] sm:$0xff] }
  0xa4   : >> { %371 = vrot.lane.b32.xlu1 %v1956_v20, %s1857_s4  ;;  %v1755_v38 = vld [vmem:[%s1949_s27 + $0x25] sm:$0xff]  ;;  %v2184_v17 = vld [vmem:[%s1949_s27 + $0x36] sm:$0xff] }
  0xa5   : >> { %362 = vrot.lane.b32.xlu0 %v1956_v20, %s1858_s5 }
  0xa8   : >> { %392 = vrot.lane.b32.xlu1 %v385_v22, %s1854_s28 }
  0xa9   : >> { %380 = vrot.lane.b32.xlu0 %v1956_v20, %s1859_s6 }
  0xac   : >> { %416 = vrot.lane.b32.xlu1 %v409_v23, %s1854_s28 }
  0xad   : >> { %404 = vrot.lane.b32.xlu0 %v397_v24, %s1854_s28  ;;  %v328_v24 = vmul.f32 %v327_v9, %v1956_v20  ;;  %v1728_v9 = vld [vmem:[%s2740_s0 + $0x1] ss:$0 sm:$0xff] }
  0xb0   : >> { %443 = vrot.lane.b32.xlu1 %v1736_v25, %s1854_s28 }
  0xb1   : >> { %431 = vrot.lane.b32.xlu0 %v1734_v26, %s1854_s28  ;;  %v352_v26 = vrot.slane %v2147_v2, %v2171_v12 }
  0xb4   : >> { %473 = vrot.lane.b32.xlu1 %v1983_v27, %s1855_s29 }
  0xb5   : >> { %455 = vrot.lane.b32.xlu0 %v1738_v28, %s1854_s28  ;;  %v343_v28 = vrot.slane %v2147_v2, %v2173_v13 }
  0xb8   : >> { %491 = vrot.lane.b32.xlu1 %v1983_v27, %s1854_s28 }
  0xb9   : >> { %482 = vrot.lane.b32.xlu0 %v1983_v27, %s1856_s30 }
  0xbc   : >> { %509 = vrot.lane.b32.xlu1 %v1983_v27, %s1857_s4 }
  0xbd   : >> { %500 = vrot.lane.b32.xlu0 %v1983_v27, %s1858_s5 }
  0xc0   : >> { %530 = vrot.lane.b32.xlu1 %v1741_v29, %s1854_s28  ;;  %v379_v29 = vrot.slane %v2147_v2, %v2175_v14  ;;  %v1730_v2 = vld [vmem:[%s2740_s0 + $0xa] ss:$0 sm:$0xff] }
  0xc1   : >> { %518 = vrot.lane.b32.xlu0 %v1983_v27, %s1859_s6 }
  0xc4   : >> { %554 = vrot.lane.b32.xlu1 %v1745_v30, %s1854_s28  ;;  %v1732_v30 = vld [vmem:[%s2740_s0 + $0xc] ss:$0 sm:$0xff] }
  0xc5   : >> { %542 = vrot.lane.b32.xlu0 %v1743_v31, %s1854_s28  ;;  %v1739_v31 = vld [vmem:[%s2740_s0 + $0xf] ss:$0 sm:$0xff] }
  0xc8   : >> { %581 = vrot.lane.b32.xlu1 %v1750_v32, %s1854_s28 }
  0xc9   : >> { %569 = vrot.lane.b32.xlu0 %v1748_v33, %s1854_s28 }
  0xcc   : >> { %602 = vrot.lane.b32.xlu1 %v1752_v34, %s1854_s28 }
  0xcd   : >> { %593 = vrot.lane.b32.xlu0 %v1752_v34, %s1856_s30 }
  0xd0   : >> { %629 = vrot.lane.b32.xlu1 %v2013_v35, %s1855_s29 }
  0xd1   : >> { %611 = vrot.lane.b32.xlu0 %v1752_v34, %s1858_s5  ;;  %v490_v34 = vrot.slane %v2169_v11, %v2171_v12 }
  0xd4   : >> { %647 = vrot.lane.b32.xlu1 %v2013_v35, %s1854_s28 }
  0xd5   : >> { %638 = vrot.lane.b32.xlu0 %v2013_v35, %s1856_s30 }
  0xd8   : >> { %665 = vrot.lane.b32.xlu1 %v2013_v35, %s1857_s4 }
  0xd9   : >> { %656 = vrot.lane.b32.xlu0 %v2013_v35, %s1858_s5 }
  0xdc   : >> { %686 = vrot.lane.b32.xlu1 %v1754_v36, %s1856_s30 }
  0xdd   : >> { %674 = vrot.lane.b32.xlu0 %v2013_v35, %s1859_s6 }
  0xe0   : >> { %704 = vrot.lane.b32.xlu1 %v1754_v36, %s1858_s5 }
  0xe1   : >> { %695 = vrot.lane.b32.xlu0 %v1754_v36, %s1854_s28  ;;  %v471_v36 = vrot.slane %v2169_v11, %v2138_v63 }
  0xe4   : >> { %728 = vrot.lane.b32.xlu1 %v1757_v37, %s1854_s28  ;;  %v481_v37 = vrot.slane %v2169_v11, %v2173_v13 }
  0xe5   : >> { %716 = vrot.lane.b32.xlu0 %v1755_v38, %s1854_s28  ;;  %v508_v38 = vrot.slane %v2169_v11, %v2153_v3 }
  0xe8   : >> { %758 = vrot.lane.b32.xlu1 %v2037_v39, %s1856_s30 }
  0xe9   : >> { %749 = vrot.lane.b32.xlu0 %v2037_v39, %s1855_s29 }
  0xec   : >> { %776 = vrot.lane.b32.xlu1 %v2037_v39, %s1858_s5 }
  0xed   : >> { %767 = vrot.lane.b32.xlu0 %v2037_v39, %s1854_s28 }
  0xf0   : >> { %794 = vrot.lane.b32.xlu1 %v2037_v39, %s1859_s6 }
  0xf1   : >> { %785 = vrot.lane.b32.xlu0 %v2037_v39, %s1857_s4 }
  0xf4   : >> { %821 = vrot.lane.b32.xlu1 %v2052_v40, %s1856_s30 }
  0xf5   : >> { %812 = vrot.lane.b32.xlu0 %v2052_v40, %s1855_s29 }
  0xf8   : >> { %839 = vrot.lane.b32.xlu1 %v2052_v40, %s1858_s5 }
  0xf9   : >> { %830 = vrot.lane.b32.xlu0 %v2052_v40, %s1854_s28 }
  0xfc   : >> { %857 = vrot.lane.b32.xlu1 %v2052_v40, %s1859_s6 }
  0xfd   : >> { %848 = vrot.lane.b32.xlu0 %v2052_v40, %s1857_s4 }
 0x100   : >> { %884 = vrot.lane.b32.xlu1 %v2067_v41, %s1856_s30 }
 0x101   : >> { %875 = vrot.lane.b32.xlu0 %v2067_v41, %s1855_s29 }
 0x104   : >> { %902 = vrot.lane.b32.xlu1 %v2067_v41, %s1858_s5 }
 0x105   : >> { %893 = vrot.lane.b32.xlu0 %v2067_v41, %s1854_s28 }
 0x108   : >> { %920 = vrot.lane.b32.xlu1 %v2067_v41, %s1859_s6 }
 0x109   : >> { %911 = vrot.lane.b32.xlu0 %v2067_v41, %s1857_s4 }
 0x10a   : >> { %v2084_v43 = vpop.permute.xlu1 %317 }
 0x10b   : >> { %v294_v44 = vpop.permute.xlu0 %293 }
 0x10c   : >> { %947 = vrot.lane.b32.xlu1 %v2082_v42, %s1856_s30  ;;  %v296_v15 = vmul.f32 %v1727_v4, %v294_v44  ;;  %v466_v44 = vmul.f32 %v1983_v27, %v465_v21 }
 0x10d   : >> { %938 = vrot.lane.b32.xlu0 %v2082_v42, %s1855_s29 }
 0x10e   : >> { %v336_v45 = vpop.permute.xlu1 %335  ;;  %v297_v20 = vadd.f32 %v1933_v5, %v296_v15  ;;  %v499_v15 = vrot.slane %v2169_v11, %v2142_v1 }
 0x10f   : >> { %v2090_v46 = vpop.permute.xlu0 %305  ;;  %v338_v23 = vmul.f32 %v336_v45, %v333_v8  ;;  %v2235_v8 = vld [vmem:[%s2740_s0 + $0x1c] sm:$0x7] }
 0x110   : >> { %965 = vrot.lane.b32.xlu1 %v2082_v42, %s1858_s5 }
 0x111   : >> { %956 = vrot.lane.b32.xlu0 %v2082_v42, %s1854_s28  ;;  %v339_v56 = vadd.f32 %v338_v23, %v297_v20  ;;  %v601_v20 = vrot.slane %v2235_v8, %v2138_v63 }
 0x112   : >> { %v2096_v47 = vpop.permute.xlu1 %353 }
 0x113   : >> { %v2098_v48 = vpop.permute.xlu0 %344 }
 0x114   : >> { %983 = vrot.lane.b32.xlu1 %v2082_v42, %s1859_s6 }
 0x115   : >> { %974 = vrot.lane.b32.xlu0 %v2082_v42, %s1857_s4 }
 0x116   : >> { %v372_v50 = vpop.permute.xlu1 %371 }
 0x117   : >> { %v363_v51 = vpop.permute.xlu0 %362  ;;  %v374_v32 = vmul.f32 %v372_v50, %v370_v16  ;;  %v2223_v50 = vld [vmem:[%s2740_s0 + $0x1f] sm:$0x7f]  ;;  %v1742_v16 = vld [vmem:[%s2740_s0 + $0x17] ss:$0 sm:$0xff] }
 0x118   : >> { %1010 = vrot.lane.b32.xlu1 %v2105_v49, %s1856_s30  ;;  %v365_v25 = vmul.f32 %v363_v51, %v361_v10  ;;  %v356_v10 = vmul.f32 %v2096_v47, %v352_v26  ;;  %v1737_v47 = vld [vmem:[%s2740_s0 + $0xe] ss:$0 sm:$0xff]  ;;  %v621_v23 = vrot.slane %v2223_v50, %v2140_v0 }
 0x119   : >> { %1001 = vrot.lane.b32.xlu0 %v2105_v49, %s1855_s29 }
 0x11a   : >> { %v2111_v52 = vpop.permute.xlu1 %392  ;;  %v366_v60 = vadd.f32 %v365_v25, %v328_v24  ;;  %v347_v25 = vmul.f32 %v2098_v48, %v343_v28  ;;  %v1744_v28 = vld [vmem:[%s2740_s0 + $0x18] ss:$0 sm:$0xff] }
 0x11b   : >> { %v2113_v53 = vpop.permute.xlu0 %380  ;;  %v395_v26 = vmul.f32 %v1730_v2, %v2111_v52 }
 0x11c   : >> { %1028 = vrot.lane.b32.xlu1 %v2105_v49, %s1858_s5  ;;  %v383_v48 = vmul.f32 %v2113_v53, %v379_v29  ;;  %v1768_v53 = vld [vmem:[%s1949_s27 + $0x40] sm:$0xff]  ;;  %v622_v29 = vmul.f32 %v2013_v35, %v621_v23  ;;  %v1749_v35 = vld [vmem:[%s2740_s0 + $0x1a] ss:$0 sm:$0xff] }
 0x11d   : >> { %1019 = vrot.lane.b32.xlu0 %v2105_v49, %s1854_s28  ;;  %v1772_v23 = vld [vmem:[%s1949_s27 + $0x42] sm:$0xff] }
 0x11e   : >> { %v2119_v54 = vpop.permute.xlu1 %416 }
 0x11f   : >> { %v405_v55 = vpop.permute.xlu0 %404  ;;  %v419_v4 = vmul.f32 %v1732_v30, %v2119_v54  ;;  %v517_v54 = vrot.slane %v2169_v11, %v2175_v14 }
 0x120   : >> { %1046 = vrot.lane.b32.xlu1 %v2105_v49, %s1859_s6  ;;  %v407_v33 = vmul.f32 %v1731_v18, %v405_v55  ;;  %v1729_v55 = vld [vmem:[%s2740_s0 + $0x2] ss:$0 sm:$0xff] }
 0x121   : >> { %1037 = vrot.lane.b32.xlu0 %v2105_v49, %s1857_s4  ;;  %v320_v24 = vmul.f32 %v1729_v55, %v2084_v43 }
 0x122   : >> { %v2128_v58 = vpop.permute.xlu1 %443  ;;  %v408_v18 = vadd.f32 %v407_v33, %v366_v60  ;;  %v1770_v60 = vld [vmem:[%s1949_s27 + $0x41] sm:$0xff] }
 0x123   : >> { %v2130_v59 = vpop.permute.xlu0 %431  ;;  %v357_v55 = vadd.f32 %v356_v10, %v320_v24  ;;  %v446_v52 = vmul.f32 %v1737_v47, %v2128_v58  ;;  %v591_v58 = vrot.slane %v2235_v8, %v2140_v0 }
 0x124   : >> { %1073 = vrot.lane.b32.xlu1 %v2126_v57, %s1856_s30 }
 0x125   : >> { %1064 = vrot.lane.b32.xlu0 %v2126_v57, %s1855_s29 }
 0x126   : >> { %v2136_v61 = vpop.permute.xlu1 %473 }
 0x127   : >> { %v456_v62 = vpop.permute.xlu0 %455  ;;  %v476_v24 = vmul.f32 %v2136_v61, %v471_v36  ;;  %v1746_v36 = vld [vmem:[%s2740_s0 + $0x19] ss:$0 sm:$0xff] }
 0x128   : >> { %1091 = vrot.lane.b32.xlu1 %v2126_v57, %s1858_s5  ;;  %v458_v27 = vmul.f32 %v1739_v31, %v456_v62  ;;  %v375_v62 = vadd.f32 %v374_v32, %v339_v56  ;;  %v308_v32 = vmul.f32 %v1728_v9, %v2090_v46  ;;  %v1751_v46 = vld [vmem:[%s2740_s0 + $0x1b] ss:$0 sm:$0xff] }
 0x129   : >> { %1082 = vrot.lane.b32.xlu0 %v2126_v57, %s1854_s28 }
 0x12a   : >> { %v492_v6 = vpop.permute.xlu1 %491  ;;  %v420_v33 = vadd.f32 %v419_v4, %v375_v62  ;;  %v348_v2 = vadd.f32 %v347_v25, %v308_v32  ;;  %v396_v4 = vadd.f32 %v395_v26, %v357_v55  ;;  %v2306_v55 = vld [vmem:[%s1949_s27 + $0x43] sm:$0xff] }
 0x12b   : >> { %v2158_v7 = vpop.permute.xlu0 %482  ;;  %v494_v21 = vmul.f32 %v492_v6, %v490_v34  ;;  %v1735_v6 = vld [vmem:[%s2740_s0 + $0xd] ss:$0 sm:$0xff]  ;;  %v459_v34 = vadd.f32 %v458_v27, %v408_v18 }
 0x12c   : >> { %1109 = vrot.lane.b32.xlu1 %v2126_v57, %s1859_s6  ;;  %v434_v27 = vmul.f32 %v1735_v6, %v2130_v59  ;;  %v485_v9 = vmul.f32 %v2158_v7, %v481_v37  ;;  %v467_v62 = vadd.f32 %v466_v44, %v420_v33  ;;  %v627_v44 = vrot.slane %v2223_v50, %v2138_v63 }
 0x12d   : >> { %1100 = vrot.lane.b32.xlu0 %v2126_v57, %s1857_s4 }
 0x12e   : >> { %v2189_v19 = vpop.permute.xlu1 %509 }
 0x12f   : >> { %v501_v22 = vpop.permute.xlu0 %500  ;;  %v512_v61 = vmul.f32 %v2189_v19, %v508_v38 }
 0x130   : >> { %1136 = vrot.lane.b32.xlu1 %v2184_v17, %s1856_s30  ;;  %v503_v56 = vmul.f32 %v501_v22, %v499_v15  ;;  %v384_v15 = vadd.f32 %v383_v48, %v348_v2 }
 0x131   : >> { %1127 = vrot.lane.b32.xlu0 %v2184_v17, %s1855_s29 }
 0x132   : >> { %v531_v45 = vpop.permute.xlu1 %530  ;;  %v504_v59 = vadd.f32 %v503_v56, %v467_v62  ;;  %v435_v25 = vadd.f32 %v434_v27, %v384_v15 }
 0x133   : >> { %v519_v51 = vpop.permute.xlu0 %518  ;;  %v533_v43 = vmul.f32 %v1742_v16, %v531_v45  ;;  %v495_v45 = vadd.f32 %v494_v21, %v459_v34  ;;  %v447_v21 = vadd.f32 %v446_v52, %v396_v4 }
 0x134   : >> { %1154 = vrot.lane.b32.xlu1 %v2184_v17, %s1858_s5  ;;  %v521_v7 = vmul.f32 %v519_v51, %v517_v54  ;;  %v610_v51 = vrot.slane %v2235_v8, %v2173_v13  ;;  %v655_v8 = vrot.slane %v2223_v50, %v2142_v1 }
 0x135   : >> { %1145 = vrot.lane.b32.xlu0 %v2184_v17, %s1854_s28  ;;  %v534_v18 = vadd.f32 %v533_v43, %v495_v45  ;;  %v486_v26 = vadd.f32 %v485_v9, %v447_v21  ;;  %v477_v43 = vadd.f32 %v476_v24, %v435_v25  ;;  %v637_v45 = vrot.slane %v2223_v50, %v2173_v13 }
 0x136   : >> { %v555_v30 = vpop.permute.xlu1 %554  ;;  %v664_v9 = vrot.slane %v2223_v50, %v2153_v3 }
 0x137   : >> { %v543_v31 = vpop.permute.xlu0 %542  ;;  %v522_v11 = vadd.f32 %v521_v7, %v486_v26  ;;  %v557_v19 = vmul.f32 %v1746_v36, %v555_v30  ;;  %v513_v48 = vadd.f32 %v512_v61, %v477_v43  ;;  %v2339_v7 = vld [vmem:[%s2740_s0 + $0x2b] sm:$0x7f] }
 0x138   : >> { %1172 = vrot.lane.b32.xlu1 %v2184_v17, %s1859_s6  ;;  %v545_v47 = vmul.f32 %v1744_v28, %v543_v31 }
 0x139   : >> { %1163 = vrot.lane.b32.xlu0 %v2184_v17, %s1857_s4  ;;  %v558_v30 = vadd.f32 %v557_v19, %v513_v48  ;;  %v1758_v19 = vld [vmem:[%s2740_s0 + $0x2a] ss:$0 sm:$0xff] }
 0x13a   : >> { %v582_v10 = vpop.permute.xlu1 %581  ;;  %v546_v54 = vadd.f32 %v545_v47, %v504_v59  ;;  %v673_v59 = vrot.slane %v2223_v50, %v2175_v14 }
 0x13b   : >> { %v570_v16 = vpop.permute.xlu0 %569  ;;  %v584_v22 = vmul.f32 %v1751_v46, %v582_v10  ;;  %v646_v46 = vrot.slane %v2223_v50, %v2171_v12 }
 0x13c   : >> { %1199 = vrot.lane.b32.xlu1 %v1770_v60, %s1854_s28  ;;  %v572_v33 = vmul.f32 %v1749_v35, %v570_v16 }
 0x13d   : >> { %1187 = vrot.lane.b32.xlu0 %v1768_v53, %s1854_s28  ;;  %v585_v37 = vadd.f32 %v584_v22, %v534_v18 }
 0x13e   : >> { %v603_v31 = vpop.permute.xlu1 %602  ;;  %v573_v56 = vadd.f32 %v572_v33, %v522_v11 }
 0x13f   : >> { %v594_v32 = vpop.permute.xlu0 %593  ;;  %v623_v34 = vadd.f32 %v622_v29, %v585_v37  ;;  %v605_v60 = vmul.f32 %v603_v31, %v601_v20  ;;  %v680_v20 = vld [vmem:[%s2740_s0 + $0x26] sm:$0x7] }
 0x140   : >> { %v596_v6 = vmul.f32 %v594_v32, %v591_v58  ;;  %1220 = vrot.lane.b32.xlu1 %v1772_v23, %s1854_s28  ;;  %v684_v35 = vrot.slane %v680_v20, %v2140_v0  ;;  %v703_v61 = vrot.slane %v680_v20, %v2173_v13  ;;  %v694_v31 = vrot.slane %v680_v20, %v2138_v63 }
 0x141   : >> { %1211 = vrot.lane.b32.xlu0 %v1772_v23, %s1856_s30  ;;  %v606_v10 = vadd.f32 %v605_v60, %v558_v30  ;;  %v741_v32 = vrot.slane %v2339_v7, %v2140_v0 }
 0x142   : >> { %v597_v38 = vadd.f32 %v596_v6, %v546_v54  ;;  %v630_v52 = vpop.permute.xlu1 %629 }
 0x143   : >> { %v612_v28 = vpop.permute.xlu0 %611  ;;  %v632_v53 = vmul.f32 %v630_v52, %v627_v44  ;;  %v1774_v44 = vld [vmem:[%s1949_s27 + $0x44] sm:$0xff]  ;;  %v742_v11 = vmul.f32 %v2037_v39, %v741_v32 }
 0x144   : >> { %v614_v58 = vmul.f32 %v612_v28, %v610_v51  ;;  %1247 = vrot.lane.b32.xlu1 %v2306_v55, %s1855_s29  ;;  %v1777_v28 = vld [vmem:[%s1949_s27 + $0x46] sm:$0xff] }
 0x145   : >> { %1229 = vrot.lane.b32.xlu0 %v1772_v23, %s1858_s5  ;;  %v633_v29 = vadd.f32 %v632_v53, %v597_v38  ;;  %v1756_v38 = vld [vmem:[%s2740_s0 + $0x29] ss:$0 sm:$0xff] }
 0x146   : >> { %v615_v2 = vadd.f32 %v614_v58, %v573_v56  ;;  %v648_v4 = vpop.permute.xlu1 %647  ;;  %v757_v56 = vrot.slane %v2339_v7, %v2173_v13  ;;  %v747_v58 = vrot.slane %v2339_v7, %v2138_v63 }
 0x147   : >> { %v639_v27 = vpop.permute.xlu0 %638  ;;  %v650_v16 = vmul.f32 %v648_v4, %v646_v46  ;;  %v1775_v46 = vld [vmem:[%s1949_s27 + $0x45] sm:$0xff] }
 0x148   : >> { %v641_v62 = vmul.f32 %v639_v27, %v637_v45  ;;  %1265 = vrot.lane.b32.xlu1 %v2306_v55, %s1854_s28  ;;  %v1782_v27 = vld [vmem:[%s1949_s27 + $0x51] sm:$0xff] }
 0x149   : >> { %1256 = vrot.lane.b32.xlu0 %v2306_v55, %s1856_s30  ;;  %v651_v18 = vadd.f32 %v650_v16, %v615_v2 }
 0x14a   : >> { %v642_v47 = vadd.f32 %v641_v62, %v606_v10  ;;  %v666_v22 = vpop.permute.xlu1 %665  ;;  %v775_v62 = vrot.slane %v2339_v7, %v2142_v1 }
 0x14b   : >> { %v657_v15 = vpop.permute.xlu0 %656  ;;  %v668_v21 = vmul.f32 %v666_v22, %v664_v9  ;;  %v1780_v9 = vld [vmem:[%s1949_s27 + $0x50] sm:$0xff] }
 0x14c   : >> { %v659_v24 = vmul.f32 %v657_v15, %v655_v8  ;;  %1283 = vrot.lane.b32.xlu1 %v2306_v55, %s1857_s4 }
 0x14d   : >> { %1274 = vrot.lane.b32.xlu0 %v2306_v55, %s1858_s5  ;;  %v669_v37 = vadd.f32 %v668_v21, %v633_v29  ;;  %v2369_v29 = vld [vmem:[%s2740_s0 + $0x32] sm:$0x7f] }
 0x14e   : >> { %v660_v23 = vadd.f32 %v659_v24, %v623_v34  ;;  %v687_v25 = vpop.permute.xlu1 %686  ;;  %v2382_v21 = vld [vmem:[%s1949_s27 + $0x53] sm:$0xff]  ;;  %v820_v32 = vrot.slane %v2369_v29, %v2173_v13 }
 0x14f   : >> { %v675_v26 = vpop.permute.xlu0 %674  ;;  %v689_v36 = vmul.f32 %v687_v25, %v684_v35  ;;  %v1784_v24 = vld [vmem:[%s1949_s27 + $0x52] sm:$0xff]  ;;  %v784_v25 = vrot.slane %v2339_v7, %v2153_v3 }
 0x150   : >> { %v677_v50 = vmul.f32 %v675_v26, %v673_v59  ;;  %1304 = vrot.lane.b32.xlu1 %v1774_v44, %s1856_s30 }
 0x151   : >> { %1292 = vrot.lane.b32.xlu0 %v2306_v55, %s1859_s6  ;;  %v690_v51 = vadd.f32 %v689_v36, %v651_v18  ;;  %v766_v18 = vrot.slane %v2339_v7, %v2171_v12 }
 0x152   : >> { %v678_v54 = vadd.f32 %v677_v50, %v642_v47  ;;  %v705_v33 = vpop.permute.xlu1 %704  ;;  %v804_v47 = vrot.slane %v2369_v29, %v2140_v0 }
 0x153   : >> { %v696_v6 = vpop.permute.xlu0 %695  ;;  %v707_v34 = vmul.f32 %v705_v33, %v703_v61  ;;  %v810_v33 = vrot.slane %v2369_v29, %v2138_v63 }
 0x154   : >> { %v698_v43 = vmul.f32 %v696_v6, %v694_v31  ;;  %1322 = vrot.lane.b32.xlu1 %v1774_v44, %s1858_s5  ;;  %v805_v26 = vmul.f32 %v2052_v40, %v804_v47  ;;  %v2404_v40 = vld [vmem:[%s2740_s0 + $0x39] sm:$0x7f] }
 0x155   : >> { %1313 = vrot.lane.b32.xlu0 %v1774_v44, %s1854_s28  ;;  %v708_v48 = vadd.f32 %v707_v34, %v669_v37  ;;  %v793_v37 = vrot.slane %v2339_v7, %v2175_v14 }
 0x156   : >> { %v699_v52 = vadd.f32 %v698_v43, %v660_v23  ;;  %v729_v45 = vpop.permute.xlu1 %728 }
 0x157   : >> { %v717_v39 = vpop.permute.xlu0 %716  ;;  %v731_v60 = vmul.f32 %v1758_v19, %v729_v45  ;;  %v838_v19 = vrot.slane %v2369_v29, %v2142_v1 }
 0x158   : >> { %v719_v53 = vmul.f32 %v1756_v38, %v717_v39  ;;  %v743_v30 = vadd.f32 %v742_v11, %v699_v52  ;;  %1346 = vrot.lane.b32.xlu1 %v1777_v28, %s1854_s28  ;;  %v829_v52 = vrot.slane %v2369_v29, %v2171_v12  ;;  %v867_v28 = vrot.slane %v2404_v40, %v2140_v0  ;;  %v1787_v39 = vld [vmem:[%s1949_s27 + $0x54] sm:$0xff] }
 0x159   : >> { %1334 = vrot.lane.b32.xlu0 %v1775_v46, %s1854_s28  ;;  %v732_v2 = vadd.f32 %v731_v60, %v690_v51 }
 0x15a   : >> { %v720_v4 = vadd.f32 %v719_v53, %v678_v54  ;;  %v759_v10 = vpop.permute.xlu1 %758  ;;  %v856_v53 = vrot.slane %v2369_v29, %v2175_v14 }
 0x15b   : >> { %v750_v16 = vpop.permute.xlu0 %749  ;;  %v761_v8 = vmul.f32 %v759_v10, %v757_v56  ;;  %v1791_v10 = vld [vmem:[%s1949_s27 + $0x56] sm:$0xff] }
 0x15c   : >> { %v752_v20 = vmul.f32 %v750_v16, %v747_v58  ;;  %1373 = vrot.lane.b32.xlu1 %v1782_v27, %s1854_s28  ;;  %v1789_v16 = vld [vmem:[%s1949_s27 + $0x55] sm:$0xff] }
 0x15d   : >> { %1361 = vrot.lane.b32.xlu0 %v1780_v9, %s1854_s28  ;;  %v762_v22 = vadd.f32 %v761_v8, %v720_v4  ;;  %v868_v4 = vmul.f32 %v2067_v41, %v867_v28  ;;  %v873_v41 = vrot.slane %v2404_v40, %v2138_v63 }
 0x15e   : >> { %v753_v15 = vadd.f32 %v752_v20, %v708_v48  ;;  %v777_v35 = vpop.permute.xlu1 %776  ;;  %v883_v20 = vrot.slane %v2404_v40, %v2173_v13 }
 0x15f   : >> { %v768_v59 = vpop.permute.xlu0 %767  ;;  %v779_v23 = vmul.f32 %v777_v35, %v775_v62  ;;  %v1796_v35 = vld [vmem:[%s1949_s27 + $0x61] sm:$0xff] }
 0x160   : >> { %v770_v44 = vmul.f32 %v768_v59, %v766_v18  ;;  %1403 = vrot.lane.b32.xlu1 %v2382_v21, %s1855_s29  ;;  %v1794_v59 = vld [vmem:[%s1949_s27 + $0x60] sm:$0xff] }
 0x161   : >> { %1385 = vrot.lane.b32.xlu0 %v1784_v24, %s1854_s28  ;;  %v780_v61 = vadd.f32 %v779_v23, %v743_v30 }
 0x162   : >> { %v771_v36 = vadd.f32 %v770_v44, %v732_v2  ;;  %v795_v50 = vpop.permute.xlu1 %794  ;;  %v847_v2 = vrot.slane %v2369_v29, %v2153_v3  ;;  %v901_v44 = vrot.slane %v2404_v40, %v2142_v1 }
 0x163   : >> { %v786_v31 = vpop.permute.xlu0 %785  ;;  %v797_v51 = vmul.f32 %v795_v50, %v793_v37 }
 0x164   : >> { %v788_v54 = vmul.f32 %v786_v31, %v784_v25  ;;  %v806_v7 = vadd.f32 %v805_v26, %v771_v36  ;;  %1421 = vrot.lane.b32.xlu1 %v2382_v21, %s1854_s28 }
 0x165   : >> { %1412 = vrot.lane.b32.xlu0 %v2382_v21, %s1856_s30  ;;  %v798_v6 = vadd.f32 %v797_v51, %v762_v22  ;;  %v2436_v22 = vld [vmem:[%s2740_s0 + $0x40] sm:$0x7f] }
 0x166   : >> { %v789_v34 = vadd.f32 %v788_v54, %v753_v15  ;;  %v822_v43 = vpop.permute.xlu1 %821  ;;  %v930_v36 = vrot.slane %v2436_v22, %v2140_v0  ;;  %v1798_v51 = vld [vmem:[%s1949_s27 + $0x62] sm:$0xff]  ;;  %v946_v28 = vrot.slane %v2436_v22, %v2173_v13 }
 0x167   : >> { %v813_v11 = vpop.permute.xlu0 %812  ;;  %v824_v38 = vmul.f32 %v822_v43, %v820_v32  ;;  %v2449_v32 = vld [vmem:[%s1949_s27 + $0x63] sm:$0xff]  ;;  %v910_v43 = vrot.slane %v2404_v40, %v2153_v3 }
 0x168   : >> { %v815_v48 = vmul.f32 %v813_v11, %v810_v33  ;;  %1439 = vrot.lane.b32.xlu1 %v2382_v21, %s1857_s4  ;;  %v931_v11 = vmul.f32 %v2082_v42, %v930_v36  ;;  %v2471_v42 = vld [vmem:[%s2740_s0 + $0x47] sm:$0x7f]  ;;  %v1052_v36 = vld [vmem:[%s2740_s0 + $0x4e] sm:$0x7f] }
 0x169   : >> { %1430 = vrot.lane.b32.xlu0 %v2382_v21, %s1858_s5  ;;  %v825_v46 = vadd.f32 %v824_v38, %v789_v34 }
 0x16a   : >> { %v816_v45 = vadd.f32 %v815_v48, %v780_v61  ;;  %v840_v56 = vpop.permute.xlu1 %839  ;;  %v892_v61 = vrot.slane %v2404_v40, %v2171_v12 }
 0x16b   : >> { %v831_v60 = vpop.permute.xlu0 %830  ;;  %v842_v58 = vmul.f32 %v840_v56, %v838_v19 }
 0x16c   : >> { %v833_v30 = vmul.f32 %v831_v60, %v829_v52  ;;  %1460 = vrot.lane.b32.xlu1 %v1787_v39, %s1854_s28  ;;  %v936_v39 = vrot.slane %v2436_v22, %v2138_v63 }
 0x16d   : >> { %1448 = vrot.lane.b32.xlu0 %v2382_v21, %s1859_s6  ;;  %v843_v27 = vadd.f32 %v842_v58, %v806_v7  ;;  %v919_v7 = vrot.slane %v2404_v40, %v2175_v14 }
 0x16e   : >> { %v834_v9 = vadd.f32 %v833_v30, %v798_v6  ;;  %v858_v62 = vpop.permute.xlu1 %857  ;;  %v964_v30 = vrot.slane %v2436_v22, %v2142_v1 }
 0x16f   : >> { %v849_v8 = vpop.permute.xlu0 %848  ;;  %v860_v18 = vmul.f32 %v858_v62, %v856_v53  ;;  %v1801_v62 = vld [vmem:[%s1949_s27 + $0x64] sm:$0xff] }
 0x170   : >> { %v851_v29 = vmul.f32 %v849_v8, %v847_v2  ;;  %v869_v47 = vadd.f32 %v868_v4, %v834_v9  ;;  %1484 = vrot.lane.b32.xlu1 %v1791_v10, %s1854_s28  ;;  %v993_v9 = vrot.slane %v2471_v42, %v2140_v0 }
 0x171   : >> { %1472 = vrot.lane.b32.xlu0 %v1789_v16, %s1854_s28  ;;  %v861_v15 = vadd.f32 %v860_v18, %v825_v46  ;;  %v982_v18 = vrot.slane %v2436_v22, %v2175_v14 }
 0x172   : >> { %v852_v24 = vadd.f32 %v851_v29, %v816_v45  ;;  %v885_v37 = vpop.permute.xlu1 %884 }
 0x173   : >> { %v876_v23 = vpop.permute.xlu0 %875  ;;  %v887_v25 = vmul.f32 %v885_v37, %v883_v20  ;;  %v1803_v37 = vld [vmem:[%s1949_s27 + $0x65] sm:$0xff] }
 0x174   : >> { %v878_v26 = vmul.f32 %v876_v23, %v873_v41  ;;  %1511 = vrot.lane.b32.xlu1 %v1796_v35, %s1854_s28 }
 0x175   : >> { %1499 = vrot.lane.b32.xlu0 %v1794_v59, %s1854_s28  ;;  %v888_v50 = vadd.f32 %v887_v25, %v852_v24  ;;  %v1805_v59 = vld [vmem:[%s1949_s27 + $0x66] sm:$0xff]  ;;  %v1009_v25 = vrot.slane %v2471_v42, %v2173_v13 }
 0x176   : >> { %v879_v31 = vadd.f32 %v878_v26, %v843_v27  ;;  %v903_v54 = vpop.permute.xlu1 %902  ;;  %v955_v27 = vrot.slane %v2436_v22, %v2171_v12 }
 0x177   : >> { %v894_v33 = vpop.permute.xlu0 %893  ;;  %v905_v6 = vmul.f32 %v903_v54, %v901_v44 }
 0x178   : >> { %v896_v34 = vmul.f32 %v894_v33, %v892_v61  ;;  %1541 = vrot.lane.b32.xlu1 %v2449_v32, %s1855_s29  ;;  %v1027_v33 = vrot.slane %v2471_v42, %v2142_v1  ;;  %s1807_s29 = sshll.u32 %s1850_s25, 3  ;;  %s283_s25 = sadd.s32 1, %s1850_s25  }
 0x179   : >> { %1523 = vrot.lane.b32.xlu0 %v1798_v51, %s1854_s28  ;;  %v906_v19 = vadd.f32 %v905_v6, %v869_v47  ;;  %v973_v47 = vrot.slane %v2436_v22, %v2153_v3  ;;  %v999_v22 = vrot.slane %v2471_v42, %v2138_v63  ;;  %s1631_s26 = scalar_lea.vmem %s1928_s21, %s1807_s29  ;;  %p280_p4 = scmp.ge.s32.totalorder %s283_s25, 8  }
 0x17a   : >> { %v897_v38 = vadd.f32 %v896_v34, %v861_v15  ;;  %v921_v48 = vpop.permute.xlu1 %920  ;;  %v994_v15 = vmul.f32 %v2105_v49, %v993_v9  ;;  %v1018_v34 = vrot.slane %v2471_v42, %v2171_v12  ;;  %v2518_v9 = vld [vmem:[%s2740_s0 + $0x55] sm:$0x7f] }
 0x17b   : >> { %v912_v52 = vpop.permute.xlu0 %911  ;;  %v923_v46 = vmul.f32 %v921_v48, %v919_v7 }
 0x17c   : >> { %v914_v45 = vmul.f32 %v912_v52, %v910_v43  ;;  %v932_v40 = vadd.f32 %v931_v11, %v897_v38  ;;  %1559 = vrot.lane.b32.xlu1 %v2449_v32, %s1854_s28  ;;  %v1056_v43 = vrot.slane %v1052_v36, %v2140_v0  ;;  %v1045_v52 = vrot.slane %v2471_v42, %v2175_v14 }
 0x17d   : >> { %1550 = vrot.lane.b32.xlu0 %v2449_v32, %s1856_s30  ;;  %v924_v56 = vadd.f32 %v923_v46, %v888_v50 }
 0x17e   : >> { %v915_v60 = vadd.f32 %v914_v45, %v879_v31  ;;  %v948_v53 = vpop.permute.xlu1 %947  ;;  %v1036_v45 = vrot.slane %v2471_v42, %v2153_v3 }
 0x17f   : >> { %v939_v58 = vpop.permute.xlu0 %938  ;;  %v950_v2 = vmul.f32 %v948_v53, %v946_v28 }
 0x180   : >> { %v941_v4 = vmul.f32 %v939_v58, %v936_v39  ;;  %1577 = vrot.lane.b32.xlu1 %v2449_v32, %s1857_s4  ;;  %v1057_v39 = vmul.f32 %v2126_v57, %v1056_v43  ;;  %v1072_v58 = vrot.slane %v1052_v36, %v2173_v13 }
 0x181   : >> { %1568 = vrot.lane.b32.xlu0 %v2449_v32, %s1858_s5  ;;  %v951_v10 = vadd.f32 %v950_v2, %v915_v60 }
 0x182   : >> { %v942_v16 = vadd.f32 %v941_v4, %v906_v19  ;;  %v966_v8 = vpop.permute.xlu1 %965  ;;  %v1062_v4 = vrot.slane %v1052_v36, %v2138_v63 }
 0x183   : >> { %v957_v20 = vpop.permute.xlu0 %956  ;;  %v968_v29 = vmul.f32 %v966_v8, %v964_v30 }
 0x184   : >> { %v959_v41 = vmul.f32 %v957_v20, %v955_v27  ;;  %1598 = vrot.lane.b32.xlu1 %v1801_v62, %s1854_s28  ;;  %v1090_v62 = vrot.slane %v1052_v36, %v2142_v1 }
 0x185   : >> { %1586 = vrot.lane.b32.xlu0 %v2449_v32, %s1859_s6  ;;  %v969_v24 = vadd.f32 %v968_v29, %v932_v40  ;;  %v1119_v29 = vrot.slane %v2518_v9, %v2140_v0 }
 0x186   : >> { %v960_v35 = vadd.f32 %v959_v41, %v924_v56  ;;  %v984_v23 = vpop.permute.xlu1 %983 }
 0x187   : >> { %v975_v44 = vpop.permute.xlu0 %974  ;;  %v986_v26 = vmul.f32 %v984_v23, %v982_v18  ;;  %v1081_v18 = vrot.slane %v1052_v36, %v2171_v12  ;;  %v1099_v23 = vrot.slane %v1052_v36, %v2153_v3 }
 0x188   : >> { %v977_v61 = vmul.f32 %v975_v44, %v973_v47  ;;  %v995_v49 = vadd.f32 %v994_v15, %v960_v35  ;;  %1622 = vrot.lane.b32.xlu1 %v1805_v59, %s1854_s28  ;;  %v1108_v35 = vrot.slane %v1052_v36, %v2175_v14  ;;  %v1120_v44 = vmul.f32 %v2184_v17, %v1119_v29 }
 0x189   : >> { %1610 = vrot.lane.b32.xlu0 %v1803_v37, %s1854_s28  ;;  %v987_v50 = vadd.f32 %v986_v26, %v951_v10 }
 0x18a   : >> { %v978_v31 = vadd.f32 %v977_v61, %v942_v16  ;;  %v1011_v51 = vpop.permute.xlu1 %1010 }
 0x18b   : >> { %v1002_v54 = vpop.permute.xlu0 %1001  ;;  %v1013_v7 = vmul.f32 %v1011_v51, %v1009_v25  ;;  %v1125_v51 = vrot.slane %v2518_v9, %v2138_v63 }
 0x18c   : >> { %v1004_v6 = vmul.f32 %v1002_v54, %v999_v22 }
 0x18d   : >> { %v1014_v11 = vadd.f32 %v1013_v7, %v978_v31 }
 0x18e   : >> { %v1005_v19 = vadd.f32 %v1004_v6, %v969_v24  ;;  %v1029_v38 = vpop.permute.xlu1 %1028 }
 0x18f   : >> { %v1020_v48 = vpop.permute.xlu0 %1019  ;;  %v1031_v28 = vmul.f32 %v1029_v38, %v1027_v33 }
 0x190   : >> { %v1022_v46 = vmul.f32 %v1020_v48, %v1018_v34  ;;  %v1153_v48 = vrot.slane %v2518_v9, %v2142_v1 }
 0x191   : >> { %v1032_v40 = vadd.f32 %v1031_v28, %v995_v49  ;;  %v1135_v49 = vrot.slane %v2518_v9, %v2173_v13 }
 0x192   : >> { %v1023_v56 = vadd.f32 %v1022_v46, %v987_v50  ;;  %v1047_v60 = vpop.permute.xlu1 %1046 }
 0x193   : >> { %v1038_v53 = vpop.permute.xlu0 %1037  ;;  %v1049_v30 = vmul.f32 %v1047_v60, %v1045_v52  ;;  %v2540_v52 = vld [vmem:[%s2740_s0 + $0x61] sm:$0x7f] }
 0x194   : >> { %v1040_v2 = vmul.f32 %v1038_v53, %v1036_v45  ;;  %v1058_v27 = vadd.f32 %v1057_v39, %v1023_v56  ;;  %v1239_v39 = vrot.slane %v2540_v52, %v2140_v0 }
 0x195   : >> { %v1050_v10 = vadd.f32 %v1049_v30, %v1014_v11 }
 0x196   : >> { %v1041_v42 = vadd.f32 %v1040_v2, %v1005_v19  ;;  %v1074_v16 = vpop.permute.xlu1 %1073  ;;  %v1240_v30 = vmul.f32 %v2306_v55, %v1239_v39  ;;  %v2568_v55 = vld [vmem:[%s2740_s0 + $0x5e] sm:$0x7] }
 0x197   : >> { %v1065_v57 = vpop.permute.xlu0 %1064  ;;  %v1076_v8 = vmul.f32 %v1074_v16, %v1072_v58 }
 0x198   : >> { %v1067_v20 = vmul.f32 %v1065_v57, %v1062_v4 }
 0x199   : >> { %v1077_v41 = vadd.f32 %v1076_v8, %v1041_v42  ;;  %v1144_v8 = vrot.slane %v2518_v9, %v2171_v12 }
 0x19a   : >> { %v1068_v47 = vadd.f32 %v1067_v20, %v1032_v40  ;;  %v1092_v15 = vpop.permute.xlu1 %1091  ;;  %v1771_v40 = vld [vmem:[%s2740_s0 + $0x5d] ss:$0 sm:$0xff]  ;;  %v1769_v20 = vld [vmem:[%s2740_s0 + $0x5c] ss:$0 sm:$0xff] }
 0x19b   : >> { %v1083_v24 = vpop.permute.xlu0 %1082  ;;  %v1094_v59 = vmul.f32 %v1092_v15, %v1090_v62  ;;  %v2577_v15 = vld [vmem:[%s2740_s0 + $0x68] sm:$0x7] }
 0x19c   : >> { %v1085_v37 = vmul.f32 %v1083_v24, %v1081_v18 }
 0x19d   : >> { %v1095_v25 = vadd.f32 %v1094_v59, %v1058_v27 }
 0x19e   : >> { %v1086_v26 = vadd.f32 %v1085_v37, %v1050_v10  ;;  %v1110_v61 = vpop.permute.xlu1 %1109 }
 0x19f   : >> { %v1101_v22 = vpop.permute.xlu0 %1100  ;;  %v1112_v50 = vmul.f32 %v1110_v61, %v1108_v35  ;;  %v1264_v35 = vrot.slane %v2540_v52, %v2171_v12 }
 0x1a0   : >> { %v1103_v31 = vmul.f32 %v1101_v22, %v1099_v23  ;;  %v1121_v54 = vadd.f32 %v1120_v44, %v1086_v26  ;;  %v2588_v26 = vld [vmem:[%s2740_s0 + $0x70] sm:$0x7f] }
 0x1a1   : >> { %v1113_v33 = vadd.f32 %v1112_v50, %v1077_v41 }
 0x1a2   : >> { %v1104_v7 = vadd.f32 %v1103_v31, %v1068_v47  ;;  %v1137_v6 = vpop.permute.xlu1 %1136  ;;  %v1228_v47 = vrot.slane %v2568_v55, %v2173_v13 }
 0x1a3   : >> { %v1128_v34 = vpop.permute.xlu0 %1127  ;;  %v1139_v36 = vmul.f32 %v1137_v6, %v1135_v49 }
 0x1a4   : >> { %v1130_v43 = vmul.f32 %v1128_v34, %v1125_v51 }
 0x1a5   : >> { %v2531_v17 = vadd.f32 %v1139_v36, %v1104_v7 }
 0x1a6   : >> { %v2533_v11 = vadd.f32 %v1130_v43, %v1095_v25  ;;  %v1155_v19 = vpop.permute.xlu1 %1154  ;;  %v1302_v25 = vrot.slane %v2577_v15, %v2140_v0 }
 0x1a7   : >> { %v1146_v38 = vpop.permute.xlu0 %1145  ;;  %v1157_v45 = vmul.f32 %v1155_v19, %v1153_v48 }
 0x1a8   : >> { %v1148_v41 = vmul.f32 %v1146_v38, %v1144_v8 }
 0x1a9   : >> { %v1158_v53 = vadd.f32 %v1157_v45, %v1121_v54  ;;  %v1395_v54 = vrot.slane %v2588_v26, %v2140_v0 }
 0x1aa   : >> { %v2542_v28 = vpop.permute.xlu1 %1172  ;;  %v1149_v23 = vadd.f32 %v1148_v41, %v1113_v33  ;;  %v1778_v33 = vld [vmem:[%s2740_s0 + $0x6c] ss:$0 sm:$0xff] }
 0x1ab   : >> { %v2544_v46 = vpop.permute.xlu0 %1163  ;;  %v1396_v19 = vmul.f32 %v2382_v21, %v1395_v54 }
 0x1ae   : >> { %v1200_v56 = vpop.permute.xlu1 %1199 }
 0x1af   : >> { %v1188_v60 = vpop.permute.xlu0 %1187  ;;  %v1202_v58 = vmul.f32 %v1771_v40, %v1200_v56 }
 0x1b0   : >> { %v1190_v24 = vmul.f32 %v1769_v20, %v1188_v60  ;;  %v1273_v60 = vrot.slane %v2540_v52, %v2142_v1 }
 0x1b1   : >> { %v1203_v2 = vadd.f32 %v1202_v58, %v1158_v53  ;;  %v1312_v53 = vrot.slane %v2577_v15, %v2138_v63 }
 0x1b2   : >> { %v2552_v4 = vpop.permute.xlu1 %1220  ;;  %v1191_v61 = vadd.f32 %v1190_v24, %v1149_v23  ;;  %v1438_v24 = vrot.slane %v2588_v26, %v2153_v3 }
 0x1b3   : >> { %v2554_v27 = vpop.permute.xlu0 %1211  ;;  %v1241_v10 = vadd.f32 %v1240_v30, %v1203_v2  ;;  %v1781_v2 = vld [vmem:[%s2740_s0 + $0x6d] ss:$0 sm:$0xff] }
 0x1b6   : >> { %v2556_v42 = vpop.permute.xlu1 %1247 }
 0x1b7   : >> { %v1230_v16 = vpop.permute.xlu0 %1229 }
 0x1b8   : >> { %v1232_v44 = vmul.f32 %v1230_v16, %v1228_v47 }
 0x1ba   : >> { %v1266_v57 = vpop.permute.xlu1 %1265  ;;  %v1233_v31 = vadd.f32 %v1232_v44, %v1191_v61 }
 0x1bb   : >> { %v2558_v62 = vpop.permute.xlu0 %1256  ;;  %v1268_v22 = vmul.f32 %v1266_v57, %v1264_v35  ;;  %v1401_v57 = vrot.slane %v2588_v26, %v2138_v63 }
 0x1bd   : >> { %v1269_v7 = vadd.f32 %v1268_v22, %v1233_v31  ;;  %v1792_v31 = vld [vmem:[%s2740_s0 + $0x79] ss:$0 sm:$0xff] }
 0x1be   : >> { %v2570_v18 = vpop.permute.xlu1 %1283 }
 0x1bf   : >> { %v1275_v29 = vpop.permute.xlu0 %1274 }
 0x1c0   : >> { %v1277_v21 = vmul.f32 %v1275_v29, %v1273_v60  ;;  %v2626_v29 = vld [vmem:[%s2740_s0 + $0x7d] sm:$0x7f] }
 0x1c1   : >> { %v1533_v22 = vrot.slane %v2626_v29, %v2140_v0 }
 0x1c2   : >> { %v1305_v59 = vpop.permute.xlu1 %1304  ;;  %v1278_v41 = vadd.f32 %v1277_v21, %v1241_v10 }
 0x1c3   : >> { %v2581_v37 = vpop.permute.xlu0 %1292  ;;  %v1307_v51 = vmul.f32 %v1305_v59, %v1302_v25  ;;  %v1162_v25 = vrot.slane %v2518_v9, %v2153_v3 }
 0x1c5   : >> { %v1308_v36 = vadd.f32 %v1307_v51, %v1269_v7  ;;  %v1209_v51 = vrot.slane %v2568_v55, %v2140_v0  ;;  %v1245_v7 = vrot.slane %v2540_v52, %v2138_v63  ;;  %v1255_v0 = vrot.slane %v2540_v52, %v2173_v13 }
 0x1c6   : >> { %v2590_v49 = vpop.permute.xlu1 %1322 }
 0x1c7   : >> { %v1314_v50 = vpop.permute.xlu0 %1313 }
 0x1c8   : >> { %v1316_v16 = vmul.f32 %v1314_v50, %v1312_v53  ;;  %v1171_v50 = vrot.slane %v2518_v9, %v2175_v14 }
 0x1ca   : >> { %v1347_v6 = vpop.permute.xlu1 %1346  ;;  %v1317_v35 = vadd.f32 %v1316_v16, %v1278_v41  ;;  %v1321_v16 = vrot.slane %v2577_v15, %v2173_v13 }
 0x1cb   : >> { %v2597_v34 = vpop.permute.xlu0 %1334  ;;  %v1349_v43 = vmul.f32 %v1778_v33, %v1347_v6  ;;  %v1219_v33 = vrot.slane %v2568_v55, %v2138_v63  ;;  %v1282_v55 = vrot.slane %v2540_v52, %v2153_v3 }
 0x1cd   : >> { %v1350_v38 = vadd.f32 %v1349_v43, %v1308_v36  ;;  %v1166_v43 = vmul.f32 %v2544_v46, %v1162_v25  ;;  %v1223_v53 = vmul.f32 %v2552_v4, %v1219_v33  ;;  %v1291_v46 = vrot.slane %v2540_v52, %v2175_v14  ;;  %v1776_v52 = vld [vmem:[%s2740_s0 + $0x6b] ss:$0 sm:$0xff] }
 0x1ce   : >> { %v2600_v48 = vpop.permute.xlu1 %1373  ;;  %v1286_v4 = vmul.f32 %v2570_v18, %v1282_v55  ;;  %v1411_v18 = vrot.slane %v2588_v26, %v2173_v13  ;;  %v1337_v25 = vmul.f32 %v1776_v52, %v2597_v34 }
 0x1cf   : >> { %v1362_v45 = vpop.permute.xlu0 %1361  ;;  %v2602_v39 = vadd.f32 %v1396_v19, %v1350_v38  ;;  %v1534_v38 = vmul.f32 %v2449_v32, %v1533_v22  ;;  %v1167_v32 = vadd.f32 %v1166_v43, %v2533_v11  ;;  %v1295_v11 = vmul.f32 %v2581_v37, %v1291_v46 }
 0x1d0   : >> { %v1364_v47 = vmul.f32 %v1781_v2, %v1362_v45  ;;  %v1175_v45 = vmul.f32 %v2542_v28, %v1171_v50  ;;  %v1250_v28 = vmul.f32 %v2556_v42, %v1245_v7  ;;  %v1783_v42 = vld [vmem:[%s2740_s0 + $0x6e] ss:$0 sm:$0xff]  ;;  %v1420_v37 = vrot.slane %v2588_v26, %v2171_v12  ;;  %v1788_v7 = vld [vmem:[%s2740_s0 + $0x77] ss:$0 sm:$0xff] }
 0x1d1   : >> { %v1376_v22 = vmul.f32 %v1783_v42, %v2600_v48 }
 0x1d2   : >> { %v1404_v40 = vpop.permute.xlu1 %1403  ;;  %v1365_v61 = vadd.f32 %v1364_v47, %v1317_v35 }
 0x1d3   : >> { %v2604_v56 = vpop.permute.xlu0 %1385  ;;  %v1406_v59 = vmul.f32 %v1404_v40, %v1401_v57  ;;  %v1214_v40 = vmul.f32 %v2554_v27, %v1209_v51  ;;  %v1176_v27 = vadd.f32 %v1175_v45, %v2531_v17  ;;  %v1325_v17 = vmul.f32 %v2590_v49, %v1321_v16 }
 0x1d4   : >> { %v1447_v49 = vrot.slane %v2588_v26, %v2175_v14 }
 0x1d5   : >> { %v1407_v54 = vadd.f32 %v1406_v59, %v1365_v61  ;;  %v1215_v41 = vadd.f32 %v1214_v40, %v1167_v32  ;;  %v1224_v47 = vadd.f32 %v1223_v53, %v1176_v27  ;;  %v1429_v61 = vrot.slane %v2588_v26, %v2142_v1 }
 0x1d6   : >> { %v2610_v58 = vpop.permute.xlu1 %1421  ;;  %v1567_v32 = vrot.slane %v2626_v29, %v2142_v1 }
 0x1d7   : >> { %v2612_v30 = vpop.permute.xlu0 %1412  ;;  %v1251_v35 = vadd.f32 %v1250_v28, %v1215_v41  ;;  %v1424_v43 = vmul.f32 %v2610_v58, %v1420_v37  ;;  %v1799_v58 = vld [vmem:[%s2740_s0 + $0x7c] ss:$0 sm:$0xff] }
 0x1d8   : >> { %v1415_v34 = vmul.f32 %v2612_v30, %v1411_v18 }
 0x1da   : >> { %v1440_v8 = vpop.permute.xlu1 %1439 }
 0x1db   : >> { %v2619_v20 = vpop.permute.xlu0 %1430  ;;  %v1442_v10 = vmul.f32 %v1440_v8, %v1438_v24  ;;  %v1259_v8 = vmul.f32 %v2558_v62, %v1255_v0  ;;  %v1785_v62 = vld [vmem:[%s2740_s0 + $0x6f] ss:$0 sm:$0xff] }
 0x1dc   : >> { %v1433_v26 = vmul.f32 %v2619_v20, %v1429_v61  ;;  %v1558_v20 = vrot.slane %v2626_v29, %v2171_v12 }
 0x1dd   : >> { %v1443_v19 = vadd.f32 %v1442_v10, %v1407_v54  ;;  %v1260_v59 = vadd.f32 %v1259_v8, %v1224_v47  ;;  %v1287_v10 = vadd.f32 %v1286_v4, %v1251_v35 }
 0x1de   : >> { %v2628_v23 = vpop.permute.xlu1 %1460  ;;  %v1434_v12 = vadd.f32 %v1433_v26, %v2602_v39 }
 0x1df   : >> { %v2630_v44 = vpop.permute.xlu0 %1448  ;;  %v1296_v50 = vadd.f32 %v1295_v11, %v1260_v59  ;;  %v1326_v33 = vadd.f32 %v1325_v17, %v1287_v10  ;;  %v1463_v0 = vmul.f32 %v1788_v7, %v2628_v23 }
 0x1e0   : >> { %v1451_v30 = vmul.f32 %v2630_v44, %v1447_v49  ;;  %v1549_v44 = vrot.slane %v2626_v29, %v2173_v13  ;;  %v1585_v13 = vrot.slane %v2626_v29, %v2175_v14  ;;  %v1804_v14 = vld [vmem:[%s2740_s0 + $0x85] ss:$0 sm:$0xff] }
 0x1e1   : >> { %v1338_v48 = vadd.f32 %v1337_v25, %v1296_v50 }
 0x1e2   : >> { %v1485_v6 = vpop.permute.xlu1 %1484 }
 0x1e3   : >> { %v1473_v36 = vpop.permute.xlu0 %1472  ;;  %v1487_v9 = vmul.f32 %v1792_v31, %v1485_v6  ;;  %v1388_v31 = vmul.f32 %v1785_v62, %v2604_v56  ;;  %v1790_v6 = vld [vmem:[%s2740_s0 + $0x78] ss:$0 sm:$0xff]  ;;  %v1795_v56 = vld [vmem:[%s2740_s0 + $0x7a] ss:$0 sm:$0xff] }
 0x1e4   : >> { %v1475_v40 = vmul.f32 %v1790_v6, %v1473_v36 }
 0x1e5   : >> { %v1488_v60 = vadd.f32 %v1487_v9, %v1443_v19  ;;  %v1377_v19 = vadd.f32 %v1376_v22, %v1326_v33  ;;  %v1797_v9 = vld [vmem:[%s2740_s0 + $0x7b] ss:$0 sm:$0xff]  ;;  %v1389_v45 = vadd.f32 %v1388_v31, %v1338_v48 }
 0x1e6   : >> { %v1512_v21 = vpop.permute.xlu1 %1511  ;;  %v1476_v41 = vadd.f32 %v1475_v40, %v1434_v12 }
 0x1e7   : >> { %v1500_v2 = vpop.permute.xlu0 %1499  ;;  %v2662_v57 = vadd.f32 %v1534_v38, %v1488_v60  ;;  %v1539_v38 = vrot.slane %v2626_v29, %v2138_v63  ;;  %v1416_v53 = vadd.f32 %v1415_v34, %v1377_v19  ;;  %v1576_v63 = vrot.slane %v2626_v29, %v2153_v3  ;;  %v1802_v3 = vld [vmem:[%s2740_s0 + $0x84] ss:$0 sm:$0xff] }
 0x1e8   : >> { %v1502_v46 = vmul.f32 %v1795_v56, %v1500_v2  ;;  %v1425_v28 = vadd.f32 %v1424_v43, %v1389_v45  ;;  %v1514_v16 = vmul.f32 %v1797_v9, %v1512_v21 }
 0x1e9   : >> { %v1452_v23 = vadd.f32 %v1451_v30, %v1416_v53 }
 0x1ea   : >> { %v1542_v15 = vpop.permute.xlu1 %1541  ;;  %v1464_v8 = vadd.f32 %v1463_v0, %v1425_v28 }
 0x1eb   : >> { %v1524_v24 = vpop.permute.xlu0 %1523  ;;  %v1544_v36 = vmul.f32 %v1542_v15, %v1539_v38  ;;  %v1503_v47 = vadd.f32 %v1502_v46, %v1452_v23  ;;  %v1806_v15 = vld [vmem:[%s2740_s0 + $0x86] ss:$0 sm:$0xff] }
 0x1ec   : >> { %v1526_v27 = vmul.f32 %v1799_v58, %v1524_v24  ;;  %v1515_v21 = vadd.f32 %v1514_v16, %v1464_v8 }
 0x1ed   : >> { %v1545_v29 = vadd.f32 %v1544_v36, %v1503_v47 }
 0x1ee   : >> { %v1560_v51 = vpop.permute.xlu1 %1559  ;;  %v1527_v42 = vadd.f32 %v1526_v27, %v1476_v41 }
 0x1ef   : >> { %v1551_v54 = vpop.permute.xlu0 %1550  ;;  %v1562_v4 = vmul.f32 %v1560_v51, %v1558_v20 }
 0x1f0   : >> { %v1553_v2 = vmul.f32 %v1551_v54, %v1549_v44 }
 0x1f1   : >> { %v1563_v17 = vadd.f32 %v1562_v4, %v1527_v42 }
 0x1f2   : >> { %v1578_v55 = vpop.permute.xlu1 %1577  ;;  %v1554_v62 = vadd.f32 %v1553_v2, %v1515_v21 }
 0x1f3   : >> { %v1569_v60 = vpop.permute.xlu0 %1568  ;;  %v1580_v11 = vmul.f32 %v1578_v55, %v1576_v63 }
 0x1f4   : >> { %v1571_v39 = vmul.f32 %v1569_v60, %v1567_v32 }
 0x1f5   : >> { %v1581_v25 = vadd.f32 %v1580_v11, %v1545_v29 }
 0x1f6   : >> { %v1599_v52 = vpop.permute.xlu1 %1598  ;;  %v1572_v37 = vadd.f32 %v1571_v39, %v2662_v57 }
 0x1f7   : >> { %v1587_v1 = vpop.permute.xlu0 %1586  ;;  %v1601_v24 = vmul.f32 %v1802_v3, %v1599_v52 }
 0x1f8   : >> { %v1589_v35 = vmul.f32 %v1587_v1, %v1585_v13 }
 0x1f9   : >> { %v1602_v22 = vadd.f32 %v1601_v24, %v1563_v17 }
 0x1fa   : >> { %v1623_v18 = vpop.permute.xlu1 %1622  ;;  %v1590_v49 = vadd.f32 %v1589_v35, %v1554_v62 }
 0x1fb   : >> { %v1611_v59 = vpop.permute.xlu0 %1610  ;;  %v1625_v61 = vmul.f32 %v1806_v15, %v1623_v18 }
 0x1fc   : >> { %v1613_v10 = vmul.f32 %v1804_v14, %v1611_v59 }
 0x1fd   : >> { %v1626_v50 = vadd.f32 %v1625_v61, %v1581_v25 }
 0x1fe   : >> { %v1614_v31 = vadd.f32 %v1613_v10, %v1572_v37  ;;  %282 = sbr.rel (!%p280_p4) target bundleno = 145 (0x91), region = 79 }
 0x1ff   : >> { %v1628_v51 = vadd.f32 %v1626_v50, %v1590_v49 }
 0x200   : >> { %v1627_v54 = vadd.f32 %v1614_v31, %v1602_v22 }
 0x202   : >> { %v1629_v33 = vadd.f32 %v1628_v51, %v1627_v54 }
 0x204   : >> { %1633 = vst.msk [vmem:[%s1631_s26] sm:$0xff] %vm1632_vm6, %v1629_v33 }
 0x205 PF: > { %s13_s12 = sadd.s32 1, %s1846_s12  }
 0x206   : > { %p10_p5 = scmp.ge.s32.totalorder %s13_s12, 4  }
 0x208   :  { %12 = sbr.rel (!%p10_p5) target bundleno = 1 (0x1), region = 90 }

</bundles_post_ra>
